<compile_context>
chip_gen: v7x
topology: tpu7x:2x2x1
jax: 0.10.0
libtpu: 0.0.40
codegen_flags: <defaults>
</compile_context>

<pallas_src>
import jax
import jax.numpy as jnp
from jax.experimental import pallas as pl
from jax.experimental.pallas import tpu as pltpu

# ---------------- small test configuration (constructor hyperparams) ----------
X_VOCAB = 50       # x_vocab_size
EMB = 32           # emb_size
HID = 32           # hidden_size
IMG = 64           # img_size
MAX_WP_LEN = 8     # L  (wordpieces per word slot)
NWORDS = 3         # W  (word slots) -> sent length = NWORDS * MAX_WP_LEN
BATCH = 8
BSIZE, MSIZE, SSIZE, DSIZE = 16, 24, 48, 12
HEADS_TOTAL = BSIZE + MSIZE + SSIZE + DSIZE            # 100
HEADS_PAD = ((HEADS_TOTAL + 127) // 128) * 128         # 128: lane-dense output slab


# ---------------- fused kernel: masked 2-layer LSTM + feature MLP + heads -----
def img_text2vec_kernel(pemb_ref, lens_ref, img_ref,
                        whh0_ref, wih1_ref, whh1_ref, b1_ref,
                        wt_ref, bt_ref, wi_ref, bi_ref,
                        wf1t_ref, wf1i_ref, bf1_ref, wf2_ref, bf2_ref,
                        wh_ref, bh_ref,
                        out_ref):
    # pemb_ref : (L, W*B, 4H) f32  precomputed emb@W_ih0 + b0, rows ordered w*B+b
    # lens_ref : (W*B, 1)     f32  wordpiece length per (slot, batch) row
    # whh0/wih1/whh1 : (H, 4H) bf16, gate columns [i, f, o, g]
    # b1_ref   : (1, 4H) f32  layer-1 bias (b_ih + b_hh folded)
    # wh/bh    : (H, 128) bf16 / (1, 128) f32 fused [bcate|mcate|scate|dcate|pad]
    # out_ref  : (B, 128) f32 padded head logits
    L, WB, _ = pemb_ref.shape
    H = whh0_ref.shape[0]
    B = out_ref.shape[0]
    W = WB // B
    H3 = 3 * H

    lens = lens_ref[...]                                    # (W*B, 1), read once
    whh0 = whh0_ref[...]                                    # bf16 recurrent weights
    wih1 = wih1_ref[...]
    whh1 = whh1_ref[...]
    # hoist the (1,4H)->(WB,4H) bias broadcast out of the unrolled time loop
    b1b = jnp.broadcast_to(b1_ref[...], (WB, 4 * H))

    bdot = lambda a, b: jnp.dot(a.astype(jnp.bfloat16), b,
                                preferred_element_type=jnp.float32)

    def cell(pre, h, c, m):
        # pre: fused gate pre-activations (WB, 4H) in order [i | f | o | g]
        s = jax.nn.sigmoid(pre[:, :H3])                     # one EUP slab for i/f/o
        i = s[:, :H]
        f = s[:, H:2 * H]
        o = s[:, 2 * H:H3]
        g = jnp.tanh(pre[:, H3:])
        c_new = f * c + i * g
        h_new = o * jnp.tanh(c_new)
        # length-mask hold: single vselect per state
        return jnp.where(m, h_new, h), jnp.where(m, c_new, c)

    h0 = jnp.zeros((WB, H), jnp.float32)
    c0 = jnp.zeros((WB, H), jnp.float32)
    h1 = jnp.zeros((WB, H), jnp.float32)
    c1 = jnp.zeros((WB, H), jnp.float32)
    for t in range(L):                                      # static unroll over wordpieces
        m = jnp.broadcast_to(lens > float(t), (WB, H))      # bool mask, one compare
        # layer 0: input side precomputed -> single (WB,H)@(H,4H) bf16 dot
        pre0 = pemb_ref[t] + bdot(h0, whh0)
        h0, c0 = cell(pre0, h0, c0, m)
        # layer 1: two dots summed (no lane concat on the critical path)
        pre1 = bdot(h0, wih1) + bdot(h1, whh1) + b1b
        h1, c1 = cell(pre1, h1, c1, m)

    # sent2vec reduction: rows with nonzero length contribute their final h1;
    # divide by #word-slots with any nonzero length in the batch (torch sum_count).
    valid = (lens > 0.0).astype(jnp.float32)                # (W*B, 1)
    contrib = valid * h1                                    # (W*B, H)
    acc = jnp.zeros((B, H), jnp.float32)
    count = jnp.zeros((1, 1), jnp.float32)
    for w in range(W):                                      # static sublane-aligned slices
        sl = slice(w * B, (w + 1) * B)
        acc = acc + contrib[sl]
        count = count + jnp.max(valid[sl], axis=0, keepdims=True)
    # guard: torch divides by zero when every slot is empty (NaN/Inf)
    vec = acc * (1.0 / jnp.maximum(count, 1.0))

    relu = lambda v: jnp.maximum(v, 0.0)
    t_feat = relu(bdot(vec, wt_ref[...]) + bt_ref[...])              # text_feature
    i_feat = relu(bdot(img_ref[...], wi_ref[...]) + bi_ref[...])     # img_feature
    # feature MLP: torch.cat([t, im], 1) @ Wf1  ==  t@Wf1_t + im@Wf1_i (no concat)
    x = relu(bdot(t_feat, wf1t_ref[...]) + bdot(i_feat, wf1i_ref[...]) + bf1_ref[...])
    x = relu(bdot(x, wf2_ref[...]) + bf2_ref[...])                   # dropout = identity
    # all four heads as ONE lane-dense matmul + one unmasked (B, 128) store
    out_ref[...] = bdot(x, wh_ref[...]) + bh_ref[...]


# ---------------- wrapper ------------------------------------------------------
def img_text2vec_forward(params, sent, sent_lens, x_img):
    # sent: (B, W*L) int32 wordpiece ids, sent_lens: (B, W) int32, x_img: (B, IMG) f32
    B = sent.shape[0]
    L = MAX_WP_LEN
    W = sent.shape[1] // L
    WB = W * B

    # glue: gather the precomputed layer-0 projection, time-major (L, W*B, 4H);
    # row order = w*B + b
    ids = sent.reshape(B, W, L).transpose(2, 1, 0).reshape(L, WB)   # (L, W*B)
    pemb = jnp.take(params['emb_proj'], ids, axis=0)                # (L, W*B, 4H) f32
    lens = sent_lens.T.reshape(WB, 1).astype(jnp.float32)           # (W*B, 1)

    vmem = lambda: pl.BlockSpec(memory_space=pltpu.MemorySpace.VMEM)
    heads = pl.pallas_call(
        img_text2vec_kernel,
        out_shape=jax.ShapeDtypeStruct((B, HEADS_PAD), jnp.float32),
        in_specs=[vmem() for _ in range(18)],
        out_specs=vmem(),
    )(pemb, lens, x_img,
      params['whh0'], params['wih1'], params['whh1'], params['b1'],
      params['wt'], params['bt'], params['wi'], params['bi'],
      params['wf1t'], params['wf1i'], params['bf1'], params['wf2'], params['bf2'],
      params['wh'], params['bh'])

    o0 = BSIZE
    o1 = o0 + MSIZE
    o2 = o1 + SSIZE
    o3 = o2 + DSIZE
    return (heads[:, :o0], heads[:, o0:o1], heads[:, o1:o2], heads[:, o2:o3])


# ---------------- deterministic parameter init (synthetic, no checkpoint) -----
def init_params(key):
    ks = jax.random.split(key, 17)

    def u(k, shape, scale):
        return jax.random.uniform(k, shape, jnp.float32, -scale, scale)

    bf16 = lambda a: a.astype(jnp.bfloat16)
    s_h = 1.0 / float(HID) ** 0.5
    s_i = 1.0 / float(IMG) ** 0.5
    emb = u(ks[0], (X_VOCAB, EMB), 0.1).at[0].set(0.0)    # padding_idx=0 -> zero row

    # layer-0 LSTM (gate columns [i, f, o, g]); input projection folded into table
    w_ih0 = u(ks[1], (EMB, 4 * HID), s_h)
    w_hh0 = u(ks[2], (HID, 4 * HID), s_h)
    b0 = u(ks[3], (1, 4 * HID), s_h)                      # b_ih + b_hh folded
    emb_proj = emb @ w_ih0 + b0                           # (X_VOCAB, 4H) f32

    # layer-1 LSTM
    w_ih1 = u(ks[4], (HID, 4 * HID), s_h)
    w_hh1 = u(ks[5], (HID, 4 * HID), s_h)
    b1 = u(ks[6], (1, 4 * HID), s_h)

    # feature MLP first linear split: rows 0:H act on text_feature, H:2H on img_feature
    wf1 = u(ks[11], (2 * HID, HID), s_h)

    wh = jnp.zeros((HID, HEADS_PAD), jnp.float32)
    wh = wh.at[:, :HEADS_TOTAL].set(u(ks[15], (HID, HEADS_TOTAL), s_h))
    bh = jnp.zeros((1, HEADS_PAD), jnp.float32)
    bh = bh.at[:, :HEADS_TOTAL].set(u(ks[16], (1, HEADS_TOTAL), s_h))

    return dict(
        emb_proj=emb_proj,                                # f32 additive term
        whh0=bf16(w_hh0), wih1=bf16(w_ih1), whh1=bf16(w_hh1), b1=b1,
        # text_feature / img_feature
        wt=bf16(u(ks[7], (HID, HID), s_h)), bt=u(ks[8], (1, HID), s_h),
        wi=bf16(u(ks[9], (IMG, HID), s_i)), bi=u(ks[10], (1, HID), s_h),
        # feature MLP
        wf1t=bf16(wf1[:HID]), wf1i=bf16(wf1[HID:]), bf1=u(ks[12], (1, HID), s_h),
        wf2=bf16(u(ks[13], (HID, HID), s_h)), bf2=u(ks[14], (1, HID), s_h),
        # fused classification heads (zero-padded to 128 lanes)
        wh=bf16(wh), bh=bh,
    )


if __name__ == "__main__":
    key = jax.random.PRNGKey(0)
    pkey, k1, k2, k3 = jax.random.split(key, 4)
    params = init_params(pkey)

    sent = jax.random.randint(k1, (BATCH, NWORDS * MAX_WP_LEN), 1, X_VOCAB,
                              dtype=jnp.int32)
    sent_lens = jax.random.randint(k2, (BATCH, NWORDS), 0, MAX_WP_LEN + 1,
                                   dtype=jnp.int32)
    sent_lens = sent_lens.at[0, 0].set(MAX_WP_LEN)   # ensure sum_count > 0
    x_img = jax.random.normal(k3, (BATCH, IMG), jnp.float32)

    fwd = jax.jit(img_text2vec_forward)
    bcate, mcate, scate, dcate = fwd(params, sent, sent_lens, x_img)
    jax.block_until_ready((bcate, mcate, scate, dcate))

    assert bcate.shape == (BATCH, BSIZE)
    assert mcate.shape == (BATCH, MSIZE)
    assert scate.shape == (BATCH, SSIZE)
    assert dcate.shape == (BATCH, DSIZE)
    assert bool(jnp.all(jnp.isfinite(bcate)))
    print("KERNEL_OK")
</pallas_src>

<mosaic_0001>
module attributes {stable_mosaic.version = 11 : i64} {
  func.func @img_text2vec_kernel(%arg0: memref<8x24x128xf32, #tpu.memory_space<vmem>>, %arg1: memref<24x1xf32, #tpu.memory_space<vmem>>, %arg2: memref<8x64xf32, #tpu.memory_space<vmem>>, %arg3: memref<32x128xbf16, #tpu.memory_space<vmem>>, %arg4: memref<32x128xbf16, #tpu.memory_space<vmem>>, %arg5: memref<32x128xbf16, #tpu.memory_space<vmem>>, %arg6: memref<1x128xf32, #tpu.memory_space<vmem>>, %arg7: memref<32x32xbf16, #tpu.memory_space<vmem>>, %arg8: memref<1x32xf32, #tpu.memory_space<vmem>>, %arg9: memref<64x32xbf16, #tpu.memory_space<vmem>>, %arg10: memref<1x32xf32, #tpu.memory_space<vmem>>, %arg11: memref<32x32xbf16, #tpu.memory_space<vmem>>, %arg12: memref<32x32xbf16, #tpu.memory_space<vmem>>, %arg13: memref<1x32xf32, #tpu.memory_space<vmem>>, %arg14: memref<32x32xbf16, #tpu.memory_space<vmem>>, %arg15: memref<1x32xf32, #tpu.memory_space<vmem>>, %arg16: memref<32x128xbf16, #tpu.memory_space<vmem>>, %arg17: memref<1x128xf32, #tpu.memory_space<vmem>>, %arg18: memref<8x128xf32, #tpu.memory_space<vmem>>) attributes {dimension_semantics = [], scalar_prefetch = 0 : i64, scratch_operands = 0 : i64, tpu.core_type = #tpu.core_type<tc>} {
    %c0 = arith.constant 0 : index
    %c0_0 = arith.constant 0 : index
    %0 = vector.load %arg1[%c0, %c0_0] : memref<24x1xf32, #tpu.memory_space<vmem>>, vector<24x1xf32>
    %c0_1 = arith.constant 0 : index
    %c0_2 = arith.constant 0 : index
    %1 = vector.load %arg3[%c0_1, %c0_2] : memref<32x128xbf16, #tpu.memory_space<vmem>>, vector<32x128xbf16>
    %c0_3 = arith.constant 0 : index
    %c0_4 = arith.constant 0 : index
    %2 = vector.load %arg4[%c0_3, %c0_4] : memref<32x128xbf16, #tpu.memory_space<vmem>>, vector<32x128xbf16>
    %c0_5 = arith.constant 0 : index
    %c0_6 = arith.constant 0 : index
    %3 = vector.load %arg5[%c0_5, %c0_6] : memref<32x128xbf16, #tpu.memory_space<vmem>>, vector<32x128xbf16>
    %c0_7 = arith.constant 0 : index
    %c0_8 = arith.constant 0 : index
    %4 = vector.load %arg6[%c0_7, %c0_8] : memref<1x128xf32, #tpu.memory_space<vmem>>, vector<1x128xf32>
    %5 = vector.shape_cast %4 : vector<1x128xf32> to vector<1x128xf32>
    %6 = vector.broadcast %5 : vector<1x128xf32> to vector<24x128xf32>
    %cst = arith.constant 0.000000e+00 : f32
    %7 = vector.broadcast %cst : f32 to vector<24x32xf32>
    %cst_9 = arith.constant 0.000000e+00 : f32
    %8 = vector.broadcast %cst_9 : f32 to vector<24x32xf32>
    %cst_10 = arith.constant 0.000000e+00 : f32
    %9 = vector.broadcast %cst_10 : f32 to vector<24x32xf32>
    %cst_11 = arith.constant 0.000000e+00 : f32
    %10 = vector.broadcast %cst_11 : f32 to vector<24x32xf32>
    %cst_12 = arith.constant 0.000000e+00 : f32
    %11 = vector.broadcast %cst_12 : f32 to vector<24x1xf32>
    %12 = arith.cmpf ogt, %0, %11 : vector<24x1xf32>
    %13 = vector.shape_cast %12 : vector<24x1xi1> to vector<24x1xi1>
    %14 = vector.broadcast %13 : vector<24x1xi1> to vector<24x32xi1>
    %c0_13 = arith.constant 0 : index
    %c0_14 = arith.constant 0 : index
    %c0_15 = arith.constant 0 : index
    %15 = vector.load %arg0[%c0_13, %c0_14, %c0_15] : memref<8x24x128xf32, #tpu.memory_space<vmem>>, vector<1x24x128xf32>
    %16 = vector.shape_cast %15 : vector<1x24x128xf32> to vector<24x128xf32>
    %17 = arith.truncf %7 : vector<24x32xf32> to vector<24x32xbf16>
    %cst_16 = arith.constant dense<0.000000e+00> : vector<24x128xf32>
    %18 = tpu.matmul %17, %1, %cst_16 {dimension_numbers = #tpu.dot_dimension_numbers<[1], [0], [0], [1], [0, 0, 1, 1], [], []>} : vector<24x32xbf16>, vector<32x128xbf16>, vector<24x128xf32> -> vector<24x128xf32>
    %19 = arith.addf %16, %18 : vector<24x128xf32>
    %20 = vector.extract_strided_slice %19 {offsets = [0, 0], sizes = [24, 96], strides = [1, 1]} : vector<24x128xf32> to vector<24x96xf32>
    %21 = arith.negf %20 : vector<24x96xf32>
    %22 = math.exp %21 : vector<24x96xf32>
    %cst_17 = arith.constant 1.000000e+00 : f32
    %23 = vector.broadcast %cst_17 : f32 to vector<24x96xf32>
    %24 = arith.addf %23, %22 : vector<24x96xf32>
    %25 = arith.divf %23, %24 : vector<24x96xf32>
    %26 = vector.extract_strided_slice %25 {offsets = [0, 0], sizes = [24, 32], strides = [1, 1]} : vector<24x96xf32> to vector<24x32xf32>
    %27 = vector.extract_strided_slice %25 {offsets = [0, 32], sizes = [24, 32], strides = [1, 1]} : vector<24x96xf32> to vector<24x32xf32>
    %28 = vector.extract_strided_slice %25 {offsets = [0, 64], sizes = [24, 32], strides = [1, 1]} : vector<24x96xf32> to vector<24x32xf32>
    %29 = vector.extract_strided_slice %19 {offsets = [0, 96], sizes = [24, 32], strides = [1, 1]} : vector<24x128xf32> to vector<24x32xf32>
    %30 = math.tanh %29 : vector<24x32xf32>
    %31 = arith.mulf %27, %8 : vector<24x32xf32>
    %32 = arith.mulf %26, %30 : vector<24x32xf32>
    %33 = arith.addf %31, %32 : vector<24x32xf32>
    %34 = math.tanh %33 : vector<24x32xf32>
    %35 = arith.mulf %28, %34 : vector<24x32xf32>
    %36 = arith.select %14, %35, %7 : vector<24x32xi1>, vector<24x32xf32>
    %37 = arith.select %14, %33, %8 : vector<24x32xi1>, vector<24x32xf32>
    %38 = arith.truncf %36 : vector<24x32xf32> to vector<24x32xbf16>
    %cst_18 = arith.constant dense<0.000000e+00> : vector<24x128xf32>
    %39 = tpu.matmul %38, %2, %cst_18 {dimension_numbers = #tpu.dot_dimension_numbers<[1], [0], [0], [1], [0, 0, 1, 1], [], []>} : vector<24x32xbf16>, vector<32x128xbf16>, vector<24x128xf32> -> vector<24x128xf32>
    %40 = arith.truncf %9 : vector<24x32xf32> to vector<24x32xbf16>
    %cst_19 = arith.constant dense<0.000000e+00> : vector<24x128xf32>
    %41 = tpu.matmul %40, %3, %cst_19 {dimension_numbers = #tpu.dot_dimension_numbers<[1], [0], [0], [1], [0, 0, 1, 1], [], []>} : vector<24x32xbf16>, vector<32x128xbf16>, vector<24x128xf32> -> vector<24x128xf32>
    %42 = arith.addf %39, %41 : vector<24x128xf32>
    %43 = arith.addf %42, %6 : vector<24x128xf32>
    %44 = vector.extract_strided_slice %43 {offsets = [0, 0], sizes = [24, 96], strides = [1, 1]} : vector<24x128xf32> to vector<24x96xf32>
    %45 = arith.negf %44 : vector<24x96xf32>
    %46 = math.exp %45 : vector<24x96xf32>
    %cst_20 = arith.constant 1.000000e+00 : f32
    %47 = vector.broadcast %cst_20 : f32 to vector<24x96xf32>
    %48 = arith.addf %47, %46 : vector<24x96xf32>
    %49 = arith.divf %47, %48 : vector<24x96xf32>
    %50 = vector.extract_strided_slice %49 {offsets = [0, 0], sizes = [24, 32], strides = [1, 1]} : vector<24x96xf32> to vector<24x32xf32>
    %51 = vector.extract_strided_slice %49 {offsets = [0, 32], sizes = [24, 32], strides = [1, 1]} : vector<24x96xf32> to vector<24x32xf32>
    %52 = vector.extract_strided_slice %49 {offsets = [0, 64], sizes = [24, 32], strides = [1, 1]} : vector<24x96xf32> to vector<24x32xf32>
    %53 = vector.extract_strided_slice %43 {offsets = [0, 96], sizes = [24, 32], strides = [1, 1]} : vector<24x128xf32> to vector<24x32xf32>
    %54 = math.tanh %53 : vector<24x32xf32>
    %55 = arith.mulf %51, %10 : vector<24x32xf32>
    %56 = arith.mulf %50, %54 : vector<24x32xf32>
    %57 = arith.addf %55, %56 : vector<24x32xf32>
    %58 = math.tanh %57 : vector<24x32xf32>
    %59 = arith.mulf %52, %58 : vector<24x32xf32>
    %60 = arith.select %14, %59, %9 : vector<24x32xi1>, vector<24x32xf32>
    %61 = arith.select %14, %57, %10 : vector<24x32xi1>, vector<24x32xf32>
    %cst_21 = arith.constant 1.000000e+00 : f32
    %62 = vector.broadcast %cst_21 : f32 to vector<24x1xf32>
    %63 = arith.cmpf ogt, %0, %62 : vector<24x1xf32>
    %64 = vector.shape_cast %63 : vector<24x1xi1> to vector<24x1xi1>
    %65 = vector.broadcast %64 : vector<24x1xi1> to vector<24x32xi1>
    %c1 = arith.constant 1 : index
    %c0_22 = arith.constant 0 : index
    %c0_23 = arith.constant 0 : index
    %66 = vector.load %arg0[%c1, %c0_22, %c0_23] : memref<8x24x128xf32, #tpu.memory_space<vmem>>, vector<1x24x128xf32>
    %67 = vector.shape_cast %66 : vector<1x24x128xf32> to vector<24x128xf32>
    %68 = arith.truncf %36 : vector<24x32xf32> to vector<24x32xbf16>
    %cst_24 = arith.constant dense<0.000000e+00> : vector<24x128xf32>
    %69 = tpu.matmul %68, %1, %cst_24 {dimension_numbers = #tpu.dot_dimension_numbers<[1], [0], [0], [1], [0, 0, 1, 1], [], []>} : vector<24x32xbf16>, vector<32x128xbf16>, vector<24x128xf32> -> vector<24x128xf32>
    %70 = arith.addf %67, %69 : vector<24x128xf32>
    %71 = vector.extract_strided_slice %70 {offsets = [0, 0], sizes = [24, 96], strides = [1, 1]} : vector<24x128xf32> to vector<24x96xf32>
    %72 = arith.negf %71 : vector<24x96xf32>
    %73 = math.exp %72 : vector<24x96xf32>
    %cst_25 = arith.constant 1.000000e+00 : f32
    %74 = vector.broadcast %cst_25 : f32 to vector<24x96xf32>
    %75 = arith.addf %74, %73 : vector<24x96xf32>
    %76 = arith.divf %74, %75 : vector<24x96xf32>
    %77 = vector.extract_strided_slice %76 {offsets = [0, 0], sizes = [24, 32], strides = [1, 1]} : vector<24x96xf32> to vector<24x32xf32>
    %78 = vector.extract_strided_slice %76 {offsets = [0, 32], sizes = [24, 32], strides = [1, 1]} : vector<24x96xf32> to vector<24x32xf32>
    %79 = vector.extract_strided_slice %76 {offsets = [0, 64], sizes = [24, 32], strides = [1, 1]} : vector<24x96xf32> to vector<24x32xf32>
    %80 = vector.extract_strided_slice %70 {offsets = [0, 96], sizes = [24, 32], strides = [1, 1]} : vector<24x128xf32> to vector<24x32xf32>
    %81 = math.tanh %80 : vector<24x32xf32>
    %82 = arith.mulf %78, %37 : vector<24x32xf32>
    %83 = arith.mulf %77, %81 : vector<24x32xf32>
    %84 = arith.addf %82, %83 : vector<24x32xf32>
    %85 = math.tanh %84 : vector<24x32xf32>
    %86 = arith.mulf %79, %85 : vector<24x32xf32>
    %87 = arith.select %65, %86, %36 : vector<24x32xi1>, vector<24x32xf32>
    %88 = arith.select %65, %84, %37 : vector<24x32xi1>, vector<24x32xf32>
    %89 = arith.truncf %87 : vector<24x32xf32> to vector<24x32xbf16>
    %cst_26 = arith.constant dense<0.000000e+00> : vector<24x128xf32>
    %90 = tpu.matmul %89, %2, %cst_26 {dimension_numbers = #tpu.dot_dimension_numbers<[1], [0], [0], [1], [0, 0, 1, 1], [], []>} : vector<24x32xbf16>, vector<32x128xbf16>, vector<24x128xf32> -> vector<24x128xf32>
    %91 = arith.truncf %60 : vector<24x32xf32> to vector<24x32xbf16>
    %cst_27 = arith.constant dense<0.000000e+00> : vector<24x128xf32>
    %92 = tpu.matmul %91, %3, %cst_27 {dimension_numbers = #tpu.dot_dimension_numbers<[1], [0], [0], [1], [0, 0, 1, 1], [], []>} : vector<24x32xbf16>, vector<32x128xbf16>, vector<24x128xf32> -> vector<24x128xf32>
    %93 = arith.addf %90, %92 : vector<24x128xf32>
    %94 = arith.addf %93, %6 : vector<24x128xf32>
    %95 = vector.extract_strided_slice %94 {offsets = [0, 0], sizes = [24, 96], strides = [1, 1]} : vector<24x128xf32> to vector<24x96xf32>
    %96 = arith.negf %95 : vector<24x96xf32>
    %97 = math.exp %96 : vector<24x96xf32>
    %cst_28 = arith.constant 1.000000e+00 : f32
    %98 = vector.broadcast %cst_28 : f32 to vector<24x96xf32>
    %99 = arith.addf %98, %97 : vector<24x96xf32>
    %100 = arith.divf %98, %99 : vector<24x96xf32>
    %101 = vector.extract_strided_slice %100 {offsets = [0, 0], sizes = [24, 32], strides = [1, 1]} : vector<24x96xf32> to vector<24x32xf32>
    %102 = vector.extract_strided_slice %100 {offsets = [0, 32], sizes = [24, 32], strides = [1, 1]} : vector<24x96xf32> to vector<24x32xf32>
    %103 = vector.extract_strided_slice %100 {offsets = [0, 64], sizes = [24, 32], strides = [1, 1]} : vector<24x96xf32> to vector<24x32xf32>
    %104 = vector.extract_strided_slice %94 {offsets = [0, 96], sizes = [24, 32], strides = [1, 1]} : vector<24x128xf32> to vector<24x32xf32>
    %105 = math.tanh %104 : vector<24x32xf32>
    %106 = arith.mulf %102, %61 : vector<24x32xf32>
    %107 = arith.mulf %101, %105 : vector<24x32xf32>
    %108 = arith.addf %106, %107 : vector<24x32xf32>
    %109 = math.tanh %108 : vector<24x32xf32>
    %110 = arith.mulf %103, %109 : vector<24x32xf32>
    %111 = arith.select %65, %110, %60 : vector<24x32xi1>, vector<24x32xf32>
    %112 = arith.select %65, %108, %61 : vector<24x32xi1>, vector<24x32xf32>
    %cst_29 = arith.constant 2.000000e+00 : f32
    %113 = vector.broadcast %cst_29 : f32 to vector<24x1xf32>
    %114 = arith.cmpf ogt, %0, %113 : vector<24x1xf32>
    %115 = vector.shape_cast %114 : vector<24x1xi1> to vector<24x1xi1>
    %116 = vector.broadcast %115 : vector<24x1xi1> to vector<24x32xi1>
    %c2 = arith.constant 2 : index
    %c0_30 = arith.constant 0 : index
    %c0_31 = arith.constant 0 : index
    %117 = vector.load %arg0[%c2, %c0_30, %c0_31] : memref<8x24x128xf32, #tpu.memory_space<vmem>>, vector<1x24x128xf32>
    %118 = vector.shape_cast %117 : vector<1x24x128xf32> to vector<24x128xf32>
    %119 = arith.truncf %87 : vector<24x32xf32> to vector<24x32xbf16>
    %cst_32 = arith.constant dense<0.000000e+00> : vector<24x128xf32>
    %120 = tpu.matmul %119, %1, %cst_32 {dimension_numbers = #tpu.dot_dimension_numbers<[1], [0], [0], [1], [0, 0, 1, 1], [], []>} : vector<24x32xbf16>, vector<32x128xbf16>, vector<24x128xf32> -> vector<24x128xf32>
    %121 = arith.addf %118, %120 : vector<24x128xf32>
    %122 = vector.extract_strided_slice %121 {offsets = [0, 0], sizes = [24, 96], strides = [1, 1]} : vector<24x128xf32> to vector<24x96xf32>
    %123 = arith.negf %122 : vector<24x96xf32>
    %124 = math.exp %123 : vector<24x96xf32>
    %cst_33 = arith.constant 1.000000e+00 : f32
    %125 = vector.broadcast %cst_33 : f32 to vector<24x96xf32>
    %126 = arith.addf %125, %124 : vector<24x96xf32>
    %127 = arith.divf %125, %126 : vector<24x96xf32>
    %128 = vector.extract_strided_slice %127 {offsets = [0, 0], sizes = [24, 32], strides = [1, 1]} : vector<24x96xf32> to vector<24x32xf32>
    %129 = vector.extract_strided_slice %127 {offsets = [0, 32], sizes = [24, 32], strides = [1, 1]} : vector<24x96xf32> to vector<24x32xf32>
    %130 = vector.extract_strided_slice %127 {offsets = [0, 64], sizes = [24, 32], strides = [1, 1]} : vector<24x96xf32> to vector<24x32xf32>
    %131 = vector.extract_strided_slice %121 {offsets = [0, 96], sizes = [24, 32], strides = [1, 1]} : vector<24x128xf32> to vector<24x32xf32>
    %132 = math.tanh %131 : vector<24x32xf32>
    %133 = arith.mulf %129, %88 : vector<24x32xf32>
    %134 = arith.mulf %128, %132 : vector<24x32xf32>
    %135 = arith.addf %133, %134 : vector<24x32xf32>
    %136 = math.tanh %135 : vector<24x32xf32>
    %137 = arith.mulf %130, %136 : vector<24x32xf32>
    %138 = arith.select %116, %137, %87 : vector<24x32xi1>, vector<24x32xf32>
    %139 = arith.select %116, %135, %88 : vector<24x32xi1>, vector<24x32xf32>
    %140 = arith.truncf %138 : vector<24x32xf32> to vector<24x32xbf16>
    %cst_34 = arith.constant dense<0.000000e+00> : vector<24x128xf32>
    %141 = tpu.matmul %140, %2, %cst_34 {dimension_numbers = #tpu.dot_dimension_numbers<[1], [0], [0], [1], [0, 0, 1, 1], [], []>} : vector<24x32xbf16>, vector<32x128xbf16>, vector<24x128xf32> -> vector<24x128xf32>
    %142 = arith.truncf %111 : vector<24x32xf32> to vector<24x32xbf16>
    %cst_35 = arith.constant dense<0.000000e+00> : vector<24x128xf32>
    %143 = tpu.matmul %142, %3, %cst_35 {dimension_numbers = #tpu.dot_dimension_numbers<[1], [0], [0], [1], [0, 0, 1, 1], [], []>} : vector<24x32xbf16>, vector<32x128xbf16>, vector<24x128xf32> -> vector<24x128xf32>
    %144 = arith.addf %141, %143 : vector<24x128xf32>
    %145 = arith.addf %144, %6 : vector<24x128xf32>
    %146 = vector.extract_strided_slice %145 {offsets = [0, 0], sizes = [24, 96], strides = [1, 1]} : vector<24x128xf32> to vector<24x96xf32>
    %147 = arith.negf %146 : vector<24x96xf32>
    %148 = math.exp %147 : vector<24x96xf32>
    %cst_36 = arith.constant 1.000000e+00 : f32
    %149 = vector.broadcast %cst_36 : f32 to vector<24x96xf32>
    %150 = arith.addf %149, %148 : vector<24x96xf32>
    %151 = arith.divf %149, %150 : vector<24x96xf32>
    %152 = vector.extract_strided_slice %151 {offsets = [0, 0], sizes = [24, 32], strides = [1, 1]} : vector<24x96xf32> to vector<24x32xf32>
    %153 = vector.extract_strided_slice %151 {offsets = [0, 32], sizes = [24, 32], strides = [1, 1]} : vector<24x96xf32> to vector<24x32xf32>
    %154 = vector.extract_strided_slice %151 {offsets = [0, 64], sizes = [24, 32], strides = [1, 1]} : vector<24x96xf32> to vector<24x32xf32>
    %155 = vector.extract_strided_slice %145 {offsets = [0, 96], sizes = [24, 32], strides = [1, 1]} : vector<24x128xf32> to vector<24x32xf32>
    %156 = math.tanh %155 : vector<24x32xf32>
    %157 = arith.mulf %153, %112 : vector<24x32xf32>
    %158 = arith.mulf %152, %156 : vector<24x32xf32>
    %159 = arith.addf %157, %158 : vector<24x32xf32>
    %160 = math.tanh %159 : vector<24x32xf32>
    %161 = arith.mulf %154, %160 : vector<24x32xf32>
    %162 = arith.select %116, %161, %111 : vector<24x32xi1>, vector<24x32xf32>
    %163 = arith.select %116, %159, %112 : vector<24x32xi1>, vector<24x32xf32>
    %cst_37 = arith.constant 3.000000e+00 : f32
    %164 = vector.broadcast %cst_37 : f32 to vector<24x1xf32>
    %165 = arith.cmpf ogt, %0, %164 : vector<24x1xf32>
    %166 = vector.shape_cast %165 : vector<24x1xi1> to vector<24x1xi1>
    %167 = vector.broadcast %166 : vector<24x1xi1> to vector<24x32xi1>
    %c3 = arith.constant 3 : index
    %c0_38 = arith.constant 0 : index
    %c0_39 = arith.constant 0 : index
    %168 = vector.load %arg0[%c3, %c0_38, %c0_39] : memref<8x24x128xf32, #tpu.memory_space<vmem>>, vector<1x24x128xf32>
    %169 = vector.shape_cast %168 : vector<1x24x128xf32> to vector<24x128xf32>
    %170 = arith.truncf %138 : vector<24x32xf32> to vector<24x32xbf16>
    %cst_40 = arith.constant dense<0.000000e+00> : vector<24x128xf32>
    %171 = tpu.matmul %170, %1, %cst_40 {dimension_numbers = #tpu.dot_dimension_numbers<[1], [0], [0], [1], [0, 0, 1, 1], [], []>} : vector<24x32xbf16>, vector<32x128xbf16>, vector<24x128xf32> -> vector<24x128xf32>
    %172 = arith.addf %169, %171 : vector<24x128xf32>
    %173 = vector.extract_strided_slice %172 {offsets = [0, 0], sizes = [24, 96], strides = [1, 1]} : vector<24x128xf32> to vector<24x96xf32>
    %174 = arith.negf %173 : vector<24x96xf32>
    %175 = math.exp %174 : vector<24x96xf32>
    %cst_41 = arith.constant 1.000000e+00 : f32
    %176 = vector.broadcast %cst_41 : f32 to vector<24x96xf32>
    %177 = arith.addf %176, %175 : vector<24x96xf32>
    %178 = arith.divf %176, %177 : vector<24x96xf32>
    %179 = vector.extract_strided_slice %178 {offsets = [0, 0], sizes = [24, 32], strides = [1, 1]} : vector<24x96xf32> to vector<24x32xf32>
    %180 = vector.extract_strided_slice %178 {offsets = [0, 32], sizes = [24, 32], strides = [1, 1]} : vector<24x96xf32> to vector<24x32xf32>
    %181 = vector.extract_strided_slice %178 {offsets = [0, 64], sizes = [24, 32], strides = [1, 1]} : vector<24x96xf32> to vector<24x32xf32>
    %182 = vector.extract_strided_slice %172 {offsets = [0, 96], sizes = [24, 32], strides = [1, 1]} : vector<24x128xf32> to vector<24x32xf32>
    %183 = math.tanh %182 : vector<24x32xf32>
    %184 = arith.mulf %180, %139 : vector<24x32xf32>
    %185 = arith.mulf %179, %183 : vector<24x32xf32>
    %186 = arith.addf %184, %185 : vector<24x32xf32>
    %187 = math.tanh %186 : vector<24x32xf32>
    %188 = arith.mulf %181, %187 : vector<24x32xf32>
    %189 = arith.select %167, %188, %138 : vector<24x32xi1>, vector<24x32xf32>
    %190 = arith.select %167, %186, %139 : vector<24x32xi1>, vector<24x32xf32>
    %191 = arith.truncf %189 : vector<24x32xf32> to vector<24x32xbf16>
    %cst_42 = arith.constant dense<0.000000e+00> : vector<24x128xf32>
    %192 = tpu.matmul %191, %2, %cst_42 {dimension_numbers = #tpu.dot_dimension_numbers<[1], [0], [0], [1], [0, 0, 1, 1], [], []>} : vector<24x32xbf16>, vector<32x128xbf16>, vector<24x128xf32> -> vector<24x128xf32>
    %193 = arith.truncf %162 : vector<24x32xf32> to vector<24x32xbf16>
    %cst_43 = arith.constant dense<0.000000e+00> : vector<24x128xf32>
    %194 = tpu.matmul %193, %3, %cst_43 {dimension_numbers = #tpu.dot_dimension_numbers<[1], [0], [0], [1], [0, 0, 1, 1], [], []>} : vector<24x32xbf16>, vector<32x128xbf16>, vector<24x128xf32> -> vector<24x128xf32>
    %195 = arith.addf %192, %194 : vector<24x128xf32>
    %196 = arith.addf %195, %6 : vector<24x128xf32>
    %197 = vector.extract_strided_slice %196 {offsets = [0, 0], sizes = [24, 96], strides = [1, 1]} : vector<24x128xf32> to vector<24x96xf32>
    %198 = arith.negf %197 : vector<24x96xf32>
    %199 = math.exp %198 : vector<24x96xf32>
    %cst_44 = arith.constant 1.000000e+00 : f32
    %200 = vector.broadcast %cst_44 : f32 to vector<24x96xf32>
    %201 = arith.addf %200, %199 : vector<24x96xf32>
    %202 = arith.divf %200, %201 : vector<24x96xf32>
    %203 = vector.extract_strided_slice %202 {offsets = [0, 0], sizes = [24, 32], strides = [1, 1]} : vector<24x96xf32> to vector<24x32xf32>
    %204 = vector.extract_strided_slice %202 {offsets = [0, 32], sizes = [24, 32], strides = [1, 1]} : vector<24x96xf32> to vector<24x32xf32>
    %205 = vector.extract_strided_slice %202 {offsets = [0, 64], sizes = [24, 32], strides = [1, 1]} : vector<24x96xf32> to vector<24x32xf32>
    %206 = vector.extract_strided_slice %196 {offsets = [0, 96], sizes = [24, 32], strides = [1, 1]} : vector<24x128xf32> to vector<24x32xf32>
    %207 = math.tanh %206 : vector<24x32xf32>
    %208 = arith.mulf %204, %163 : vector<24x32xf32>
    %209 = arith.mulf %203, %207 : vector<24x32xf32>
    %210 = arith.addf %208, %209 : vector<24x32xf32>
    %211 = math.tanh %210 : vector<24x32xf32>
    %212 = arith.mulf %205, %211 : vector<24x32xf32>
    %213 = arith.select %167, %212, %162 : vector<24x32xi1>, vector<24x32xf32>
    %214 = arith.select %167, %210, %163 : vector<24x32xi1>, vector<24x32xf32>
    %cst_45 = arith.constant 4.000000e+00 : f32
    %215 = vector.broadcast %cst_45 : f32 to vector<24x1xf32>
    %216 = arith.cmpf ogt, %0, %215 : vector<24x1xf32>
    %217 = vector.shape_cast %216 : vector<24x1xi1> to vector<24x1xi1>
    %218 = vector.broadcast %217 : vector<24x1xi1> to vector<24x32xi1>
    %c4 = arith.constant 4 : index
    %c0_46 = arith.constant 0 : index
    %c0_47 = arith.constant 0 : index
    %219 = vector.load %arg0[%c4, %c0_46, %c0_47] : memref<8x24x128xf32, #tpu.memory_space<vmem>>, vector<1x24x128xf32>
    %220 = vector.shape_cast %219 : vector<1x24x128xf32> to vector<24x128xf32>
    %221 = arith.truncf %189 : vector<24x32xf32> to vector<24x32xbf16>
    %cst_48 = arith.constant dense<0.000000e+00> : vector<24x128xf32>
    %222 = tpu.matmul %221, %1, %cst_48 {dimension_numbers = #tpu.dot_dimension_numbers<[1], [0], [0], [1], [0, 0, 1, 1], [], []>} : vector<24x32xbf16>, vector<32x128xbf16>, vector<24x128xf32> -> vector<24x128xf32>
    %223 = arith.addf %220, %222 : vector<24x128xf32>
    %224 = vector.extract_strided_slice %223 {offsets = [0, 0], sizes = [24, 96], strides = [1, 1]} : vector<24x128xf32> to vector<24x96xf32>
    %225 = arith.negf %224 : vector<24x96xf32>
    %226 = math.exp %225 : vector<24x96xf32>
    %cst_49 = arith.constant 1.000000e+00 : f32
    %227 = vector.broadcast %cst_49 : f32 to vector<24x96xf32>
    %228 = arith.addf %227, %226 : vector<24x96xf32>
    %229 = arith.divf %227, %228 : vector<24x96xf32>
    %230 = vector.extract_strided_slice %229 {offsets = [0, 0], sizes = [24, 32], strides = [1, 1]} : vector<24x96xf32> to vector<24x32xf32>
    %231 = vector.extract_strided_slice %229 {offsets = [0, 32], sizes = [24, 32], strides = [1, 1]} : vector<24x96xf32> to vector<24x32xf32>
    %232 = vector.extract_strided_slice %229 {offsets = [0, 64], sizes = [24, 32], strides = [1, 1]} : vector<24x96xf32> to vector<24x32xf32>
    %233 = vector.extract_strided_slice %223 {offsets = [0, 96], sizes = [24, 32], strides = [1, 1]} : vector<24x128xf32> to vector<24x32xf32>
    %234 = math.tanh %233 : vector<24x32xf32>
    %235 = arith.mulf %231, %190 : vector<24x32xf32>
    %236 = arith.mulf %230, %234 : vector<24x32xf32>
    %237 = arith.addf %235, %236 : vector<24x32xf32>
    %238 = math.tanh %237 : vector<24x32xf32>
    %239 = arith.mulf %232, %238 : vector<24x32xf32>
    %240 = arith.select %218, %239, %189 : vector<24x32xi1>, vector<24x32xf32>
    %241 = arith.select %218, %237, %190 : vector<24x32xi1>, vector<24x32xf32>
    %242 = arith.truncf %240 : vector<24x32xf32> to vector<24x32xbf16>
    %cst_50 = arith.constant dense<0.000000e+00> : vector<24x128xf32>
    %243 = tpu.matmul %242, %2, %cst_50 {dimension_numbers = #tpu.dot_dimension_numbers<[1], [0], [0], [1], [0, 0, 1, 1], [], []>} : vector<24x32xbf16>, vector<32x128xbf16>, vector<24x128xf32> -> vector<24x128xf32>
    %244 = arith.truncf %213 : vector<24x32xf32> to vector<24x32xbf16>
    %cst_51 = arith.constant dense<0.000000e+00> : vector<24x128xf32>
    %245 = tpu.matmul %244, %3, %cst_51 {dimension_numbers = #tpu.dot_dimension_numbers<[1], [0], [0], [1], [0, 0, 1, 1], [], []>} : vector<24x32xbf16>, vector<32x128xbf16>, vector<24x128xf32> -> vector<24x128xf32>
    %246 = arith.addf %243, %245 : vector<24x128xf32>
    %247 = arith.addf %246, %6 : vector<24x128xf32>
    %248 = vector.extract_strided_slice %247 {offsets = [0, 0], sizes = [24, 96], strides = [1, 1]} : vector<24x128xf32> to vector<24x96xf32>
    %249 = arith.negf %248 : vector<24x96xf32>
    %250 = math.exp %249 : vector<24x96xf32>
    %cst_52 = arith.constant 1.000000e+00 : f32
    %251 = vector.broadcast %cst_52 : f32 to vector<24x96xf32>
    %252 = arith.addf %251, %250 : vector<24x96xf32>
    %253 = arith.divf %251, %252 : vector<24x96xf32>
    %254 = vector.extract_strided_slice %253 {offsets = [0, 0], sizes = [24, 32], strides = [1, 1]} : vector<24x96xf32> to vector<24x32xf32>
    %255 = vector.extract_strided_slice %253 {offsets = [0, 32], sizes = [24, 32], strides = [1, 1]} : vector<24x96xf32> to vector<24x32xf32>
    %256 = vector.extract_strided_slice %253 {offsets = [0, 64], sizes = [24, 32], strides = [1, 1]} : vector<24x96xf32> to vector<24x32xf32>
    %257 = vector.extract_strided_slice %247 {offsets = [0, 96], sizes = [24, 32], strides = [1, 1]} : vector<24x128xf32> to vector<24x32xf32>
    %258 = math.tanh %257 : vector<24x32xf32>
    %259 = arith.mulf %255, %214 : vector<24x32xf32>
    %260 = arith.mulf %254, %258 : vector<24x32xf32>
    %261 = arith.addf %259, %260 : vector<24x32xf32>
    %262 = math.tanh %261 : vector<24x32xf32>
    %263 = arith.mulf %256, %262 : vector<24x32xf32>
    %264 = arith.select %218, %263, %213 : vector<24x32xi1>, vector<24x32xf32>
    %265 = arith.select %218, %261, %214 : vector<24x32xi1>, vector<24x32xf32>
    %cst_53 = arith.constant 5.000000e+00 : f32
    %266 = vector.broadcast %cst_53 : f32 to vector<24x1xf32>
    %267 = arith.cmpf ogt, %0, %266 : vector<24x1xf32>
    %268 = vector.shape_cast %267 : vector<24x1xi1> to vector<24x1xi1>
    %269 = vector.broadcast %268 : vector<24x1xi1> to vector<24x32xi1>
    %c5 = arith.constant 5 : index
    %c0_54 = arith.constant 0 : index
    %c0_55 = arith.constant 0 : index
    %270 = vector.load %arg0[%c5, %c0_54, %c0_55] : memref<8x24x128xf32, #tpu.memory_space<vmem>>, vector<1x24x128xf32>
    %271 = vector.shape_cast %270 : vector<1x24x128xf32> to vector<24x128xf32>
    %272 = arith.truncf %240 : vector<24x32xf32> to vector<24x32xbf16>
    %cst_56 = arith.constant dense<0.000000e+00> : vector<24x128xf32>
    %273 = tpu.matmul %272, %1, %cst_56 {dimension_numbers = #tpu.dot_dimension_numbers<[1], [0], [0], [1], [0, 0, 1, 1], [], []>} : vector<24x32xbf16>, vector<32x128xbf16>, vector<24x128xf32> -> vector<24x128xf32>
    %274 = arith.addf %271, %273 : vector<24x128xf32>
    %275 = vector.extract_strided_slice %274 {offsets = [0, 0], sizes = [24, 96], strides = [1, 1]} : vector<24x128xf32> to vector<24x96xf32>
    %276 = arith.negf %275 : vector<24x96xf32>
    %277 = math.exp %276 : vector<24x96xf32>
    %cst_57 = arith.constant 1.000000e+00 : f32
    %278 = vector.broadcast %cst_57 : f32 to vector<24x96xf32>
    %279 = arith.addf %278, %277 : vector<24x96xf32>
    %280 = arith.divf %278, %279 : vector<24x96xf32>
    %281 = vector.extract_strided_slice %280 {offsets = [0, 0], sizes = [24, 32], strides = [1, 1]} : vector<24x96xf32> to vector<24x32xf32>
    %282 = vector.extract_strided_slice %280 {offsets = [0, 32], sizes = [24, 32], strides = [1, 1]} : vector<24x96xf32> to vector<24x32xf32>
    %283 = vector.extract_strided_slice %280 {offsets = [0, 64], sizes = [24, 32], strides = [1, 1]} : vector<24x96xf32> to vector<24x32xf32>
    %284 = vector.extract_strided_slice %274 {offsets = [0, 96], sizes = [24, 32], strides = [1, 1]} : vector<24x128xf32> to vector<24x32xf32>
    %285 = math.tanh %284 : vector<24x32xf32>
    %286 = arith.mulf %282, %241 : vector<24x32xf32>
    %287 = arith.mulf %281, %285 : vector<24x32xf32>
    %288 = arith.addf %286, %287 : vector<24x32xf32>
    %289 = math.tanh %288 : vector<24x32xf32>
    %290 = arith.mulf %283, %289 : vector<24x32xf32>
    %291 = arith.select %269, %290, %240 : vector<24x32xi1>, vector<24x32xf32>
    %292 = arith.select %269, %288, %241 : vector<24x32xi1>, vector<24x32xf32>
    %293 = arith.truncf %291 : vector<24x32xf32> to vector<24x32xbf16>
    %cst_58 = arith.constant dense<0.000000e+00> : vector<24x128xf32>
    %294 = tpu.matmul %293, %2, %cst_58 {dimension_numbers = #tpu.dot_dimension_numbers<[1], [0], [0], [1], [0, 0, 1, 1], [], []>} : vector<24x32xbf16>, vector<32x128xbf16>, vector<24x128xf32> -> vector<24x128xf32>
    %295 = arith.truncf %264 : vector<24x32xf32> to vector<24x32xbf16>
    %cst_59 = arith.constant dense<0.000000e+00> : vector<24x128xf32>
    %296 = tpu.matmul %295, %3, %cst_59 {dimension_numbers = #tpu.dot_dimension_numbers<[1], [0], [0], [1], [0, 0, 1, 1], [], []>} : vector<24x32xbf16>, vector<32x128xbf16>, vector<24x128xf32> -> vector<24x128xf32>
    %297 = arith.addf %294, %296 : vector<24x128xf32>
    %298 = arith.addf %297, %6 : vector<24x128xf32>
    %299 = vector.extract_strided_slice %298 {offsets = [0, 0], sizes = [24, 96], strides = [1, 1]} : vector<24x128xf32> to vector<24x96xf32>
    %300 = arith.negf %299 : vector<24x96xf32>
    %301 = math.exp %300 : vector<24x96xf32>
    %cst_60 = arith.constant 1.000000e+00 : f32
    %302 = vector.broadcast %cst_60 : f32 to vector<24x96xf32>
    %303 = arith.addf %302, %301 : vector<24x96xf32>
    %304 = arith.divf %302, %303 : vector<24x96xf32>
    %305 = vector.extract_strided_slice %304 {offsets = [0, 0], sizes = [24, 32], strides = [1, 1]} : vector<24x96xf32> to vector<24x32xf32>
    %306 = vector.extract_strided_slice %304 {offsets = [0, 32], sizes = [24, 32], strides = [1, 1]} : vector<24x96xf32> to vector<24x32xf32>
    %307 = vector.extract_strided_slice %304 {offsets = [0, 64], sizes = [24, 32], strides = [1, 1]} : vector<24x96xf32> to vector<24x32xf32>
    %308 = vector.extract_strided_slice %298 {offsets = [0, 96], sizes = [24, 32], strides = [1, 1]} : vector<24x128xf32> to vector<24x32xf32>
    %309 = math.tanh %308 : vector<24x32xf32>
    %310 = arith.mulf %306, %265 : vector<24x32xf32>
    %311 = arith.mulf %305, %309 : vector<24x32xf32>
    %312 = arith.addf %310, %311 : vector<24x32xf32>
    %313 = math.tanh %312 : vector<24x32xf32>
    %314 = arith.mulf %307, %313 : vector<24x32xf32>
    %315 = arith.select %269, %314, %264 : vector<24x32xi1>, vector<24x32xf32>
    %316 = arith.select %269, %312, %265 : vector<24x32xi1>, vector<24x32xf32>
    %cst_61 = arith.constant 6.000000e+00 : f32
    %317 = vector.broadcast %cst_61 : f32 to vector<24x1xf32>
    %318 = arith.cmpf ogt, %0, %317 : vector<24x1xf32>
    %319 = vector.shape_cast %318 : vector<24x1xi1> to vector<24x1xi1>
    %320 = vector.broadcast %319 : vector<24x1xi1> to vector<24x32xi1>
    %c6 = arith.constant 6 : index
    %c0_62 = arith.constant 0 : index
    %c0_63 = arith.constant 0 : index
    %321 = vector.load %arg0[%c6, %c0_62, %c0_63] : memref<8x24x128xf32, #tpu.memory_space<vmem>>, vector<1x24x128xf32>
    %322 = vector.shape_cast %321 : vector<1x24x128xf32> to vector<24x128xf32>
    %323 = arith.truncf %291 : vector<24x32xf32> to vector<24x32xbf16>
    %cst_64 = arith.constant dense<0.000000e+00> : vector<24x128xf32>
    %324 = tpu.matmul %323, %1, %cst_64 {dimension_numbers = #tpu.dot_dimension_numbers<[1], [0], [0], [1], [0, 0, 1, 1], [], []>} : vector<24x32xbf16>, vector<32x128xbf16>, vector<24x128xf32> -> vector<24x128xf32>
    %325 = arith.addf %322, %324 : vector<24x128xf32>
    %326 = vector.extract_strided_slice %325 {offsets = [0, 0], sizes = [24, 96], strides = [1, 1]} : vector<24x128xf32> to vector<24x96xf32>
    %327 = arith.negf %326 : vector<24x96xf32>
    %328 = math.exp %327 : vector<24x96xf32>
    %cst_65 = arith.constant 1.000000e+00 : f32
    %329 = vector.broadcast %cst_65 : f32 to vector<24x96xf32>
    %330 = arith.addf %329, %328 : vector<24x96xf32>
    %331 = arith.divf %329, %330 : vector<24x96xf32>
    %332 = vector.extract_strided_slice %331 {offsets = [0, 0], sizes = [24, 32], strides = [1, 1]} : vector<24x96xf32> to vector<24x32xf32>
    %333 = vector.extract_strided_slice %331 {offsets = [0, 32], sizes = [24, 32], strides = [1, 1]} : vector<24x96xf32> to vector<24x32xf32>
    %334 = vector.extract_strided_slice %331 {offsets = [0, 64], sizes = [24, 32], strides = [1, 1]} : vector<24x96xf32> to vector<24x32xf32>
    %335 = vector.extract_strided_slice %325 {offsets = [0, 96], sizes = [24, 32], strides = [1, 1]} : vector<24x128xf32> to vector<24x32xf32>
    %336 = math.tanh %335 : vector<24x32xf32>
    %337 = arith.mulf %333, %292 : vector<24x32xf32>
    %338 = arith.mulf %332, %336 : vector<24x32xf32>
    %339 = arith.addf %337, %338 : vector<24x32xf32>
    %340 = math.tanh %339 : vector<24x32xf32>
    %341 = arith.mulf %334, %340 : vector<24x32xf32>
    %342 = arith.select %320, %341, %291 : vector<24x32xi1>, vector<24x32xf32>
    %343 = arith.select %320, %339, %292 : vector<24x32xi1>, vector<24x32xf32>
    %344 = arith.truncf %342 : vector<24x32xf32> to vector<24x32xbf16>
    %cst_66 = arith.constant dense<0.000000e+00> : vector<24x128xf32>
    %345 = tpu.matmul %344, %2, %cst_66 {dimension_numbers = #tpu.dot_dimension_numbers<[1], [0], [0], [1], [0, 0, 1, 1], [], []>} : vector<24x32xbf16>, vector<32x128xbf16>, vector<24x128xf32> -> vector<24x128xf32>
    %346 = arith.truncf %315 : vector<24x32xf32> to vector<24x32xbf16>
    %cst_67 = arith.constant dense<0.000000e+00> : vector<24x128xf32>
    %347 = tpu.matmul %346, %3, %cst_67 {dimension_numbers = #tpu.dot_dimension_numbers<[1], [0], [0], [1], [0, 0, 1, 1], [], []>} : vector<24x32xbf16>, vector<32x128xbf16>, vector<24x128xf32> -> vector<24x128xf32>
    %348 = arith.addf %345, %347 : vector<24x128xf32>
    %349 = arith.addf %348, %6 : vector<24x128xf32>
    %350 = vector.extract_strided_slice %349 {offsets = [0, 0], sizes = [24, 96], strides = [1, 1]} : vector<24x128xf32> to vector<24x96xf32>
    %351 = arith.negf %350 : vector<24x96xf32>
    %352 = math.exp %351 : vector<24x96xf32>
    %cst_68 = arith.constant 1.000000e+00 : f32
    %353 = vector.broadcast %cst_68 : f32 to vector<24x96xf32>
    %354 = arith.addf %353, %352 : vector<24x96xf32>
    %355 = arith.divf %353, %354 : vector<24x96xf32>
    %356 = vector.extract_strided_slice %355 {offsets = [0, 0], sizes = [24, 32], strides = [1, 1]} : vector<24x96xf32> to vector<24x32xf32>
    %357 = vector.extract_strided_slice %355 {offsets = [0, 32], sizes = [24, 32], strides = [1, 1]} : vector<24x96xf32> to vector<24x32xf32>
    %358 = vector.extract_strided_slice %355 {offsets = [0, 64], sizes = [24, 32], strides = [1, 1]} : vector<24x96xf32> to vector<24x32xf32>
    %359 = vector.extract_strided_slice %349 {offsets = [0, 96], sizes = [24, 32], strides = [1, 1]} : vector<24x128xf32> to vector<24x32xf32>
    %360 = math.tanh %359 : vector<24x32xf32>
    %361 = arith.mulf %357, %316 : vector<24x32xf32>
    %362 = arith.mulf %356, %360 : vector<24x32xf32>
    %363 = arith.addf %361, %362 : vector<24x32xf32>
    %364 = math.tanh %363 : vector<24x32xf32>
    %365 = arith.mulf %358, %364 : vector<24x32xf32>
    %366 = arith.select %320, %365, %315 : vector<24x32xi1>, vector<24x32xf32>
    %367 = arith.select %320, %363, %316 : vector<24x32xi1>, vector<24x32xf32>
    %cst_69 = arith.constant 7.000000e+00 : f32
    %368 = vector.broadcast %cst_69 : f32 to vector<24x1xf32>
    %369 = arith.cmpf ogt, %0, %368 : vector<24x1xf32>
    %370 = vector.shape_cast %369 : vector<24x1xi1> to vector<24x1xi1>
    %371 = vector.broadcast %370 : vector<24x1xi1> to vector<24x32xi1>
    %c7 = arith.constant 7 : index
    %c0_70 = arith.constant 0 : index
    %c0_71 = arith.constant 0 : index
    %372 = vector.load %arg0[%c7, %c0_70, %c0_71] : memref<8x24x128xf32, #tpu.memory_space<vmem>>, vector<1x24x128xf32>
    %373 = vector.shape_cast %372 : vector<1x24x128xf32> to vector<24x128xf32>
    %374 = arith.truncf %342 : vector<24x32xf32> to vector<24x32xbf16>
    %cst_72 = arith.constant dense<0.000000e+00> : vector<24x128xf32>
    %375 = tpu.matmul %374, %1, %cst_72 {dimension_numbers = #tpu.dot_dimension_numbers<[1], [0], [0], [1], [0, 0, 1, 1], [], []>} : vector<24x32xbf16>, vector<32x128xbf16>, vector<24x128xf32> -> vector<24x128xf32>
    %376 = arith.addf %373, %375 : vector<24x128xf32>
    %377 = vector.extract_strided_slice %376 {offsets = [0, 0], sizes = [24, 96], strides = [1, 1]} : vector<24x128xf32> to vector<24x96xf32>
    %378 = arith.negf %377 : vector<24x96xf32>
    %379 = math.exp %378 : vector<24x96xf32>
    %cst_73 = arith.constant 1.000000e+00 : f32
    %380 = vector.broadcast %cst_73 : f32 to vector<24x96xf32>
    %381 = arith.addf %380, %379 : vector<24x96xf32>
    %382 = arith.divf %380, %381 : vector<24x96xf32>
    %383 = vector.extract_strided_slice %382 {offsets = [0, 0], sizes = [24, 32], strides = [1, 1]} : vector<24x96xf32> to vector<24x32xf32>
    %384 = vector.extract_strided_slice %382 {offsets = [0, 32], sizes = [24, 32], strides = [1, 1]} : vector<24x96xf32> to vector<24x32xf32>
    %385 = vector.extract_strided_slice %382 {offsets = [0, 64], sizes = [24, 32], strides = [1, 1]} : vector<24x96xf32> to vector<24x32xf32>
    %386 = vector.extract_strided_slice %376 {offsets = [0, 96], sizes = [24, 32], strides = [1, 1]} : vector<24x128xf32> to vector<24x32xf32>
    %387 = math.tanh %386 : vector<24x32xf32>
    %388 = arith.mulf %384, %343 : vector<24x32xf32>
    %389 = arith.mulf %383, %387 : vector<24x32xf32>
    %390 = arith.addf %388, %389 : vector<24x32xf32>
    %391 = math.tanh %390 : vector<24x32xf32>
    %392 = arith.mulf %385, %391 : vector<24x32xf32>
    %393 = arith.select %371, %392, %342 : vector<24x32xi1>, vector<24x32xf32>
    %394 = arith.truncf %393 : vector<24x32xf32> to vector<24x32xbf16>
    %cst_74 = arith.constant dense<0.000000e+00> : vector<24x128xf32>
    %395 = tpu.matmul %394, %2, %cst_74 {dimension_numbers = #tpu.dot_dimension_numbers<[1], [0], [0], [1], [0, 0, 1, 1], [], []>} : vector<24x32xbf16>, vector<32x128xbf16>, vector<24x128xf32> -> vector<24x128xf32>
    %396 = arith.truncf %366 : vector<24x32xf32> to vector<24x32xbf16>
    %cst_75 = arith.constant dense<0.000000e+00> : vector<24x128xf32>
    %397 = tpu.matmul %396, %3, %cst_75 {dimension_numbers = #tpu.dot_dimension_numbers<[1], [0], [0], [1], [0, 0, 1, 1], [], []>} : vector<24x32xbf16>, vector<32x128xbf16>, vector<24x128xf32> -> vector<24x128xf32>
    %398 = arith.addf %395, %397 : vector<24x128xf32>
    %399 = arith.addf %398, %6 : vector<24x128xf32>
    %400 = vector.extract_strided_slice %399 {offsets = [0, 0], sizes = [24, 96], strides = [1, 1]} : vector<24x128xf32> to vector<24x96xf32>
    %401 = arith.negf %400 : vector<24x96xf32>
    %402 = math.exp %401 : vector<24x96xf32>
    %cst_76 = arith.constant 1.000000e+00 : f32
    %403 = vector.broadcast %cst_76 : f32 to vector<24x96xf32>
    %404 = arith.addf %403, %402 : vector<24x96xf32>
    %405 = arith.divf %403, %404 : vector<24x96xf32>
    %406 = vector.extract_strided_slice %405 {offsets = [0, 0], sizes = [24, 32], strides = [1, 1]} : vector<24x96xf32> to vector<24x32xf32>
    %407 = vector.extract_strided_slice %405 {offsets = [0, 32], sizes = [24, 32], strides = [1, 1]} : vector<24x96xf32> to vector<24x32xf32>
    %408 = vector.extract_strided_slice %405 {offsets = [0, 64], sizes = [24, 32], strides = [1, 1]} : vector<24x96xf32> to vector<24x32xf32>
    %409 = vector.extract_strided_slice %399 {offsets = [0, 96], sizes = [24, 32], strides = [1, 1]} : vector<24x128xf32> to vector<24x32xf32>
    %410 = math.tanh %409 : vector<24x32xf32>
    %411 = arith.mulf %407, %367 : vector<24x32xf32>
    %412 = arith.mulf %406, %410 : vector<24x32xf32>
    %413 = arith.addf %411, %412 : vector<24x32xf32>
    %414 = math.tanh %413 : vector<24x32xf32>
    %415 = arith.mulf %408, %414 : vector<24x32xf32>
    %416 = arith.select %371, %415, %366 : vector<24x32xi1>, vector<24x32xf32>
    %cst_77 = arith.constant 0.000000e+00 : f32
    %417 = vector.broadcast %cst_77 : f32 to vector<24x1xf32>
    %418 = arith.cmpf ogt, %0, %417 : vector<24x1xf32>
    %419 = arith.extui %418 : vector<24x1xi1> to vector<24x1xi32>
    %420 = arith.sitofp %419 : vector<24x1xi32> to vector<24x1xf32>
    %421 = vector.broadcast %420 : vector<24x1xf32> to vector<24x32xf32>
    %422 = arith.mulf %421, %416 : vector<24x32xf32>
    %cst_78 = arith.constant 0.000000e+00 : f32
    %423 = vector.broadcast %cst_78 : f32 to vector<8x32xf32>
    %cst_79 = arith.constant 0.000000e+00 : f32
    %424 = vector.broadcast %cst_79 : f32 to vector<1x1xf32>
    %425 = vector.extract_strided_slice %422 {offsets = [0, 0], sizes = [8, 32], strides = [1, 1]} : vector<24x32xf32> to vector<8x32xf32>
    %426 = arith.addf %423, %425 : vector<8x32xf32>
    %427 = vector.extract_strided_slice %420 {offsets = [0, 0], sizes = [8, 1], strides = [1, 1]} : vector<24x1xf32> to vector<8x1xf32>
    %cst_80 = arith.constant dense<0xFF800000> : vector<1xf32>
    %428 = vector.multi_reduction <maximumf>, %427, %cst_80 [0] : vector<8x1xf32> to vector<1xf32>
    %429 = vector.shape_cast %428 : vector<1xf32> to vector<1x1xf32>
    %430 = arith.addf %424, %429 : vector<1x1xf32>
    %431 = vector.extract_strided_slice %422 {offsets = [8, 0], sizes = [8, 32], strides = [1, 1]} : vector<24x32xf32> to vector<8x32xf32>
    %432 = arith.addf %426, %431 : vector<8x32xf32>
    %433 = vector.extract_strided_slice %420 {offsets = [8, 0], sizes = [8, 1], strides = [1, 1]} : vector<24x1xf32> to vector<8x1xf32>
    %cst_81 = arith.constant dense<0xFF800000> : vector<1xf32>
    %434 = vector.multi_reduction <maximumf>, %433, %cst_81 [0] : vector<8x1xf32> to vector<1xf32>
    %435 = vector.shape_cast %434 : vector<1xf32> to vector<1x1xf32>
    %436 = arith.addf %430, %435 : vector<1x1xf32>
    %437 = vector.extract_strided_slice %422 {offsets = [16, 0], sizes = [8, 32], strides = [1, 1]} : vector<24x32xf32> to vector<8x32xf32>
    %438 = arith.addf %432, %437 : vector<8x32xf32>
    %439 = vector.extract_strided_slice %420 {offsets = [16, 0], sizes = [8, 1], strides = [1, 1]} : vector<24x1xf32> to vector<8x1xf32>
    %cst_82 = arith.constant dense<0xFF800000> : vector<1xf32>
    %440 = vector.multi_reduction <maximumf>, %439, %cst_82 [0] : vector<8x1xf32> to vector<1xf32>
    %441 = vector.shape_cast %440 : vector<1xf32> to vector<1x1xf32>
    %442 = arith.addf %436, %441 : vector<1x1xf32>
    %cst_83 = arith.constant 1.000000e+00 : f32
    %443 = vector.broadcast %cst_83 : f32 to vector<1x1xf32>
    %444 = arith.maximumf %442, %443 : vector<1x1xf32>
    %cst_84 = arith.constant 1.000000e+00 : f32
    %445 = vector.broadcast %cst_84 : f32 to vector<1x1xf32>
    %446 = arith.divf %445, %444 : vector<1x1xf32>
    %447 = vector.broadcast %446 : vector<1x1xf32> to vector<8x32xf32>
    %448 = arith.mulf %438, %447 : vector<8x32xf32>
    %c0_85 = arith.constant 0 : index
    %c0_86 = arith.constant 0 : index
    %449 = vector.load %arg7[%c0_85, %c0_86] : memref<32x32xbf16, #tpu.memory_space<vmem>>, vector<32x32xbf16>
    %450 = arith.truncf %448 : vector<8x32xf32> to vector<8x32xbf16>
    %cst_87 = arith.constant dense<0.000000e+00> : vector<8x32xf32>
    %451 = tpu.matmul %450, %449, %cst_87 {dimension_numbers = #tpu.dot_dimension_numbers<[1], [0], [0], [1], [0, 0, 1, 1], [], []>} : vector<8x32xbf16>, vector<32x32xbf16>, vector<8x32xf32> -> vector<8x32xf32>
    %c0_88 = arith.constant 0 : index
    %c0_89 = arith.constant 0 : index
    %452 = vector.load %arg8[%c0_88, %c0_89] : memref<1x32xf32, #tpu.memory_space<vmem>>, vector<1x32xf32>
    %453 = vector.broadcast %452 : vector<1x32xf32> to vector<8x32xf32>
    %454 = arith.addf %451, %453 : vector<8x32xf32>
    %cst_90 = arith.constant 0.000000e+00 : f32
    %455 = vector.broadcast %cst_90 : f32 to vector<8x32xf32>
    %456 = arith.maximumf %454, %455 : vector<8x32xf32>
    %c0_91 = arith.constant 0 : index
    %c0_92 = arith.constant 0 : index
    %457 = vector.load %arg2[%c0_91, %c0_92] : memref<8x64xf32, #tpu.memory_space<vmem>>, vector<8x64xf32>
    %c0_93 = arith.constant 0 : index
    %c0_94 = arith.constant 0 : index
    %458 = vector.load %arg9[%c0_93, %c0_94] : memref<64x32xbf16, #tpu.memory_space<vmem>>, vector<64x32xbf16>
    %459 = arith.truncf %457 : vector<8x64xf32> to vector<8x64xbf16>
    %cst_95 = arith.constant dense<0.000000e+00> : vector<8x32xf32>
    %460 = tpu.matmul %459, %458, %cst_95 {dimension_numbers = #tpu.dot_dimension_numbers<[1], [0], [0], [1], [0, 0, 1, 1], [], []>} : vector<8x64xbf16>, vector<64x32xbf16>, vector<8x32xf32> -> vector<8x32xf32>
    %c0_96 = arith.constant 0 : index
    %c0_97 = arith.constant 0 : index
    %461 = vector.load %arg10[%c0_96, %c0_97] : memref<1x32xf32, #tpu.memory_space<vmem>>, vector<1x32xf32>
    %462 = vector.broadcast %461 : vector<1x32xf32> to vector<8x32xf32>
    %463 = arith.addf %460, %462 : vector<8x32xf32>
    %cst_98 = arith.constant 0.000000e+00 : f32
    %464 = vector.broadcast %cst_98 : f32 to vector<8x32xf32>
    %465 = arith.maximumf %463, %464 : vector<8x32xf32>
    %c0_99 = arith.constant 0 : index
    %c0_100 = arith.constant 0 : index
    %466 = vector.load %arg11[%c0_99, %c0_100] : memref<32x32xbf16, #tpu.memory_space<vmem>>, vector<32x32xbf16>
    %467 = arith.truncf %456 : vector<8x32xf32> to vector<8x32xbf16>
    %cst_101 = arith.constant dense<0.000000e+00> : vector<8x32xf32>
    %468 = tpu.matmul %467, %466, %cst_101 {dimension_numbers = #tpu.dot_dimension_numbers<[1], [0], [0], [1], [0, 0, 1, 1], [], []>} : vector<8x32xbf16>, vector<32x32xbf16>, vector<8x32xf32> -> vector<8x32xf32>
    %c0_102 = arith.constant 0 : index
    %c0_103 = arith.constant 0 : index
    %469 = vector.load %arg12[%c0_102, %c0_103] : memref<32x32xbf16, #tpu.memory_space<vmem>>, vector<32x32xbf16>
    %470 = arith.truncf %465 : vector<8x32xf32> to vector<8x32xbf16>
    %cst_104 = arith.constant dense<0.000000e+00> : vector<8x32xf32>
    %471 = tpu.matmul %470, %469, %cst_104 {dimension_numbers = #tpu.dot_dimension_numbers<[1], [0], [0], [1], [0, 0, 1, 1], [], []>} : vector<8x32xbf16>, vector<32x32xbf16>, vector<8x32xf32> -> vector<8x32xf32>
    %472 = arith.addf %468, %471 : vector<8x32xf32>
    %c0_105 = arith.constant 0 : index
    %c0_106 = arith.constant 0 : index
    %473 = vector.load %arg13[%c0_105, %c0_106] : memref<1x32xf32, #tpu.memory_space<vmem>>, vector<1x32xf32>
    %474 = vector.broadcast %473 : vector<1x32xf32> to vector<8x32xf32>
    %475 = arith.addf %472, %474 : vector<8x32xf32>
    %cst_107 = arith.constant 0.000000e+00 : f32
    %476 = vector.broadcast %cst_107 : f32 to vector<8x32xf32>
    %477 = arith.maximumf %475, %476 : vector<8x32xf32>
    %c0_108 = arith.constant 0 : index
    %c0_109 = arith.constant 0 : index
    %478 = vector.load %arg14[%c0_108, %c0_109] : memref<32x32xbf16, #tpu.memory_space<vmem>>, vector<32x32xbf16>
    %479 = arith.truncf %477 : vector<8x32xf32> to vector<8x32xbf16>
    %cst_110 = arith.constant dense<0.000000e+00> : vector<8x32xf32>
    %480 = tpu.matmul %479, %478, %cst_110 {dimension_numbers = #tpu.dot_dimension_numbers<[1], [0], [0], [1], [0, 0, 1, 1], [], []>} : vector<8x32xbf16>, vector<32x32xbf16>, vector<8x32xf32> -> vector<8x32xf32>
    %c0_111 = arith.constant 0 : index
    %c0_112 = arith.constant 0 : index
    %481 = vector.load %arg15[%c0_111, %c0_112] : memref<1x32xf32, #tpu.memory_space<vmem>>, vector<1x32xf32>
    %482 = vector.broadcast %481 : vector<1x32xf32> to vector<8x32xf32>
    %483 = arith.addf %480, %482 : vector<8x32xf32>
    %cst_113 = arith.constant 0.000000e+00 : f32
    %484 = vector.broadcast %cst_113 : f32 to vector<8x32xf32>
    %485 = arith.maximumf %483, %484 : vector<8x32xf32>
    %c0_114 = arith.constant 0 : index
    %c0_115 = arith.constant 0 : index
    %486 = vector.load %arg16[%c0_114, %c0_115] : memref<32x128xbf16, #tpu.memory_space<vmem>>, vector<32x128xbf16>
    %487 = arith.truncf %485 : vector<8x32xf32> to vector<8x32xbf16>
    %cst_116 = arith.constant dense<0.000000e+00> : vector<8x128xf32>
    %488 = tpu.matmul %487, %486, %cst_116 {dimension_numbers = #tpu.dot_dimension_numbers<[1], [0], [0], [1], [0, 0, 1, 1], [], []>} : vector<8x32xbf16>, vector<32x128xbf16>, vector<8x128xf32> -> vector<8x128xf32>
    %c0_117 = arith.constant 0 : index
    %c0_118 = arith.constant 0 : index
    %489 = vector.load %arg17[%c0_117, %c0_118] : memref<1x128xf32, #tpu.memory_space<vmem>>, vector<1x128xf32>
    %490 = vector.broadcast %489 : vector<1x128xf32> to vector<8x128xf32>
    %491 = arith.addf %488, %490 : vector<8x128xf32>
    %c0_119 = arith.constant 0 : index
    %c0_120 = arith.constant 0 : index
    %492 = vector.load %arg18[%c0_119, %c0_120] : memref<8x128xf32, #tpu.memory_space<vmem>>, vector<8x128xf32>
    tpu.vector_store %arg18[%c0_119, %c0_120], %491 {strides = array<i32>} : memref<8x128xf32, #tpu.memory_space<vmem>>, vector<8x128xf32>,
    return
  }
}

</mosaic_0001>

<bundles_post_ra>
// kernel: img_text2vec_forward.1
= control target key start
LH: loop header
LB: loop body
LE: loop exit
PB: predicated region body
PF: predicated region fallthrough
CT: control target
= control target key end

     0   :  { %v4379_v1 = vmov 0   ;;  %vm2971_vm0 = vcmask 7168   ;;  %v4380_v15 = vmov 0.0   ;;  %s4381_s30 = smov 32   ;;  %s4382_s28 = smov 64   ;;  %vm115_vm7 = vcmask 261120   ;;  %s6186_s3 = inlined_call_operand.vmem [shape: bf16[32,128], index: 3, kind: input, shape index: {}]   ;;  %s6187_s0 = inlined_call_operand.vmem [shape: f32[8,24,128], index: 0, kind: input, shape index: {}]   ;;  %s6188_s1 = inlined_call_operand.vmem [shape: f32[24,1], index: 1, kind: input, shape index: {}]   ;;  %s6189_s5 = inlined_call_operand.vmem [shape: bf16[32,128], index: 5, kind: input, shape index: {}]   ;;  %s6190_s4 = inlined_call_operand.vmem [shape: bf16[32,128], index: 4, kind: input, shape index: {}]   ;;  %s6191_s6 = inlined_call_operand.vmem [shape: f32[1,128], index: 6, kind: input, shape index: {}]   ;;  %s6192_s9 = inlined_call_operand.vmem [shape: bf16[64,32], index: 9, kind: input, shape index: {}]   ;;  %s6193_s7 = inlined_call_operand.vmem [shape: bf16[32,32], index: 7, kind: input, shape index: {}]   ;;  %s6194_s2 = inlined_call_operand.vmem [shape: f32[8,64], index: 2, kind: input, shape index: {}]   ;;  %s6195_s12 = inlined_call_operand.vmem [shape: bf16[32,32], index: 12, kind: input, shape index: {}]   ;;  %s6196_s11 = inlined_call_operand.vmem [shape: bf16[32,32], index: 11, kind: input, shape index: {}]   ;;  %s6197_s10 = inlined_call_operand.vmem [shape: f32[1,32], index: 10, kind: input, shape index: {}]   ;;  %s6198_s8 = inlined_call_operand.vmem [shape: f32[1,32], index: 8, kind: input, shape index: {}]   ;;  %s6199_s14 = inlined_call_operand.vmem [shape: bf16[32,32], index: 14, kind: input, shape index: {}]   ;;  %s6200_s16 = inlined_call_operand.vmem [shape: bf16[32,128], index: 16, kind: input, shape index: {}]   ;;  %s6201_s13 = inlined_call_operand.vmem [shape: f32[1,32], index: 13, kind: input, shape index: {}]   ;;  %s6202_s15 = inlined_call_operand.vmem [shape: f32[1,32], index: 15, kind: input, shape index: {}]   ;;  %s6203_s17 = inlined_call_operand.vmem [shape: f32[1,128], index: 17, kind: input, shape index: {}]   ;;  %s6204_s18 = inlined_call_operand.vmem [shape: f32[8,128], index: 18, kind: output, shape index: {}]  }
   0x1   :  { %6208 = sst [smem:[#allocation2_spill]] %s6186_s3  ;;  %3701 = vmatprep.mubr.bf16.mxu0 %v4379_v1  ;;  %3947 = vset.pattern.permute.xlu1 %v4379_v1 }
   0x2   :  { %6209 = sst [smem:[#allocation3_spill]] %s6187_s0  ;;  %s6211_s29 = sld [smem:[#allocation2_spill]]  ;;  %3946 = vset.pattern.permute.xlu0 %v4379_v1  ;;  %3709 = vmatprep.mubr.bf16.mxu1 %v4379_v1 }
   0x3   :  { %6210 = sst [smem:[#allocation4_spill]] %s6188_s1  ;;  %s6212_s20 = sld [smem:[#allocation3_spill]] }
   0x4   :  { %s6213_s26 = sld [smem:[#allocation4_spill]] }
   0x8   :  { %v4482_v0 = vld [vmem:[%s6211_s29] sm:$0xff]   ;;  %v4489_v2 = vld [vmem:[%s6211_s29 + $0x8] sm:$0xff]  }
   0x9   :  { %3697 = vmatprep.subr.bf16.mxu0 %v4482_v0  ;;  %v102_v3 = vld [vmem:[%s6212_s20 + $0x10] sm:$0xff]  ;;  %v100_v4 = vld [vmem:[%s6212_s20] sm:$0xff]  ;;  %v101_v8 = vld [vmem:[%s6212_s20 + $0x8] sm:$0xff] }
   0xa   :  { %3698 = vmatpush3.bf16.msra.mxu0 %v4482_v0  ;;  %v4510_v13 = vld [vmem:[%s6213_s26] sm:$0xff]  ;;  %v4516_v14 = vld [vmem:[%s6213_s26 + $0x8] sm:$0xff]  ;;  %v4550_v55 = vld [vmem:[%s6213_s26 + $0x10] sm:$0xff] }
   0xb   :  { %3699 = vmatprep.subr.bf16.mxu0 %v4489_v2  ;;  %vm82_vm1 = vcmp.gt.f32.partialorder %v4510_v13, 0.0  ;;  %vm83_vm2 = vcmp.gt.f32.partialorder %v4516_v14, 0.0  ;;  %vm84_vm3 = vcmp.gt.f32.partialorder %v4550_v55, 0.0  ;;  %vm463_vm8 = vcmp.gt.f32.partialorder %v4510_v13, 1.0 }
   0xc   :  { %v4521_v16 = vsel %vm82_vm1, 1.0, %v4380_v15  ;;  %v4529_v18 = vsel %vm83_vm2, 1.0, %v4380_v15  ;;  %v85_v56 = vsel %vm82_vm1, 1, %v4379_v1  ;;  %v86_v57 = vsel %vm83_vm2, 1, %v4379_v1 }
   0xd   :  { %v2972_v17 = vsel %vm2971_vm0, %v4521_v16, -inf  ;;  %v2981_v21 = vsel %vm2971_vm0, %v4529_v18, -inf  ;;  %v3948_v22 = vpack.i.bf16 %v4529_v18, %v4521_v16  ;;  %v87_v58 = vsel %vm84_vm3, 1, %v4379_v1 }
   0xe   :  { %3700 = vmatpush3.bf16.msra.mxu0 %v4489_v2  ;;  %v2973_v20 = vrot.slane %v2972_v17, 4  ;;  %v2982_v24 = vrot.slane %v2981_v21, 4  ;;  %vm465_vm9 = vcmp.gt.f32.partialorder %v4550_v55, 1.0  ;;  %vm464_vm10 = vcmp.gt.f32.partialorder %v4516_v14, 1.0 }
   0xf   :  { %vm819_vm14 = vcmp.gt.f32.partialorder %v4510_v13, 2.0  ;;  %vm820_vm15 = vcmp.gt.f32.partialorder %v4516_v14, 2.0  ;;  %vm821_vm1 = vcmp.gt.f32.partialorder %v4550_v55, 2.0 }
  0x10   :  { %v2974_v25 = vmax.f32 %v2972_v17, %v2973_v20  ;;  %v2983_v26 = vmax.f32 %v2981_v21, %v2982_v24 }
  0x11   :  { %3702 = vmatmul.mubr.bf16.vlgmr.msra.gmra.mrb[0].mxu0 %v4379_v1 }
  0x12   :  { %v2975_v27 = vrot.slane %v2974_v25, 2  ;;  %v2984_v29 = vrot.slane %v2983_v26, 2 }
  0x14   :  { %v2976_v30 = vmax.f32 %v2974_v25, %v2975_v27  ;;  %v2985_v31 = vmax.f32 %v2983_v26, %v2984_v29 }
  0x16   :  { %v2977_v32 = vrot.slane %v2976_v30, 1  ;;  %v2986_v33 = vrot.slane %v2985_v31, 1 }
  0x18   :  { %v2978_v34 = vmax.f32 %v2976_v30, %v2977_v32  ;;  %v2987_v35 = vmax.f32 %v2985_v31, %v2986_v33 }
  0x1a   :  { %v4538_v36 = vadd.f32 %v2987_v35, %v2978_v34 }
  0xe4   :  { %v3703_v5 = vpop.f32.mrb[0].mxu0 }
  0xe5   :  { %v169_v6 = vadd.f32 %v3703_v5, %v102_v3  ;;  %v153_v7 = vpop.f32.mrb[1].mxu0 }
  0xe6   :  { %v167_v9 = vadd.f32 %v153_v7, %v100_v4  ;;  %v3704_v10 = vpop.f32.mrb[2].mxu0  ;;  %v4578_v7 = vld [vmem:[%s6189_s5] sm:$0xff]  }
  0xe7   :  { %3973 = vtanh.f32 %v169_v6  ;;  %v156_v11 = vpop.f32.mrb[3].mxu0  ;;  %v3438_v38 = vmul.f32 -1.442695, %v169_v6  ;;  %3705 = vmatprep.subr.bf16.mxu1 %v4578_v7  ;;  %v4590_v10 = vld [vmem:[%s6190_s4] sm:$0xff]  }
  0xe8   :  { %3975 = vtanh.f32 %v167_v9  ;;  %v168_v12 = vadd.f32 %v156_v11, %v101_v8  ;;  %v3436_v37 = vmul.f32 -1.442695, %v167_v9  ;;  %v4583_v9 = vld [vmem:[%s6189_s5 + $0x8] sm:$0xff]   ;;  %3706 = vmatpush3.bf16.msra.mxu1 %v4578_v7  ;;  %3713 = vmatprep.subr.bf16.mxu0 %v4590_v10 }
  0xe9   :  { %v4596_v11 = vld [vmem:[%s6190_s4 + $0x8] sm:$0xff]   ;;  %3707 = vmatprep.subr.bf16.mxu1 %v4583_v9  ;;  %3714 = vmatpush3.bf16.msra.mxu0 %v4590_v10 }
  0xea   :  { %3977 = vtanh.f32 %v168_v12  ;;  %v3437_v39 = vmul.f32 -1.442695, %v168_v12  ;;  %3715 = vmatprep.subr.bf16.mxu0 %v4596_v11 }
  0xeb   :  { %3979 = vpow2.f32 %v3436_v37 }
  0xec   :  { %3981 = vpow2.f32 %v3438_v38  ;;  %3708 = vmatpush3.bf16.msra.mxu1 %v4583_v9 }
  0xed   :  { %3983 = vpow2.f32 %v3437_v39  ;;  %3721 = vmatprep.subr.bf16.mxu1 %v4482_v0  ;;  %3716 = vmatpush3.bf16.msra.mxu0 %v4596_v11 }
  0xee   :  { %3729 = vmatprep.subr.bf16.mxu0 %v4578_v7 }
  0xef   :  { %3710 = vmatmul.mubr.bf16.vlgmr.msra.gmra.mrb[0].mxu1 %v4379_v1 }
  0xf0   :  { %3722 = vmatpush3.bf16.msra.mxu1 %v4482_v0 }
  0xf1   :  { %v3974_v19 = vpop.eup %3973  ;;  %3723 = vmatprep.subr.bf16.mxu1 %v4489_v2 }
  0xf2   :  { %v3976_v23 = vpop.eup %3975  ;;  %201 = vrot.lane.b32.xlu1 %v3974_v19, %s4381_s30 }
  0xf3   :  { %197 = vrot.lane.b32.xlu0 %v3976_v23, %s4381_s30 }
  0xf4   :  { %v3978_v28 = vpop.eup %3977  ;;  %3724 = vmatpush3.bf16.msra.mxu1 %v4489_v2 }
  0xf5   :  { %v3980_v40 = vpop.eup %3979  ;;  %3737 = vmatprep.subr.bf16.mxu1 %v4590_v10 }
  0xf6   :  { %v3982_v41 = vpop.eup %3981  ;;  %v179_v42 = vadd.f32 1.0, %v3980_v40 }
  0xf7   :  { %199 = vrot.lane.b32.xlu0 %v3978_v28, %s4381_s30  ;;  %v3984_v43 = vpop.eup %3983  ;;  %v181_v44 = vadd.f32 1.0, %v3982_v41  ;;  %v3448_v41 = vld [vmem:[%s6212_s20 + $0x18] sm:$0xff] }
  0xf8   :  { %3985 = vrcp.f32 %v179_v42  ;;  %v180_v45 = vadd.f32 1.0, %v3984_v43 }
  0xf9   :  { %3987 = vrcp.f32 %v181_v44 }
  0xfa   :  { %3989 = vrcp.f32 %v180_v45 }
 0x102   :  { %v4540_v46 = vpop.eup %3985 }
 0x103   :  { %v4543_v50 = vpop.eup %3987  ;;  %v191_v59 = vmul.f32 0.0, %v4540_v46 }
 0x104   :  { %v3990_v51 = vpop.eup %3989  ;;  %v193_v63 = vmul.f32 0.0, %v4543_v50 }
 0x105   :  { %v192_v62 = vmul.f32 0.0, %v3990_v51 }
 0x164   :  { %v202_v49 = vpop.permute.xlu1 %201 }
 0x165   :  { %v198_v47 = vpop.permute.xlu0 %197  ;;  %v208_v53 = vmul.f32 %v4543_v50, %v202_v49 }
 0x166   :  { %v206_v48 = vmul.f32 %v4540_v46, %v198_v47  ;;  %v4660_v47 = vld [vmem:[%s6191_s6] ss:$0 sm:$0xff] }
 0x168   :  { %212 = vrot.lane.b32.xlu1 %v206_v48, %s4381_s30 }
 0x169   :  { %v200_v52 = vpop.permute.xlu0 %199 }
 0x16a   :  { %v207_v54 = vmul.f32 %v3990_v51, %v200_v52 }
 0x16c   :  { %214 = vrot.lane.b32.xlu0 %v207_v54, %s4381_s30  ;;  %216 = vrot.lane.b32.xlu1 %v208_v53, %s4381_s30 }
 0x170   :  { %89 = vperm.xlu0 %3946, %v85_v56   ;;  %92 = vperm.xlu1 %3947, %v86_v57   ;;  %v3449_v57 = vld [vmem:[%s6212_s20 + $0x20] sm:$0xff] }
 0x174   :  { %95 = vperm.xlu1 %3947, %v87_v58  }
 0x1c2   :  { %v3711_v34 = vpop.f32.mrb[0].mxu1 }
 0x1c3   :  { %v296_v35 = vpop.f32.mrb[1].mxu1 }
 0x1c4   :  { %v3712_v37 = vpop.f32.mrb[2].mxu1 }
 0x1c5   :  { %v299_v38 = vpop.f32.mrb[3].mxu1 }
 0x1da   :  { %v213_v60 = vpop.permute.xlu1 %212 }
 0x1db   :  { %v4565_v61 = vadd.f32 %v213_v60, %v191_v59 }
 0x1dd   :  { %3991 = vtanh.f32 %v4565_v61 }
 0x1de   :  { %v215_v3 = vpop.permute.xlu0 %214  ;;  %v217_v4 = vpop.permute.xlu1 %216 }
 0x1df   :  { %v4569_v5 = vadd.f32 %v215_v3, %v192_v62  ;;  %v4571_v6 = vadd.f32 %v217_v4, %v193_v63  ;;  %v3450_v63 = vld [vmem:[%s6212_s20 + $0x28] sm:$0xff] }
 0x1e1   :  { %3993 = vtanh.f32 %v4569_v5 }
 0x1e2   :  { %3995 = vtanh.f32 %v4571_v6 }
 0x1e7   :  { %v3992_v8 = vpop.eup %3991 }
 0x1e8   :  { %230 = vrot.lane.b32.xlu0 %v3992_v8, %s4381_s30 }
 0x1eb   :  { %v3994_v12 = vpop.eup %3993 }
 0x1ec   :  { %v3996_v17 = vpop.eup %3995  ;;  %232 = vrot.lane.b32.xlu1 %v3994_v12, %s4381_s30 }
 0x1ed   :  { %234 = vrot.lane.b32.xlu0 %v3996_v17, %s4381_s30 }
 0x1ef   :  { %v4613_v19 = vpop.permute.xlu1 %92  ;;  %v4615_v20 = vpop.permute.xlu0 %89 }
 0x1f0   :  { %vm97_vm4 = vcmp.eq.s32.totalorder %v4615_v20, 1  ;;  %vm98_vm5 = vcmp.eq.s32.totalorder %v4613_v19, 1 }
 0x1f3   :  { %v4617_v21 = vpop.permute.xlu1 %95 }
 0x1f4   :  { %vm99_vm6 = vcmp.eq.s32.totalorder %v4617_v21, 1 }
 0x25a   :  { %v231_v23 = vpop.permute.xlu0 %230 }
 0x25b   :  { %v239_v24 = vmul.f32 %v4540_v46, %v231_v23 }
 0x25d   :  { %v4626_v29 = vsel %vm97_vm4, %v239_v24, 0.0 }
 0x25e   :  { %v233_v25 = vpop.permute.xlu1 %232 }
 0x25f   :  { %v240_v26 = vmul.f32 %v3990_v51, %v233_v25  ;;  %v235_v27 = vpop.permute.xlu0 %234 }
 0x260   :  { %v241_v28 = vmul.f32 %v4543_v50, %v235_v27 }
 0x261   :  { %v4630_v30 = vsel %vm98_vm5, %v240_v26, 0.0 }
 0x262   :  { %v4634_v31 = vsel %vm99_vm6, %v241_v28, 0.0  ;;  %v248_v32 = vpack.c.bf16 %v4630_v30, %v4626_v29 }
 0x263   :  { %v249_v33 = vpack.c.bf16 %v4634_v31, %v4634_v31 }
 0x264   :  { %312 = vrot.lane.b32.xlu1 %v248_v32, %s4382_s28 }
 0x265   :  { %314 = vrot.lane.b32.xlu0 %v249_v33, %s4382_s28 }
 0x2d6   :  { %v313_v39 = vpop.permute.xlu1 %312 }
 0x2d7   :  { %v315_v40 = vpop.permute.xlu0 %314  ;;  %3717 = vmatprep.mubr.msk.bf16.mxu0 %vm115_vm7, %v313_v39  ;;  %3725 = vmatprep.mubr.msk.bf16.mxu1 %vm115_vm7, %v313_v39 }
 0x2d8   :  { %3718 = vmatmul.mubr.msk.bf16.vlgmr.msra.gmra.mrb[4].mxu0 %vm115_vm7, %v315_v40  ;;  %3726 = vmatmul.mubr.msk.bf16.vlgmr.msra.gmra.mrb[4].mxu1 %vm115_vm7, %v315_v40 }
 0x2d9   :  { %3730 = vmatpush3.bf16.msra.mxu0 %v4578_v7  ;;  %3738 = vmatpush3.bf16.msra.mxu1 %v4590_v10 }
 0x2da   :  { %3731 = vmatprep.subr.bf16.mxu0 %v4583_v9  ;;  %3739 = vmatprep.subr.bf16.mxu1 %v4596_v11 }
 0x2dd   :  { %3732 = vmatpush3.bf16.msra.mxu0 %v4583_v9  ;;  %3740 = vmatpush3.bf16.msra.mxu1 %v4596_v11 }
 0x2de   :  { %3745 = vmatprep.subr.bf16.mxu0 %v4482_v0  ;;  %3753 = vmatprep.subr.bf16.mxu1 %v4578_v7 }
 0x3ab   :  { %v3719_v42 = vpop.f32.mrb[4].mxu0  ;;  %v3727_v43 = vpop.f32.mrb[4].mxu1 }
 0x3ac   :  { %v377_v44 = vadd.f32 %v3719_v42, %v3711_v34  ;;  %v368_v45 = vpop.f32.mrb[5].mxu0  ;;  %v519_v46 = vpop.f32.mrb[5].mxu1  ;;  %v535_v3 = vadd.f32 %v3727_v43, %v3450_v63 }
 0x3ad   :  { %v369_v48 = vadd.f32 %v368_v45, %v296_v35  ;;  %v533_v49 = vadd.f32 %v3448_v41, %v519_v46  ;;  %v3720_v50 = vpop.f32.mrb[6].mxu0  ;;  %v3728_v51 = vpop.f32.mrb[6].mxu1 }
 0x3ae   :  { %v371_v52 = vpop.f32.mrb[7].mxu0  ;;  %v522_v53 = vpop.f32.mrb[7].mxu1  ;;  %v384_v58 = vadd.f32 %v4660_v47, %v377_v44  ;;  %v3455_v34 = vmul.f32 -1.442695, %v535_v3 }
 0x3af   :  { %3997 = vtanh.f32 %v533_v49  ;;  %v372_v54 = vadd.f32 %v371_v52, %v299_v38  ;;  %v382_v56 = vadd.f32 %v4660_v47, %v369_v48  ;;  %v534_v59 = vadd.f32 %v3449_v57, %v522_v53 }
 0x3b0   :  { %v3453_v24 = vmul.f32 -1.442695, %v533_v49  ;;  %v3447_v26 = vmul.f32 -1.442695, %v384_v58 }
 0x3b1   :  { %3999 = vtanh.f32 %v382_v56  ;;  %v383_v62 = vadd.f32 %v4660_v47, %v372_v54  ;;  %v3445_v25 = vmul.f32 -1.442695, %v382_v56  ;;  %v3454_v27 = vmul.f32 -1.442695, %v534_v59 }
 0x3b2   :  { %4001 = vtanh.f32 %v384_v58 }
 0x3b3   :  { %4003 = vtanh.f32 %v534_v59  ;;  %v3446_v32 = vmul.f32 -1.442695, %v383_v62 }
 0x3b4   :  { %4005 = vtanh.f32 %v383_v62 }
 0x3b5   :  { %4007 = vtanh.f32 %v535_v3 }
 0x3b6   :  { %4009 = vpow2.f32 %v3453_v24  ;;  %v4710_v24 = vsel %vm97_vm4, %v4565_v61, 0.0 }
 0x3b7   :  { %4011 = vpow2.f32 %v3445_v25 }
 0x3b8   :  { %4013 = vpow2.f32 %v3447_v26 }
 0x3b9   :  { %v3998_v60 = vpop.eup %3997  ;;  %4015 = vpow2.f32 %v3454_v27 }
 0x3ba   :  { %563 = vrot.lane.b32.xlu1 %v3998_v60, %s4381_s30  ;;  %4017 = vpow2.f32 %v3446_v32  ;;  %v466_v60 = vsel %vm463_vm8, 1, %v4379_v1 }
 0x3bb   :  { %v4000_v4 = vpop.eup %3999 }
 0x3bc   :  { %v4002_v8 = vpop.eup %4001 }
 0x3bd   :  { %v4004_v12 = vpop.eup %4003 }
 0x3be   :  { %412 = vrot.lane.b32.xlu1 %v4000_v4, %s4381_s30  ;;  %565 = vrot.lane.b32.xlu0 %v4004_v12, %s4381_s30  ;;  %v4006_v17 = vpop.eup %4005  ;;  %v468_v4 = vsel %vm465_vm9, 1, %v4379_v1 }
 0x3bf   :  { %v4008_v23 = vpop.eup %4007 }
 0x3c0   :  { %v4010_v28 = vpop.eup %4009 }
 0x3c1   :  { %v545_v33 = vadd.f32 1.0, %v4010_v28  ;;  %v4012_v35 = vpop.eup %4011 }
 0x3c2   :  { %416 = vrot.lane.b32.xlu1 %v4002_v8, %s4381_s30  ;;  %414 = vrot.lane.b32.xlu0 %v4006_v17, %s4381_s30  ;;  %v394_v37 = vadd.f32 1.0, %v4012_v35  ;;  %v4014_v38 = vpop.eup %4013 }
 0x3c3   :  { %4019 = vrcp.f32 %v545_v33  ;;  %v4016_v39 = vpop.eup %4015  ;;  %v396_v40 = vadd.f32 1.0, %v4014_v38 }
 0x3c4   :  { %4021 = vpow2.f32 %v3455_v34  ;;  %v546_v41 = vadd.f32 1.0, %v4016_v39  ;;  %v4018_v42 = vpop.eup %4017  ;;  %v4723_v34 = vsel %vm98_vm5, %v4569_v5, 0.0 }
 0x3c5   :  { %4023 = vrcp.f32 %v394_v37  ;;  %v395_v44 = vadd.f32 1.0, %v4018_v42 }
 0x3c6   :  { %567 = vrot.lane.b32.xlu0 %v4008_v23, %s4381_s30  ;;  %4025 = vrcp.f32 %v396_v40  ;;  %v467_v23 = vsel %vm464_vm10, 1, %v4379_v1 }
 0x3c7   :  { %4027 = vrcp.f32 %v546_v41 }
 0x3c8   :  { %4029 = vrcp.f32 %v395_v44 }
 0x3cd   :  { %v4677_v43 = vpop.eup %4019 }
 0x3ce   :  { %v4022_v46 = vpop.eup %4021  ;;  %v557_v25 = vmul.f32 %v4677_v43, %v4710_v24 }
 0x3cf   :  { %v547_v49 = vadd.f32 1.0, %v4022_v46  ;;  %v4681_v50 = vpop.eup %4023 }
 0x3d0   :  { %v4685_v53 = vpop.eup %4025  ;;  %v406_v28 = vmul.f32 0.0, %v4681_v50 }
 0x3d1   :  { %4031 = vrcp.f32 %v547_v49  ;;  %v4687_v56 = vpop.eup %4027  ;;  %v408_v61 = vmul.f32 0.0, %v4685_v53 }
 0x3d2   :  { %v4695_v62 = vpop.eup %4029  ;;  %v558_v35 = vmul.f32 %v4687_v56, %v4723_v34 }
 0x3d3   :  { %v407_v5 = vmul.f32 0.0, %v4695_v62 }
 0x3db   :  { %v4701_v8 = vpop.eup %4031 }
 0x42c   :  { %v564_v45 = vpop.permute.xlu1 %563 }
 0x42d   :  { %v572_v48 = vmul.f32 %v4677_v43, %v564_v45  ;;  %v4742_v45 = vsel %vm99_vm6, %v4571_v6, 0.0 }
 0x42e   :  { %v559_v46 = vmul.f32 %v4701_v8, %v4742_v45 }
 0x42f   :  { %578 = vrot.lane.b32.xlu1 %v572_v48, %s4381_s30 }
 0x430   :  { %v413_v51 = vpop.permute.xlu1 %412  ;;  %v566_v57 = vpop.permute.xlu0 %565 }
 0x431   :  { %v421_v52 = vmul.f32 %v4681_v50, %v413_v51  ;;  %v573_v59 = vmul.f32 %v4687_v56, %v566_v57 }
 0x433   :  { %427 = vrot.lane.b32.xlu1 %v421_v52, %s4381_s30  ;;  %580 = vrot.lane.b32.xlu0 %v573_v59, %s4381_s30 }
 0x434   :  { %v417_v54 = vpop.permute.xlu1 %416  ;;  %v415_v63 = vpop.permute.xlu0 %414 }
 0x435   :  { %v423_v58 = vmul.f32 %v4685_v53, %v417_v54  ;;  %v422_v3 = vmul.f32 %v4695_v62, %v415_v63 }
 0x437   :  { %431 = vrot.lane.b32.xlu1 %v423_v58, %s4381_s30  ;;  %429 = vrot.lane.b32.xlu0 %v422_v3, %s4381_s30 }
 0x438   :  { %v568_v12 = vpop.permute.xlu0 %567 }
 0x439   :  { %v574_v17 = vmul.f32 %v4701_v8, %v568_v12 }
 0x43b   :  { %470 = vperm.xlu1 %3947, %v466_v60   ;;  %582 = vrot.lane.b32.xlu0 %v574_v17, %s4381_s30 }
 0x43f   :  { %476 = vperm.xlu1 %3947, %v468_v4   ;;  %473 = vperm.xlu0 %3946, %v467_v23  }
 0x4a1   :  { %v579_v26 = vpop.permute.xlu1 %578 }
 0x4a2   :  { %v4714_v27 = vadd.f32 %v579_v26, %v557_v25 }
 0x4a4   :  { %4033 = vtanh.f32 %v4714_v27 }
 0x4a5   :  { %v428_v32 = vpop.permute.xlu1 %427  ;;  %v581_v38 = vpop.permute.xlu0 %580 }
 0x4a6   :  { %v4718_v33 = vadd.f32 %v428_v32, %v406_v28  ;;  %v4731_v40 = vadd.f32 %v581_v38, %v558_v35 }
 0x4a8   :  { %4035 = vtanh.f32 %v4718_v33 }
 0x4a9   :  { %v432_v37 = vpop.permute.xlu1 %431  ;;  %v430_v42 = vpop.permute.xlu0 %429 }
 0x4aa   :  { %v4729_v39 = vadd.f32 %v432_v37, %v408_v61  ;;  %v4737_v44 = vadd.f32 %v430_v42, %v407_v5 }
 0x4ac   :  { %4037 = vtanh.f32 %v4729_v39  ;;  %v4876_v13 = vsel %vm98_vm5, %v4737_v44, 0.0 }
 0x4ad   :  { %4039 = vtanh.f32 %v4731_v40  ;;  %v583_v49 = vpop.permute.xlu0 %582 }
 0x4ae   :  { %v4034_v41 = vpop.eup %4033  ;;  %4041 = vtanh.f32 %v4737_v44  ;;  %v4747_v51 = vadd.f32 %v583_v49, %v559_v46 }
 0x4af   :  { %596 = vrot.lane.b32.xlu0 %v4034_v41, %s4381_s30 }
 0x4b0   :  { %4043 = vtanh.f32 %v4747_v51 }
 0x4b2   :  { %v4036_v48 = vpop.eup %4035 }
 0x4b3   :  { %445 = vrot.lane.b32.xlu0 %v4036_v48, %s4381_s30 }
 0x4b6   :  { %v4038_v52 = vpop.eup %4037 }
 0x4b7   :  { %v4040_v54 = vpop.eup %4039  ;;  %449 = vrot.lane.b32.xlu0 %v4038_v52, %s4381_s30 }
 0x4b8   :  { %598 = vrot.lane.b32.xlu1 %v4040_v54, %s4381_s30  ;;  %v4042_v6 = vpop.eup %4041 }
 0x4ba   :  { %v4044_v57 = vpop.eup %4043  ;;  %v4757_v59 = vpop.permute.xlu1 %470 }
 0x4bb   :  { %vm478_vm11 = vcmp.eq.s32.totalorder %v4757_v59, 1 }
 0x4bc   :  { %447 = vrot.lane.b32.xlu1 %v4042_v6, %s4381_s30 }
 0x4be   :  { %v4755_v58 = vpop.permute.xlu0 %473  ;;  %v4759_v63 = vpop.permute.xlu1 %476 }
 0x4bf   :  { %vm479_vm12 = vcmp.eq.s32.totalorder %v4755_v58, 1  ;;  %vm480_vm13 = vcmp.eq.s32.totalorder %v4759_v63, 1 }
 0x4c0   :  { %600 = vrot.lane.b32.xlu1 %v4044_v57, %s4381_s30  ;;  %v4906_v20 = vsel %vm479_vm12, %v4731_v40, %v4723_v34  ;;  %v4927_v34 = vsel %vm480_vm13, %v4747_v51, %v4742_v45  ;;  %v824_v45 = vsel %vm821_vm1, 1, %v4379_v1 }
 0x521   :  { %v597_v60 = vpop.permute.xlu0 %596 }
 0x522   :  { %v605_v4 = vmul.f32 %v4677_v43, %v597_v60 }
 0x524   :  { %v4769_v26 = vsel %vm478_vm11, %v605_v4, %v4626_v29 }
 0x525   :  { %v446_v3 = vpop.permute.xlu0 %445 }
 0x526   :  { %v454_v25 = vmul.f32 %v4681_v50, %v446_v3 }
 0x528   :  { %v4783_v50 = vsel %vm97_vm4, %v454_v25, 0.0 }
 0x529   :  { %v450_v23 = vpop.permute.xlu0 %449 }
 0x52a   :  { %v599_v12 = vpop.permute.xlu1 %598  ;;  %v456_v61 = vmul.f32 %v4685_v53, %v450_v23  ;;  %v3463_v23 = vld [vmem:[%s6212_s20 + $0x30] sm:$0xff] }
 0x52b   :  { %v606_v17 = vmul.f32 %v4687_v56, %v599_v12 }
 0x52c   :  { %v4793_v37 = vsel %vm99_vm6, %v456_v61, 0.0 }
 0x52d   :  { %v4774_v28 = vsel %vm479_vm12, %v606_v17, %v4630_v30  ;;  %v617_v41 = vpack.c.bf16 %v4793_v37, %v4793_v37 }
 0x52e   :  { %v448_v43 = vpop.permute.xlu1 %447  ;;  %v614_v56 = vpack.c.bf16 %v4774_v28, %v4769_v26 }
 0x52f   :  { %v455_v32 = vmul.f32 %v4695_v62, %v448_v43 }
 0x530   :  { %680 = vrot.lane.b32.xlu1 %v614_v56, %s4382_s28  ;;  %v3464_v56 = vld [vmem:[%s6212_s20 + $0x38] sm:$0xff] }
 0x531   :  { %v4787_v29 = vsel %vm98_vm5, %v455_v32, 0.0  ;;  %v3465_v32 = vld [vmem:[%s6212_s20 + $0x40] sm:$0xff] }
 0x532   :  { %v601_v30 = vpop.permute.xlu1 %600  ;;  %v616_v35 = vpack.c.bf16 %v4787_v29, %v4783_v50 }
 0x533   :  { %v607_v53 = vmul.f32 %v4701_v8, %v601_v30 }
 0x534   :  { %620 = vrot.lane.b32.xlu0 %v616_v35, %s4382_s28 }
 0x535   :  { %v4801_v62 = vsel %vm480_vm13, %v607_v53, %v4634_v31 }
 0x536   :  { %v615_v38 = vpack.c.bf16 %v4801_v62, %v4801_v62 }
 0x538   :  { %682 = vrot.lane.b32.xlu1 %v615_v38, %s4382_s28  ;;  %622 = vrot.lane.b32.xlu0 %v617_v41, %s4382_s28 }
 0x5a2   :  { %v681_v8 = vpop.permute.xlu1 %680 }
 0x5a3   :  { %3741 = vmatprep.mubr.msk.bf16.mxu1 %vm115_vm7, %v681_v8 }
 0x5a6   :  { %v621_v5 = vpop.permute.xlu0 %620 }
 0x5a7   :  { %3733 = vmatprep.mubr.msk.bf16.mxu0 %vm115_vm7, %v621_v5 }
 0x5aa   :  { %v683_v42 = vpop.permute.xlu1 %682  ;;  %v623_v46 = vpop.permute.xlu0 %622 }
 0x5ab   :  { %3734 = vmatmul.mubr.msk.bf16.vlgmr.msra.gmra.mrb[8].mxu0 %vm115_vm7, %v623_v46  ;;  %3742 = vmatmul.mubr.msk.bf16.vlgmr.msra.gmra.mrb[8].mxu1 %vm115_vm7, %v683_v42 }
 0x5ac   :  { %3746 = vmatpush3.bf16.msra.mxu0 %v4482_v0  ;;  %3749 = vmatprep.mubr.msk.bf16.mxu0 %vm115_vm7, %v681_v8 }
 0x5ad   :  { %3747 = vmatprep.subr.bf16.mxu0 %v4489_v2  ;;  %3754 = vmatpush3.bf16.msra.mxu1 %v4578_v7 }
 0x5ae   :  { %3755 = vmatprep.subr.bf16.mxu1 %v4583_v9 }
 0x5b0   :  { %3748 = vmatpush3.bf16.msra.mxu0 %v4489_v2 }
 0x5b1   :  { %3756 = vmatpush3.bf16.msra.mxu1 %v4583_v9  ;;  %3761 = vmatprep.subr.bf16.mxu0 %v4590_v10 }
 0x5b2   :  { %3769 = vmatprep.subr.bf16.mxu1 %v4482_v0 }
 0x5b3   :  { %3750 = vmatmul.mubr.msk.bf16.vlgmr.msra.gmra.mrb[12].mxu0 %vm115_vm7, %v683_v42 }
 0x5b4   :  { %3762 = vmatpush3.bf16.msra.mxu0 %v4590_v10 }
 0x5b5   :  { %3763 = vmatprep.subr.bf16.mxu0 %v4596_v11 }
 0x5b8   :  { %3764 = vmatpush3.bf16.msra.mxu0 %v4596_v11 }
 0x5b9   :  { %3777 = vmatprep.subr.bf16.mxu0 %v4578_v7 }
 0x67e   :  { %v3735_v31 = vpop.f32.mrb[8].mxu0  ;;  %v3743_v48 = vpop.f32.mrb[8].mxu1 }
 0x67f   :  { %v733_v49 = vadd.f32 %v3743_v48, %v3735_v31  ;;  %v664_v2 = vpop.f32.mrb[9].mxu0  ;;  %v724_v52 = vpop.f32.mrb[9].mxu1 }
 0x680   :  { %v725_v54 = vadd.f32 %v724_v52, %v664_v2  ;;  %v3736_v6 = vpop.f32.mrb[10].mxu0  ;;  %v3744_v57 = vpop.f32.mrb[10].mxu1 }
 0x681   :  { %v667_v60 = vpop.f32.mrb[11].mxu0  ;;  %v727_v0 = vpop.f32.mrb[11].mxu1  ;;  %v740_v12 = vadd.f32 %v4660_v47, %v733_v49 }
 0x682   :  { %v738_v3 = vadd.f32 %v4660_v47, %v725_v54  ;;  %v728_v4 = vadd.f32 %v727_v0, %v667_v60 }
 0x683   :  { %v3462_v2 = vmul.f32 -1.442695, %v740_v12 }
 0x684   :  { %4045 = vtanh.f32 %v738_v3  ;;  %v739_v17 = vadd.f32 %v4660_v47, %v728_v4  ;;  %v3460_v48 = vmul.f32 -1.442695, %v738_v3 }
 0x686   :  { %v3751_v25 = vpop.f32.mrb[12].mxu0  ;;  %4047 = vtanh.f32 %v739_v17  ;;  %v3461_v49 = vmul.f32 -1.442695, %v739_v17 }
 0x687   :  { %v875_v43 = vpop.f32.mrb[13].mxu0  ;;  %4049 = vtanh.f32 %v740_v12  ;;  %v891_v38 = vadd.f32 %v3751_v25, %v3465_v32 }
 0x688   :  { %v889_v61 = vadd.f32 %v3463_v23, %v875_v43  ;;  %v3752_v30 = vpop.f32.mrb[14].mxu0 }
 0x689   :  { %v878_v35 = vpop.f32.mrb[15].mxu0  ;;  %v3470_v6 = vmul.f32 -1.442695, %v891_v38 }
 0x68a   :  { %4051 = vtanh.f32 %v889_v61  ;;  %v890_v53 = vadd.f32 %v3464_v56, %v878_v35  ;;  %v3468_v52 = vmul.f32 -1.442695, %v889_v61 }
 0x68c   :  { %4053 = vtanh.f32 %v890_v53  ;;  %v3469_v54 = vmul.f32 -1.442695, %v890_v53 }
 0x68d   :  { %4055 = vtanh.f32 %v891_v38 }
 0x68e   :  { %v4046_v41 = vpop.eup %4045  ;;  %4057 = vpow2.f32 %v3460_v48 }
 0x68f   :  { %768 = vrot.lane.b32.xlu0 %v4046_v41, %s4381_s30  ;;  %4059 = vpow2.f32 %v3461_v49 }
 0x690   :  { %v4048_v8 = vpop.eup %4047  ;;  %4061 = vpow2.f32 %v3462_v2 }
 0x691   :  { %v4050_v5 = vpop.eup %4049  ;;  %770 = vrot.lane.b32.xlu1 %v4048_v8, %s4381_s30  ;;  %4063 = vpow2.f32 %v3468_v52 }
 0x692   :  { %4065 = vpow2.f32 %v3469_v54 }
 0x693   :  { %772 = vrot.lane.b32.xlu0 %v4050_v5, %s4381_s30  ;;  %4067 = vpow2.f32 %v3470_v6 }
 0x694   :  { %v4052_v42 = vpop.eup %4051 }
 0x695   :  { %919 = vrot.lane.b32.xlu1 %v4052_v42, %s4381_s30 }
 0x696   :  { %v4054_v46 = vpop.eup %4053 }
 0x697   :  { %921 = vrot.lane.b32.xlu0 %v4054_v46, %s4381_s30  ;;  %v4056_v31 = vpop.eup %4055 }
 0x698   :  { %v4058_v57 = vpop.eup %4057 }
 0x699   :  { %923 = vrot.lane.b32.xlu1 %v4056_v31, %s4381_s30  ;;  %v4060_v60 = vpop.eup %4059  ;;  %v750_v0 = vadd.f32 1.0, %v4058_v57 }
 0x69a   :  { %v4062_v4 = vpop.eup %4061  ;;  %v751_v23 = vadd.f32 1.0, %v4060_v60  ;;  %v822_v60 = vsel %vm819_vm14, 1, %v4379_v1 }
 0x69b   :  { %v4064_v25 = vpop.eup %4063  ;;  %v752_v43 = vadd.f32 1.0, %v4062_v4  ;;  %4069 = vrcp.f32 %v750_v0  ;;  %v823_v0 = vsel %vm820_vm15, 1, %v4379_v1 }
 0x69c   :  { %v4066_v3 = vpop.eup %4065  ;;  %4071 = vrcp.f32 %v751_v23  ;;  %v901_v12 = vadd.f32 1.0, %v4064_v25  ;;  %v4881_v23 = vsel %vm99_vm6, %v4729_v39, 0.0 }
 0x69d   :  { %v4068_v17 = vpop.eup %4067  ;;  %4073 = vrcp.f32 %v752_v43  ;;  %v902_v56 = vadd.f32 1.0, %v4066_v3  ;;  %v4890_v3 = vsel %vm97_vm4, %v4718_v33, 0.0  ;;  %v4912_v33 = vsel %vm478_vm11, %v4714_v27, %v4710_v24 }
 0x69e   :  { %v903_v32 = vadd.f32 1.0, %v4068_v17  ;;  %4075 = vrcp.f32 %v901_v12 }
 0x69f   :  { %4077 = vrcp.f32 %v902_v56 }
 0x6a0   :  { %4079 = vrcp.f32 %v903_v32 }
 0x6a5   :  { %v4845_v61 = vpop.eup %4069 }
 0x6a6   :  { %v4848_v53 = vpop.eup %4071  ;;  %v762_v21 = vmul.f32 %v4845_v61, %v4890_v3 }
 0x6a7   :  { %v4851_v41 = vpop.eup %4073  ;;  %v763_v14 = vmul.f32 %v4848_v53, %v4876_v13 }
 0x6a8   :  { %v4856_v46 = vpop.eup %4075  ;;  %v764_v43 = vmul.f32 %v4851_v41, %v4881_v23 }
 0x6a9   :  { %v4860_v49 = vpop.eup %4077  ;;  %v913_v32 = vmul.f32 %v4856_v46, %v4912_v33 }
 0x6aa   :  { %v4865_v54 = vpop.eup %4079  ;;  %v914_v56 = vmul.f32 %v4860_v49, %v4906_v20 }
 0x6ab   :  { %v915_v27 = vmul.f32 %v4865_v54, %v4927_v34 }
 0x701   :  { %v769_v30 = vpop.permute.xlu0 %768 }
 0x702   :  { %v777_v35 = vmul.f32 %v4845_v61, %v769_v30 }
 0x703   :  { %v771_v38 = vpop.permute.xlu1 %770 }
 0x704   :  { %783 = vrot.lane.b32.xlu0 %v777_v35, %s4381_s30  ;;  %v778_v8 = vmul.f32 %v4848_v53, %v771_v38 }
 0x705   :  { %v773_v5 = vpop.permute.xlu0 %772 }
 0x706   :  { %v779_v42 = vmul.f32 %v4851_v41, %v773_v5  ;;  %785 = vrot.lane.b32.xlu1 %v778_v8, %s4381_s30 }
 0x707   :  { %v920_v31 = vpop.permute.xlu1 %919 }
 0x708   :  { %787 = vrot.lane.b32.xlu0 %v779_v42, %s4381_s30  ;;  %v928_v48 = vmul.f32 %v4856_v46, %v920_v31 }
 0x709   :  { %v922_v2 = vpop.permute.xlu0 %921 }
 0x70a   :  { %v929_v52 = vmul.f32 %v4860_v49, %v922_v2  ;;  %934 = vrot.lane.b32.xlu1 %v928_v48, %s4381_s30 }
 0x70b   :  { %v924_v6 = vpop.permute.xlu1 %923 }
 0x70c   :  { %v930_v57 = vmul.f32 %v4865_v54, %v924_v6  ;;  %936 = vrot.lane.b32.xlu0 %v929_v52, %s4381_s30 }
 0x70e   :  { %938 = vrot.lane.b32.xlu1 %v930_v57, %s4381_s30 }
 0x710   :  { %826 = vperm.xlu0 %3946, %v822_v60  }
 0x712   :  { %829 = vperm.xlu1 %3947, %v823_v0  }
 0x776   :  { %v784_v4 = vpop.permute.xlu0 %783 }
 0x777   :  { %v4899_v12 = vadd.f32 %v784_v4, %v762_v21 }
 0x778   :  { %v786_v25 = vpop.permute.xlu1 %785 }
 0x779   :  { %v4892_v19 = vadd.f32 %v786_v25, %v763_v14 }
 0x77a   :  { %v788_v44 = vpop.permute.xlu0 %787 }
 0x77b   :  { %v4896_v39 = vadd.f32 %v788_v44, %v764_v43  ;;  %4081 = vtanh.f32 %v4892_v19 }
 0x77c   :  { %v935_v17 = vpop.permute.xlu1 %934 }
 0x77d   :  { %4083 = vtanh.f32 %v4896_v39  ;;  %v4921_v38 = vadd.f32 %v935_v17, %v913_v32 }
 0x77e   :  { %v937_v30 = vpop.permute.xlu0 %936  ;;  %4085 = vtanh.f32 %v4899_v12 }
 0x77f   :  { %v4918_v35 = vadd.f32 %v937_v30, %v914_v56 }
 0x780   :  { %v939_v24 = vpop.permute.xlu1 %938 }
 0x781   :  { %4087 = vtanh.f32 %v4918_v35  ;;  %v4933_v40 = vadd.f32 %v939_v24, %v915_v27 }
 0x782   :  { %4089 = vtanh.f32 %v4921_v38 }
 0x783   :  { %4091 = vtanh.f32 %v4933_v40 }
 0x785   :  { %v4082_v8 = vpop.eup %4081 }
 0x786   :  { %803 = vrot.lane.b32.xlu1 %v4082_v8, %s4381_s30 }
 0x787   :  { %v4084_v5 = vpop.eup %4083 }
 0x788   :  { %805 = vrot.lane.b32.xlu0 %v4084_v5, %s4381_s30  ;;  %v4086_v51 = vpop.eup %4085 }
 0x78a   :  { %832 = vperm.xlu1 %3947, %v824_v45  }
 0x78b   :  { %v4088_v42 = vpop.eup %4087 }
 0x78c   :  { %801 = vrot.lane.b32.xlu0 %v4086_v51, %s4381_s30  ;;  %v4090_v31 = vpop.eup %4089 }
 0x78d   :  { %v4092_v48 = vpop.eup %4091 }
 0x78e   :  { %954 = vrot.lane.b32.xlu1 %v4088_v42, %s4381_s30 }
 0x78f   :  { %v4944_v2 = vpop.permute.xlu0 %826 }
 0x790   :  { %952 = vrot.lane.b32.xlu0 %v4090_v31, %s4381_s30  ;;  %vm834_vm4 = vcmp.eq.s32.totalorder %v4944_v2, 1 }
 0x791   :  { %v4946_v52 = vpop.permute.xlu1 %829  ;;  %v5114_v59 = vsel %vm834_vm4, %v4921_v38, %v4912_v33  ;;  %v5136_v38 = vsel %vm480_vm13, %v4896_v39, %v4881_v23 }
 0x792   :  { %vm835_vm5 = vcmp.eq.s32.totalorder %v4946_v52, 1 }
 0x794   :  { %956 = vrot.lane.b32.xlu0 %v4092_v48, %s4381_s30 }
 0x7f8   :  { %v804_v6 = vpop.permute.xlu1 %803 }
 0x7f9   :  { %v811_v0 = vmul.f32 %v4848_v53, %v804_v6 }
 0x7fa   :  { %v806_v57 = vpop.permute.xlu0 %805 }
 0x7fb   :  { %v812_v60 = vmul.f32 %v4851_v41, %v806_v57  ;;  %v4967_v53 = vsel %vm479_vm12, %v811_v0, %v4787_v29 }
 0x7fd   :  { %v4953_v4 = vsel %vm480_vm13, %v812_v60, %v4793_v37 }
 0x7fe   :  { %v802_v14 = vpop.permute.xlu0 %801  ;;  %v973_v25 = vpack.c.bf16 %v4953_v4, %v4953_v4 }
 0x7ff   :  { %v810_v43 = vmul.f32 %v4845_v61, %v802_v14 }
 0x800   :  { %978 = vrot.lane.b32.xlu0 %v973_v25, %s4382_s28 }
 0x801   :  { %v4962_v44 = vsel %vm478_vm11, %v810_v43, %v4783_v50 }
 0x802   :  { %v953_v37 = vpop.permute.xlu0 %952  ;;  %v972_v41 = vpack.c.bf16 %v4967_v53, %v4962_v44 }
 0x803   :  { %v961_v29 = vmul.f32 %v4856_v46, %v953_v37 }
 0x804   :  { %976 = vrot.lane.b32.xlu1 %v972_v41, %s4382_s28 }
 0x806   :  { %v957_v21 = vpop.permute.xlu0 %956 }
 0x807   :  { %v963_v61 = vmul.f32 %v4865_v54, %v957_v21  ;;  %v4991_v54 = vsel %vm834_vm4, %v961_v29, %v4769_v26  ;;  %v5006_v26 = vld [vmem:[%s6211_s29] sm:$0xff]   ;;  %v3479_v21 = vld [vmem:[%s6212_s20 + $0x50] sm:$0xff] }
 0x809   :  { %v4973_v17 = vpop.permute.xlu1 %832 }
 0x80a   :  { %vm836_vm2 = vcmp.eq.s32.totalorder %v4973_v17, 1 }
 0x80b   :  { %v4979_v50 = vsel %vm836_vm2, %v963_v61, %v4801_v62 }
 0x80c   :  { %v971_v56 = vpack.c.bf16 %v4979_v50, %v4979_v50 }
 0x80d   :  { %v955_v32 = vpop.permute.xlu1 %954 }
 0x80e   :  { %v962_v30 = vmul.f32 %v4860_v49, %v955_v32  ;;  %1038 = vrot.lane.b32.xlu0 %v971_v56, %s4382_s28  ;;  %v3480_v56 = vld [vmem:[%s6212_s20 + $0x58] sm:$0xff] }
 0x810   :  { %v4996_v62 = vsel %vm835_vm5, %v962_v30, %v4774_v28  ;;  %v5012_v28 = vld [vmem:[%s6211_s29 + $0x8] sm:$0xff]  }
 0x811   :  { %v970_v46 = vpack.c.bf16 %v4996_v62, %v4991_v54 }
 0x813   :  { %1036 = vrot.lane.b32.xlu1 %v970_v46, %s4382_s28 }
 0x872   :  { %v979_v24 = vpop.permute.xlu0 %978 }
 0x876   :  { %v977_v49 = vpop.permute.xlu1 %976 }
 0x877   :  { %3757 = vmatprep.mubr.msk.bf16.mxu1 %vm115_vm7, %v977_v49 }
 0x878   :  { %3758 = vmatmul.mubr.msk.bf16.vlgmr.msra.gmra.mrb[12].mxu1 %vm115_vm7, %v979_v24 }
 0x879   :  { %3770 = vmatpush3.bf16.msra.mxu1 %v5006_v26 }
 0x87a   :  { %3771 = vmatprep.subr.bf16.mxu1 %v5012_v28 }
 0x87d   :  { %3772 = vmatpush3.bf16.msra.mxu1 %v5012_v28 }
 0x87e   :  { %3785 = vmatprep.subr.bf16.mxu1 %v4590_v10 }
 0x880   :  { %v1039_v8 = vpop.permute.xlu0 %1038 }
 0x885   :  { %v1037_v27 = vpop.permute.xlu1 %1036 }
 0x886   :  { %3765 = vmatprep.mubr.msk.bf16.mxu0 %vm115_vm7, %v1037_v27  ;;  %3773 = vmatprep.mubr.msk.bf16.mxu1 %vm115_vm7, %v1037_v27 }
 0x887   :  { %3766 = vmatmul.mubr.msk.bf16.vlgmr.msra.gmra.mrb[16].mxu0 %vm115_vm7, %v1039_v8  ;;  %3774 = vmatmul.mubr.msk.bf16.vlgmr.msra.gmra.mrb[16].mxu1 %vm115_vm7, %v1039_v8 }
 0x888   :  { %3778 = vmatpush3.bf16.msra.mxu0 %v4578_v7  ;;  %3786 = vmatpush3.bf16.msra.mxu1 %v4590_v10 }
 0x889   :  { %3779 = vmatprep.subr.bf16.mxu0 %v4583_v9  ;;  %3787 = vmatprep.subr.bf16.mxu1 %v4596_v11 }
 0x88c   :  { %3780 = vmatpush3.bf16.msra.mxu0 %v4583_v9  ;;  %3788 = vmatpush3.bf16.msra.mxu1 %v4596_v11 }
 0x88d   :  { %3793 = vmatprep.subr.bf16.mxu0 %v5006_v26  ;;  %3801 = vmatprep.subr.bf16.mxu1 %v4578_v7  ;;  %v3478_v7 = vld [vmem:[%s6212_s20 + $0x48] sm:$0xff] }
 0x94b   :  { %v3759_v5 = vpop.f32.mrb[12].mxu1 }
 0x94c   :  { %v1020_v45 = vpop.f32.mrb[13].mxu1 }
 0x94d   :  { %v3760_v51 = vpop.f32.mrb[14].mxu1 }
 0x94e   :  { %v1023_v42 = vpop.f32.mrb[15].mxu1 }
 0x95a   :  { %v3767_v31 = vpop.f32.mrb[16].mxu0  ;;  %v3775_v48 = vpop.f32.mrb[16].mxu1 }
 0x95b   :  { %v1089_v6 = vadd.f32 %v3767_v31, %v3759_v5  ;;  %v1080_v10 = vpop.f32.mrb[17].mxu0  ;;  %v1231_v57 = vpop.f32.mrb[17].mxu1  ;;  %v1247_v32 = vadd.f32 %v3775_v48, %v3480_v56 }
 0x95c   :  { %v1081_v60 = vadd.f32 %v1080_v10, %v1020_v45  ;;  %v3768_v0 = vpop.f32.mrb[18].mxu0  ;;  %v3776_v14 = vpop.f32.mrb[18].mxu1  ;;  %v1245_v41 = vadd.f32 %v3478_v7, %v1231_v57 }
 0x95d   :  { %v1083_v25 = vpop.f32.mrb[19].mxu0  ;;  %v1234_v9 = vpop.f32.mrb[19].mxu1  ;;  %v1096_v29 = vadd.f32 %v4660_v47, %v1089_v6  ;;  %v3485_v31 = vmul.f32 -1.442695, %v1247_v32 }
 0x95e   :  { %v1084_v43 = vadd.f32 %v1083_v25, %v1023_v42  ;;  %v1094_v11 = vadd.f32 %v4660_v47, %v1081_v60  ;;  %v1246_v61 = vadd.f32 %v3479_v21, %v1234_v9  ;;  %v3483_v45 = vmul.f32 -1.442695, %v1245_v41 }
 0x95f   :  { %v3477_v42 = vmul.f32 -1.442695, %v1096_v29 }
 0x960   :  { %v1095_v37 = vadd.f32 %v4660_v47, %v1084_v43  ;;  %4093 = vtanh.f32 %v1094_v11  ;;  %v3475_v8 = vmul.f32 -1.442695, %v1094_v11  ;;  %v3484_v51 = vmul.f32 -1.442695, %v1246_v61 }
 0x962   :  { %4095 = vtanh.f32 %v1095_v37  ;;  %v3476_v5 = vmul.f32 -1.442695, %v1095_v37 }
 0x963   :  { %4097 = vtanh.f32 %v1245_v41 }
 0x964   :  { %4099 = vtanh.f32 %v1246_v61 }
 0x965   :  { %4101 = vtanh.f32 %v1096_v29 }
 0x966   :  { %4103 = vtanh.f32 %v1247_v32 }
 0x967   :  { %4105 = vpow2.f32 %v3475_v8 }
 0x968   :  { %4107 = vpow2.f32 %v3476_v5 }
 0x969   :  { %4109 = vpow2.f32 %v3483_v45  ;;  %v5068_v45 = vld [vmem:[%s6213_s26] sm:$0xff] }
 0x96a   :  { %v4094_v30 = vpop.eup %4093  ;;  %4111 = vpow2.f32 %v3484_v51  ;;  %vm1175_vm6 = vcmp.gt.f32.partialorder %v5068_v45, 3.0  ;;  %vm1531_vm13 = vcmp.gt.f32.partialorder %v5068_v45, 4.0 }
 0x96b   :  { %1124 = vrot.lane.b32.xlu1 %v4094_v30, %s4381_s30  ;;  %4113 = vpow2.f32 %v3477_v42 }
 0x96c   :  { %v4096_v46 = vpop.eup %4095  ;;  %4115 = vpow2.f32 %v3485_v31 }
 0x96d   :  { %v4098_v49 = vpop.eup %4097  ;;  %1126 = vrot.lane.b32.xlu0 %v4096_v46, %s4381_s30 }
 0x96e   :  { %v4100_v24 = vpop.eup %4099 }
 0x96f   :  { %1275 = vrot.lane.b32.xlu1 %v4098_v49, %s4381_s30  ;;  %v4102_v47 = vpop.eup %4101 }
 0x970   :  { %v4104_v27 = vpop.eup %4103 }
 0x971   :  { %1277 = vrot.lane.b32.xlu0 %v4100_v24, %s4381_s30  ;;  %v4106_v48 = vpop.eup %4105 }
 0x972   :  { %v4108_v6 = vpop.eup %4107  ;;  %v1106_v10 = vadd.f32 1.0, %v4106_v48  ;;  %v1178_v48 = vsel %vm1175_vm6, 1, %v4379_v1 }
 0x973   :  { %1128 = vrot.lane.b32.xlu1 %v4102_v47, %s4381_s30  ;;  %v4110_v57 = vpop.eup %4109  ;;  %v1107_v60 = vadd.f32 1.0, %v4108_v6  ;;  %v5080_v6 = vld [vmem:[%s6213_s26 + $0x8] sm:$0xff] }
 0x974   :  { %v4112_v0 = vpop.eup %4111  ;;  %4117 = vrcp.f32 %v1106_v10  ;;  %v1257_v14 = vadd.f32 1.0, %v4110_v57  ;;  %vm1176_vm8 = vcmp.gt.f32.partialorder %v5080_v6, 3.0  ;;  %v5086_v10 = vld [vmem:[%s6213_s26 + $0x10] sm:$0xff]  ;;  %vm1532_vm14 = vcmp.gt.f32.partialorder %v5080_v6, 4.0 }
 0x975   :  { %1279 = vrot.lane.b32.xlu0 %v4104_v27, %s4381_s30  ;;  %v4114_v25 = vpop.eup %4113  ;;  %4119 = vrcp.f32 %v1107_v60  ;;  %v1258_v9 = vadd.f32 1.0, %v4112_v0  ;;  %vm1177_vm9 = vcmp.gt.f32.partialorder %v5086_v10, 3.0  ;;  %v1179_v57 = vsel %vm1176_vm8, 1, %v4379_v1 }
 0x976   :  { %v4116_v43 = vpop.eup %4115  ;;  %v1108_v11 = vadd.f32 1.0, %v4114_v25  ;;  %4121 = vrcp.f32 %v1257_v14  ;;  %v1180_v60 = vsel %vm1177_vm9, 1, %v4379_v1  ;;  %v5096_v0 = vsel %vm478_vm11, %v4899_v12, %v4890_v3 }
 0x977   :  { %v1259_v7 = vadd.f32 1.0, %v4116_v43  ;;  %4123 = vrcp.f32 %v1258_v9  ;;  %v5106_v43 = vsel %vm479_vm12, %v4892_v19, %v4876_v13  ;;  %v5127_v19 = vsel %vm835_vm5, %v4918_v35, %v4906_v20 }
 0x978   :  { %4125 = vrcp.f32 %v1108_v11  ;;  %vm1533_vm15 = vcmp.gt.f32.partialorder %v5086_v10, 4.0  ;;  %vm1888_vm6 = vcmp.gt.f32.partialorder %v5080_v6, 5.0  ;;  %vm1889_vm8 = vcmp.gt.f32.partialorder %v5086_v10, 5.0 }
 0x979   :  { %4127 = vrcp.f32 %v1259_v7 }
 0x97e   :  { %v5047_v37 = vpop.eup %4117 }
 0x97f   :  { %v5050_v61 = vpop.eup %4119  ;;  %v1118_v14 = vmul.f32 %v5047_v37, %v5096_v0 }
 0x980   :  { %v5053_v56 = vpop.eup %4121  ;;  %v1119_v11 = vmul.f32 %v5050_v61, %v5106_v43 }
 0x981   :  { %v5058_v49 = vpop.eup %4123  ;;  %v1269_v12 = vmul.f32 %v5053_v56, %v5114_v59 }
 0x982   :  { %v5061_v47 = vpop.eup %4125  ;;  %v1270_v33 = vmul.f32 %v5058_v49, %v5127_v19 }
 0x983   :  { %v5072_v51 = vpop.eup %4127 }
 0x9dd   :  { %v1125_v41 = vpop.permute.xlu1 %1124 }
 0x9de   :  { %v1133_v21 = vmul.f32 %v5047_v37, %v1125_v41 }
 0x9df   :  { %v1127_v29 = vpop.permute.xlu0 %1126 }
 0x9e0   :  { %1139 = vrot.lane.b32.xlu1 %v1133_v21, %s4381_s30  ;;  %v1134_v32 = vmul.f32 %v5050_v61, %v1127_v29  ;;  %v1120_v21 = vmul.f32 %v5061_v47, %v5136_v38 }
 0x9e1   :  { %v1276_v30 = vpop.permute.xlu1 %1275 }
 0x9e2   :  { %v1284_v46 = vmul.f32 %v5053_v56, %v1276_v30  ;;  %1141 = vrot.lane.b32.xlu0 %v1134_v32, %s4381_s30  ;;  %v5149_v32 = vsel %vm836_vm2, %v4933_v40, %v4927_v34 }
 0x9e3   :  { %v1278_v24 = vpop.permute.xlu0 %1277  ;;  %v1271_v63 = vmul.f32 %v5072_v51, %v5149_v32 }
 0x9e4   :  { %1290 = vrot.lane.b32.xlu1 %v1284_v46, %s4381_s30  ;;  %v1285_v27 = vmul.f32 %v5058_v49, %v1278_v24 }
 0x9e5   :  { %v1129_v8 = vpop.permute.xlu1 %1128 }
 0x9e6   :  { %v1135_v5 = vmul.f32 %v5061_v47, %v1129_v8  ;;  %1292 = vrot.lane.b32.xlu0 %v1285_v27, %s4381_s30 }
 0x9e7   :  { %v1280_v42 = vpop.permute.xlu0 %1279 }
 0x9e8   :  { %1143 = vrot.lane.b32.xlu1 %v1135_v5, %s4381_s30  ;;  %v1286_v31 = vmul.f32 %v5072_v51, %v1280_v42 }
 0x9ea   :  { %1294 = vrot.lane.b32.xlu0 %v1286_v31, %s4381_s30 }
 0x9ec   :  { %1182 = vperm.xlu1 %3947, %v1178_v48  }
 0x9ee   :  { %1185 = vperm.xlu0 %3946, %v1179_v57  }
 0x9f0   :  { %1188 = vperm.xlu1 %3947, %v1180_v60  }
 0xa52   :  { %v1140_v25 = vpop.permute.xlu1 %1139 }
 0xa53   :  { %v5100_v9 = vadd.f32 %v1140_v25, %v1118_v14 }
 0xa54   :  { %v1142_v3 = vpop.permute.xlu0 %1141 }
 0xa55   :  { %4129 = vtanh.f32 %v5100_v9  ;;  %v5119_v7 = vadd.f32 %v1142_v3, %v1119_v11  ;;  %v5330_v52 = vsel %vm834_vm4, %v5100_v9, %v5096_v0 }
 0xa56   :  { %v1291_v58 = vpop.permute.xlu1 %1290 }
 0xa57   :  { %v5121_v13 = vadd.f32 %v1291_v58, %v1269_v12  ;;  %4131 = vtanh.f32 %v5119_v7 }
 0xa58   :  { %v1293_v41 = vpop.permute.xlu0 %1292 }
 0xa59   :  { %4133 = vtanh.f32 %v5121_v13  ;;  %v5141_v29 = vadd.f32 %v1293_v41, %v1270_v33 }
 0xa5a   :  { %v1144_v20 = vpop.permute.xlu1 %1143 }
 0xa5b   :  { %v5143_v35 = vadd.f32 %v1144_v20, %v1120_v21  ;;  %4135 = vtanh.f32 %v5141_v29 }
 0xa5c   :  { %v1295_v23 = vpop.permute.xlu0 %1294 }
 0xa5d   :  { %4137 = vtanh.f32 %v5143_v35  ;;  %v5155_v39 = vadd.f32 %v1295_v23, %v1271_v63  ;;  %v5231_v63 = vld [vmem:[%s6189_s5] sm:$0xff]   ;;  %v5238_v23 = vld [vmem:[%s6189_s5 + $0x8] sm:$0xff]  }
 0xa5f   :  { %v4130_v30 = vpop.eup %4129  ;;  %4139 = vtanh.f32 %v5155_v39 }
 0xa60   :  { %1157 = vrot.lane.b32.xlu0 %v4130_v30, %s4381_s30  ;;  %v5244_v30 = vld [vmem:[%s6190_s4] sm:$0xff]  }
 0xa61   :  { %v4132_v46 = vpop.eup %4131 }
 0xa62   :  { %1159 = vrot.lane.b32.xlu1 %v4132_v46, %s4381_s30  ;;  %v5254_v46 = vld [vmem:[%s6190_s4 + $0x8] sm:$0xff]  }
 0xa63   :  { %v4134_v24 = vpop.eup %4133 }
 0xa64   :  { %1308 = vrot.lane.b32.xlu0 %v4134_v24, %s4381_s30 }
 0xa65   :  { %v4136_v34 = vpop.eup %4135 }
 0xa66   :  { %1310 = vrot.lane.b32.xlu1 %v4136_v34, %s4381_s30 }
 0xa67   :  { %v4138_v40 = vpop.eup %4137 }
 0xa68   :  { %1161 = vrot.lane.b32.xlu0 %v4138_v40, %s4381_s30 }
 0xa69   :  { %v4140_v27 = vpop.eup %4139 }
 0xa6a   :  { %1312 = vrot.lane.b32.xlu1 %v4140_v27, %s4381_s30 }
 0xa6b   :  { %v5164_v8 = vpop.permute.xlu1 %1182 }
 0xa6c   :  { %vm1190_vm10 = vcmp.eq.s32.totalorder %v5164_v8, 1 }
 0xa6d   :  { %v5166_v5 = vpop.permute.xlu0 %1185  ;;  %v5346_v2 = vsel %vm1190_vm10, %v5121_v13, %v5114_v59 }
 0xa6e   :  { %vm1191_vm11 = vcmp.eq.s32.totalorder %v5166_v5, 1 }
 0xa6f   :  { %v5168_v42 = vpop.permute.xlu1 %1188  ;;  %v5352_v9 = vsel %vm1191_vm11, %v5141_v29, %v5127_v19 }
 0xa70   :  { %vm1192_vm12 = vcmp.eq.s32.totalorder %v5168_v42, 1 }
 0xa71   :  { %v5367_v13 = vsel %vm1192_vm12, %v5155_v39, %v5149_v32  ;;  %v1536_v32 = vsel %vm1533_vm15, 1, %v4379_v1 }
 0xad2   :  { %v1158_v31 = vpop.permute.xlu0 %1157 }
 0xad3   :  { %v1166_v48 = vmul.f32 %v5047_v37, %v1158_v31 }
 0xad4   :  { %v1160_v57 = vpop.permute.xlu1 %1159 }
 0xad5   :  { %v1167_v60 = vmul.f32 %v5050_v61, %v1160_v57  ;;  %v5176_v11 = vsel %vm834_vm4, %v1166_v48, %v4962_v44 }
 0xad6   :  { %v1309_v14 = vpop.permute.xlu0 %1308 }
 0xad7   :  { %v1317_v25 = vmul.f32 %v5053_v56, %v1309_v14  ;;  %v5181_v3 = vsel %vm835_vm5, %v1167_v60, %v4967_v53 }
 0xad8   :  { %v1311_v12 = vpop.permute.xlu1 %1310  ;;  %v1328_v37 = vpack.c.bf16 %v5181_v3, %v5176_v11 }
 0xad9   :  { %v1318_v58 = vmul.f32 %v5058_v49, %v1311_v12  ;;  %v5193_v53 = vsel %vm1190_vm10, %v1317_v25, %v4991_v54  ;;  %v5262_v12 = vld [vmem:[%s6191_s6] ss:$0 sm:$0xff] }
 0xada   :  { %v1162_v61 = vpop.permute.xlu0 %1161  ;;  %1332 = vrot.lane.b32.xlu0 %v1328_v37, %s4382_s28 }
 0xadb   :  { %v1168_v44 = vmul.f32 %v5061_v47, %v1162_v61  ;;  %v5198_v56 = vsel %vm1191_vm11, %v1318_v58, %v4996_v62 }
 0xadc   :  { %v1313_v49 = vpop.permute.xlu1 %1312  ;;  %v1326_v33 = vpack.c.bf16 %v5198_v56, %v5193_v53 }
 0xadd   :  { %v5205_v41 = vsel %vm836_vm2, %v1168_v44, %v4953_v4  ;;  %v1319_v47 = vmul.f32 %v5072_v51, %v1313_v49 }
 0xade   :  { %v1329_v54 = vpack.c.bf16 %v5205_v41, %v5205_v41  ;;  %1392 = vrot.lane.b32.xlu1 %v1326_v33, %s4382_s28 }
 0xadf   :  { %v5216_v62 = vsel %vm1192_vm12, %v1319_v47, %v4979_v50  ;;  %v3493_v47 = vld [vmem:[%s6212_s20 + $0x60] sm:$0xff] }
 0xae0   :  { %1334 = vrot.lane.b32.xlu0 %v1329_v54, %s4382_s28  ;;  %v1327_v4 = vpack.c.bf16 %v5216_v62, %v5216_v62 }
 0xae2   :  { %1394 = vrot.lane.b32.xlu1 %v1327_v4, %s4382_s28 }
 0xb4c   :  { %v1333_v51 = vpop.permute.xlu0 %1332 }
 0xb4d   :  { %3781 = vmatprep.mubr.msk.bf16.mxu0 %vm115_vm7, %v1333_v51  ;;  %v3494_v51 = vld [vmem:[%s6212_s20 + $0x68] sm:$0xff] }
 0xb50   :  { %v1393_v21 = vpop.permute.xlu1 %1392 }
 0xb51   :  { %3789 = vmatprep.mubr.msk.bf16.mxu1 %vm115_vm7, %v1393_v21 }
 0xb52   :  { %v1335_v20 = vpop.permute.xlu0 %1334 }
 0xb53   :  { %3782 = vmatmul.mubr.msk.bf16.vlgmr.msra.gmra.mrb[20].mxu0 %vm115_vm7, %v1335_v20  ;;  %v3495_v20 = vld [vmem:[%s6212_s20 + $0x70] sm:$0xff] }
 0xb54   :  { %3794 = vmatpush3.bf16.msra.mxu0 %v5006_v26  ;;  %3797 = vmatprep.mubr.msk.bf16.mxu0 %vm115_vm7, %v1393_v21  ;;  %v1395_v50 = vpop.permute.xlu1 %1394 }
 0xb55   :  { %3795 = vmatprep.subr.bf16.mxu0 %v5012_v28  ;;  %3790 = vmatmul.mubr.msk.bf16.vlgmr.msra.gmra.mrb[20].mxu1 %vm115_vm7, %v1395_v50 }
 0xb56   :  { %3802 = vmatpush3.bf16.msra.mxu1 %v5231_v63 }
 0xb57   :  { %3803 = vmatprep.subr.bf16.mxu1 %v5238_v23 }
 0xb58   :  { %3796 = vmatpush3.bf16.msra.mxu0 %v5012_v28 }
 0xb59   :  { %3809 = vmatprep.subr.bf16.mxu0 %v5244_v30 }
 0xb5a   :  { %3804 = vmatpush3.bf16.msra.mxu1 %v5238_v23 }
 0xb5b   :  { %3798 = vmatmul.mubr.msk.bf16.vlgmr.msra.gmra.mrb[24].mxu0 %vm115_vm7, %v1395_v50  ;;  %3817 = vmatprep.subr.bf16.mxu1 %v5006_v26 }
 0xb5c   :  { %3810 = vmatpush3.bf16.msra.mxu0 %v5244_v30 }
 0xb5d   :  { %3811 = vmatprep.subr.bf16.mxu0 %v5254_v46 }
 0xb60   :  { %3812 = vmatpush3.bf16.msra.mxu0 %v5254_v46 }
 0xb61   :  { %3825 = vmatprep.subr.bf16.mxu0 %v5231_v63 }
 0xc26   :  { %v3783_v24 = vpop.f32.mrb[20].mxu0 }
 0xc27   :  { %v1376_v34 = vpop.f32.mrb[21].mxu0 }
 0xc28   :  { %v3784_v40 = vpop.f32.mrb[22].mxu0  ;;  %v3791_v27 = vpop.f32.mrb[20].mxu1 }
 0xc29   :  { %v1379_v31 = vpop.f32.mrb[23].mxu0  ;;  %v1445_v48 = vadd.f32 %v3791_v27, %v3783_v24  ;;  %v1436_v57 = vpop.f32.mrb[21].mxu1 }
 0xc2a   :  { %v1437_v60 = vadd.f32 %v1436_v57, %v1376_v34  ;;  %v3792_v14 = vpop.f32.mrb[22].mxu1 }
 0xc2b   :  { %v1439_v25 = vpop.f32.mrb[23].mxu1  ;;  %v1452_v44 = vadd.f32 %v5262_v12, %v1445_v48 }
 0xc2c   :  { %v1450_v37 = vadd.f32 %v5262_v12, %v1437_v60  ;;  %v1440_v58 = vadd.f32 %v1439_v25, %v1379_v31 }
 0xc2d   :  { %v3492_v25 = vmul.f32 -1.442695, %v1452_v44 }
 0xc2e   :  { %v3799_v61 = vpop.f32.mrb[24].mxu0  ;;  %4141 = vtanh.f32 %v1450_v37  ;;  %v1451_v49 = vadd.f32 %v5262_v12, %v1440_v58  ;;  %v3490_v60 = vmul.f32 -1.442695, %v1450_v37 }
 0xc2f   :  { %v1587_v33 = vpop.f32.mrb[25].mxu0  ;;  %v1603_v24 = vadd.f32 %v3799_v61, %v3495_v20 }
 0xc30   :  { %v3800_v54 = vpop.f32.mrb[26].mxu0  ;;  %4143 = vtanh.f32 %v1451_v49  ;;  %v1601_v21 = vadd.f32 %v3493_v47, %v1587_v33  ;;  %v3491_v14 = vmul.f32 -1.442695, %v1451_v49 }
 0xc31   :  { %v1590_v4 = vpop.f32.mrb[27].mxu0  ;;  %4145 = vtanh.f32 %v1452_v44  ;;  %v3500_v33 = vmul.f32 -1.442695, %v1603_v24 }
 0xc32   :  { %v1602_v50 = vadd.f32 %v3494_v51, %v1590_v4  ;;  %4147 = vtanh.f32 %v1601_v21  ;;  %v3498_v58 = vmul.f32 -1.442695, %v1601_v21 }
 0xc34   :  { %4149 = vtanh.f32 %v1602_v50  ;;  %v3499_v61 = vmul.f32 -1.442695, %v1602_v50 }
 0xc35   :  { %4151 = vtanh.f32 %v1603_v24 }
 0xc36   :  { %4153 = vpow2.f32 %v3490_v60 }
 0xc37   :  { %4155 = vpow2.f32 %v3491_v14 }
 0xc38   :  { %v4142_v34 = vpop.eup %4141  ;;  %4157 = vpow2.f32 %v3492_v25 }
 0xc39   :  { %1480 = vrot.lane.b32.xlu0 %v4142_v34, %s4381_s30  ;;  %4159 = vpow2.f32 %v3498_v58 }
 0xc3a   :  { %v4144_v40 = vpop.eup %4143  ;;  %4161 = vpow2.f32 %v3499_v61 }
 0xc3b   :  { %v4146_v27 = vpop.eup %4145  ;;  %1482 = vrot.lane.b32.xlu1 %v4144_v40, %s4381_s30  ;;  %4163 = vpow2.f32 %v3500_v33 }
 0xc3c   :  { %v4148_v31 = vpop.eup %4147 }
 0xc3d   :  { %1484 = vrot.lane.b32.xlu0 %v4146_v27, %s4381_s30 }
 0xc3e   :  { %v4150_v48 = vpop.eup %4149 }
 0xc3f   :  { %1631 = vrot.lane.b32.xlu1 %v4148_v31, %s4381_s30  ;;  %v4152_v57 = vpop.eup %4151 }
 0xc40   :  { %v4154_v47 = vpop.eup %4153 }
 0xc41   :  { %1633 = vrot.lane.b32.xlu0 %v4150_v48, %s4381_s30  ;;  %v4156_v54 = vpop.eup %4155  ;;  %v1462_v4 = vadd.f32 1.0, %v4154_v47 }
 0xc42   :  { %v4158_v51 = vpop.eup %4157  ;;  %v1463_v20 = vadd.f32 1.0, %v4156_v54 }
 0xc43   :  { %1635 = vrot.lane.b32.xlu1 %v4152_v57, %s4381_s30  ;;  %v1464_v34 = vadd.f32 1.0, %v4158_v51  ;;  %4165 = vrcp.f32 %v1462_v4  ;;  %v4160_v40 = vpop.eup %4159 }
 0xc44   :  { %v4162_v37 = vpop.eup %4161  ;;  %4167 = vrcp.f32 %v1463_v20  ;;  %v1613_v44 = vadd.f32 1.0, %v4160_v40 }
 0xc45   :  { %4169 = vrcp.f32 %v1464_v34  ;;  %v4164_v49 = vpop.eup %4163  ;;  %v1614_v27 = vadd.f32 1.0, %v4162_v37  ;;  %v1534_v37 = vsel %vm1531_vm13, 1, %v4379_v1 }
 0xc46   :  { %v1615_v21 = vadd.f32 1.0, %v4164_v49  ;;  %4171 = vrcp.f32 %v1613_v44  ;;  %v1535_v44 = vsel %vm1532_vm14, 1, %v4379_v1 }
 0xc47   :  { %4173 = vrcp.f32 %v1614_v27  ;;  %v5314_v27 = vsel %vm835_vm5, %v5119_v7, %v5106_v43  ;;  %vm1887_vm5 = vcmp.gt.f32.partialorder %v5068_v45, 5.0  ;;  %v1891_v45 = vsel %vm1888_vm6, 1, %v4379_v1 }
 0xc48   :  { %4175 = vrcp.f32 %v1615_v21 }
 0xc4d   :  { %v5282_v50 = vpop.eup %4165 }
 0xc4e   :  { %v5285_v48 = vpop.eup %4167 }
 0xc4f   :  { %v5288_v60 = vpop.eup %4169  ;;  %v1475_v21 = vmul.f32 %v5285_v48, %v5314_v27 }
 0xc50   :  { %v5294_v61 = vpop.eup %4171 }
 0xc51   :  { %v5297_v54 = vpop.eup %4173 }
 0xc52   :  { %v5302_v20 = vpop.eup %4175 }
 0xc53   :  { %v1627_v29 = vmul.f32 %v5302_v20, %v5367_v13 }
 0xcab   :  { %v1481_v24 = vpop.permute.xlu0 %1480 }
 0xcac   :  { %v1489_v31 = vmul.f32 %v5282_v50, %v1481_v24  ;;  %v5322_v24 = vsel %vm836_vm2, %v5143_v35, %v5136_v38  ;;  %v1625_v38 = vmul.f32 %v5294_v61, %v5346_v2  ;;  %v1626_v35 = vmul.f32 %v5297_v54, %v5352_v9 }
 0xcad   :  { %v1483_v57 = vpop.permute.xlu1 %1482 }
 0xcae   :  { %1495 = vrot.lane.b32.xlu0 %v1489_v31, %s4381_s30  ;;  %v1490_v14 = vmul.f32 %v5285_v48, %v1483_v57  ;;  %v1476_v57 = vmul.f32 %v5288_v60, %v5322_v24 }
 0xcaf   :  { %v1485_v25 = vpop.permute.xlu0 %1484 }
 0xcb0   :  { %v1491_v58 = vmul.f32 %v5288_v60, %v1485_v25  ;;  %1497 = vrot.lane.b32.xlu1 %v1490_v14, %s4381_s30  ;;  %v1474_v14 = vmul.f32 %v5282_v50, %v5330_v52 }
 0xcb1   :  { %v1632_v33 = vpop.permute.xlu1 %1631 }
 0xcb2   :  { %1499 = vrot.lane.b32.xlu0 %v1491_v58, %s4381_s30  ;;  %v1640_v47 = vmul.f32 %v5294_v61, %v1632_v33 }
 0xcb3   :  { %v1634_v4 = vpop.permute.xlu0 %1633 }
 0xcb4   :  { %v1641_v51 = vmul.f32 %v5297_v54, %v1634_v4  ;;  %1646 = vrot.lane.b32.xlu1 %v1640_v47, %s4381_s30 }
 0xcb5   :  { %v1636_v34 = vpop.permute.xlu1 %1635 }
 0xcb6   :  { %v1642_v40 = vmul.f32 %v5302_v20, %v1636_v34  ;;  %1648 = vrot.lane.b32.xlu0 %v1641_v51, %s4381_s30 }
 0xcb8   :  { %1650 = vrot.lane.b32.xlu1 %v1642_v40, %s4381_s30 }
 0xcba   :  { %1538 = vperm.xlu0 %3946, %v1534_v37  }
 0xcbc   :  { %1541 = vperm.xlu1 %3947, %v1535_v44  }
 0xd20   :  { %v1496_v49 = vpop.permute.xlu0 %1495 }
 0xd21   :  { %v5339_v17 = vadd.f32 %v1496_v49, %v1474_v14 }
 0xd22   :  { %v1498_v31 = vpop.permute.xlu1 %1497 }
 0xd23   :  { %v5332_v43 = vadd.f32 %v1498_v31, %v1475_v21 }
 0xd24   :  { %v1500_v7 = vpop.permute.xlu0 %1499 }
 0xd25   :  { %v5336_v25 = vadd.f32 %v1500_v7, %v1476_v57  ;;  %4177 = vtanh.f32 %v5332_v43 }
 0xd26   :  { %v1647_v0 = vpop.permute.xlu1 %1646 }
 0xd27   :  { %4179 = vtanh.f32 %v5336_v25  ;;  %v5359_v33 = vadd.f32 %v1647_v0, %v1625_v38 }
 0xd28   :  { %v1649_v58 = vpop.permute.xlu0 %1648  ;;  %4181 = vtanh.f32 %v5339_v17 }
 0xd29   :  { %v5361_v59 = vadd.f32 %v1649_v58, %v1626_v35 }
 0xd2a   :  { %v1651_v19 = vpop.permute.xlu1 %1650 }
 0xd2b   :  { %4183 = vtanh.f32 %v5361_v59  ;;  %v5373_v47 = vadd.f32 %v1651_v19, %v1627_v29 }
 0xd2c   :  { %4185 = vtanh.f32 %v5359_v33 }
 0xd2d   :  { %4187 = vtanh.f32 %v5373_v47 }
 0xd2f   :  { %v4178_v4 = vpop.eup %4177 }
 0xd30   :  { %1515 = vrot.lane.b32.xlu1 %v4178_v4, %s4381_s30 }
 0xd31   :  { %v4180_v51 = vpop.eup %4179 }
 0xd32   :  { %1517 = vrot.lane.b32.xlu0 %v4180_v51, %s4381_s30  ;;  %v4182_v39 = vpop.eup %4181 }
 0xd34   :  { %1544 = vperm.xlu1 %3947, %v1536_v32  }
 0xd35   :  { %v4184_v34 = vpop.eup %4183 }
 0xd36   :  { %1513 = vrot.lane.b32.xlu0 %v4182_v39, %s4381_s30  ;;  %v4186_v40 = vpop.eup %4185 }
 0xd37   :  { %v4188_v37 = vpop.eup %4187 }
 0xd38   :  { %1666 = vrot.lane.b32.xlu1 %v4184_v34, %s4381_s30 }
 0xd39   :  { %v5384_v44 = vpop.permute.xlu0 %1538 }
 0xd3a   :  { %1664 = vrot.lane.b32.xlu0 %v4186_v40, %s4381_s30  ;;  %vm1546_vm2 = vcmp.eq.s32.totalorder %v5384_v44, 1 }
 0xd3b   :  { %v5386_v49 = vpop.permute.xlu1 %1541  ;;  %v5529_v8 = vsel %vm1546_vm2, %v5359_v33, %v5346_v2  ;;  %v5551_v33 = vsel %vm1192_vm12, %v5336_v25, %v5322_v24 }
 0xd3c   :  { %vm1547_vm4 = vcmp.eq.s32.totalorder %v5386_v49, 1 }
 0xd3e   :  { %1668 = vrot.lane.b32.xlu0 %v4188_v37, %s4381_s30 }
 0xda2   :  { %v1516_v21 = vpop.permute.xlu1 %1515 }
 0xda3   :  { %v1523_v7 = vmul.f32 %v5285_v48, %v1516_v21 }
 0xda4   :  { %v1518_v31 = vpop.permute.xlu0 %1517 }
 0xda5   :  { %v1524_v57 = vmul.f32 %v5288_v60, %v1518_v31  ;;  %v5402_v58 = vsel %vm1191_vm11, %v1523_v7, %v5181_v3 }
 0xda7   :  { %v5393_v14 = vsel %vm1192_vm12, %v1524_v57, %v5205_v41 }
 0xda8   :  { %v1685_v0 = vpack.c.bf16 %v5393_v14, %v5393_v14  ;;  %v1514_v38 = vpop.permute.xlu0 %1513 }
 0xda9   :  { %v1522_v35 = vmul.f32 %v5282_v50, %v1514_v38 }
 0xdaa   :  { %1690 = vrot.lane.b32.xlu0 %v1685_v0, %s4382_s28 }
 0xdab   :  { %v5407_v48 = vsel %vm1190_vm10, %v1522_v35, %v5176_v11 }
 0xdac   :  { %v1684_v41 = vpack.c.bf16 %v5402_v58, %v5407_v48  ;;  %v1665_v60 = vpop.permute.xlu0 %1664 }
 0xdad   :  { %v1673_v11 = vmul.f32 %v5294_v61, %v1665_v60 }
 0xdae   :  { %1688 = vrot.lane.b32.xlu1 %v1684_v41, %s4382_s28 }
 0xdb0   :  { %v1669_v19 = vpop.permute.xlu0 %1668 }
 0xdb1   :  { %v1675_v50 = vmul.f32 %v5302_v20, %v1669_v19  ;;  %v5431_v20 = vsel %vm1546_vm2, %v1673_v11, %v5193_v53 }
 0xdb3   :  { %v5413_v29 = vpop.permute.xlu1 %1544 }
 0xdb4   :  { %vm1548_vm1 = vcmp.eq.s32.totalorder %v5413_v29, 1 }
 0xdb5   :  { %v5419_v3 = vsel %vm1548_vm1, %v1675_v50, %v5216_v62 }
 0xdb6   :  { %v1683_v4 = vpack.c.bf16 %v5419_v3, %v5419_v3 }
 0xdb7   :  { %v1667_v51 = vpop.permute.xlu1 %1666 }
 0xdb8   :  { %v1674_v32 = vmul.f32 %v5297_v54, %v1667_v51  ;;  %1750 = vrot.lane.b32.xlu0 %v1683_v4, %s4382_s28 }
 0xdba   :  { %v5436_v62 = vsel %vm1547_vm4, %v1674_v32, %v5198_v56  ;;  %v3509_v32 = vld [vmem:[%s6212_s20 + $0x80] sm:$0xff] }
 0xdbb   :  { %v1682_v61 = vpack.c.bf16 %v5436_v62, %v5431_v20 }
 0xdbd   :  { %1748 = vrot.lane.b32.xlu1 %v1682_v61, %s4382_s28 }
 0xe1c   :  { %v1691_v39 = vpop.permute.xlu0 %1690 }
 0xe20   :  { %v1689_v54 = vpop.permute.xlu1 %1688 }
 0xe21   :  { %3805 = vmatprep.mubr.msk.bf16.mxu1 %vm115_vm7, %v1689_v54 }
 0xe22   :  { %3806 = vmatmul.mubr.msk.bf16.vlgmr.msra.gmra.mrb[24].mxu1 %vm115_vm7, %v1691_v39  ;;  %v3510_v39 = vld [vmem:[%s6212_s20 + $0x88] sm:$0xff] }
 0xe23   :  { %3818 = vmatpush3.bf16.msra.mxu1 %v5006_v26 }
 0xe24   :  { %3819 = vmatprep.subr.bf16.mxu1 %v5012_v28 }
 0xe27   :  { %3820 = vmatpush3.bf16.msra.mxu1 %v5012_v28 }
 0xe28   :  { %3833 = vmatprep.subr.bf16.mxu1 %v5244_v30 }
 0xe2a   :  { %v1751_v56 = vpop.permute.xlu0 %1750 }
 0xe2f   :  { %v1749_v53 = vpop.permute.xlu1 %1748 }
 0xe30   :  { %3813 = vmatprep.mubr.msk.bf16.mxu0 %vm115_vm7, %v1749_v53  ;;  %3821 = vmatprep.mubr.msk.bf16.mxu1 %vm115_vm7, %v1749_v53 }
 0xe31   :  { %3814 = vmatmul.mubr.msk.bf16.vlgmr.msra.gmra.mrb[28].mxu0 %vm115_vm7, %v1751_v56  ;;  %3822 = vmatmul.mubr.msk.bf16.vlgmr.msra.gmra.mrb[28].mxu1 %vm115_vm7, %v1751_v56 }
 0xe32   :  { %3826 = vmatpush3.bf16.msra.mxu0 %v5231_v63  ;;  %3834 = vmatpush3.bf16.msra.mxu1 %v5244_v30 }
 0xe33   :  { %3827 = vmatprep.subr.bf16.mxu0 %v5238_v23  ;;  %3835 = vmatprep.subr.bf16.mxu1 %v5254_v46 }
 0xe36   :  { %3828 = vmatpush3.bf16.msra.mxu0 %v5238_v23  ;;  %3836 = vmatpush3.bf16.msra.mxu1 %v5254_v46 }
 0xe37   :  { %3841 = vmatprep.subr.bf16.mxu0 %v5006_v26  ;;  %3849 = vmatprep.subr.bf16.mxu1 %v5231_v63  ;;  %v3508_v26 = vld [vmem:[%s6212_s20 + $0x78] sm:$0xff] }
 0xef5   :  { %v3807_v28 = vpop.f32.mrb[24].mxu1 }
 0xef6   :  { %v1732_v34 = vpop.f32.mrb[25].mxu1 }
 0xef7   :  { %v3808_v40 = vpop.f32.mrb[26].mxu1 }
 0xef8   :  { %v1735_v37 = vpop.f32.mrb[27].mxu1 }
 0xf04   :  { %v3815_v21 = vpop.f32.mrb[28].mxu0  ;;  %v3823_v31 = vpop.f32.mrb[28].mxu1 }
 0xf05   :  { %v1801_v57 = vadd.f32 %v3815_v21, %v3807_v28  ;;  %v1792_v7 = vpop.f32.mrb[29].mxu0  ;;  %v1943_v0 = vpop.f32.mrb[29].mxu1  ;;  %v1959_v53 = vadd.f32 %v3823_v31, %v3510_v39 }
 0xf06   :  { %v1793_v38 = vadd.f32 %v1792_v7, %v1732_v34  ;;  %v3816_v35 = vpop.f32.mrb[30].mxu0  ;;  %v3824_v41 = vpop.f32.mrb[30].mxu1  ;;  %v1957_v51 = vadd.f32 %v3508_v26, %v1943_v0 }
 0xf07   :  { %v1795_v60 = vpop.f32.mrb[31].mxu0  ;;  %v1946_v19 = vpop.f32.mrb[31].mxu1  ;;  %v1808_v54 = vadd.f32 %v5262_v12, %v1801_v57  ;;  %v3515_v35 = vmul.f32 -1.442695, %v1959_v53 }
 0xf08   :  { %v1796_v50 = vadd.f32 %v1795_v60, %v1735_v37  ;;  %v1806_v11 = vadd.f32 %v5262_v12, %v1793_v38  ;;  %v1958_v61 = vadd.f32 %v3509_v32, %v1946_v19  ;;  %v3513_v7 = vmul.f32 -1.442695, %v1957_v51 }
 0xf09   :  { %v3507_v38 = vmul.f32 -1.442695, %v1808_v54 }
 0xf0a   :  { %v1807_v4 = vadd.f32 %v5262_v12, %v1796_v50  ;;  %4189 = vtanh.f32 %v1806_v11  ;;  %v3505_v31 = vmul.f32 -1.442695, %v1806_v11  ;;  %v3514_v0 = vmul.f32 -1.442695, %v1958_v61 }
 0xf0c   :  { %4191 = vtanh.f32 %v1807_v4  ;;  %v3506_v57 = vmul.f32 -1.442695, %v1807_v4 }
 0xf0d   :  { %4193 = vtanh.f32 %v1957_v51 }
 0xf0e   :  { %4195 = vtanh.f32 %v1958_v61 }
 0xf0f   :  { %4197 = vtanh.f32 %v1808_v54 }
 0xf10   :  { %4199 = vtanh.f32 %v1959_v53 }
 0xf11   :  { %4201 = vpow2.f32 %v3505_v31 }
 0xf12   :  { %4203 = vpow2.f32 %v3506_v57 }
 0xf13   :  { %4205 = vpow2.f32 %v3513_v7 }
 0xf14   :  { %v4190_v56 = vpop.eup %4189  ;;  %4207 = vpow2.f32 %v3514_v0 }
 0xf15   :  { %1836 = vrot.lane.b32.xlu1 %v4190_v56, %s4381_s30  ;;  %4209 = vpow2.f32 %v3507_v38 }
 0xf16   :  { %v4192_v28 = vpop.eup %4191  ;;  %4211 = vpow2.f32 %v3515_v35 }
 0xf17   :  { %v4194_v34 = vpop.eup %4193  ;;  %1838 = vrot.lane.b32.xlu0 %v4192_v28, %s4381_s30 }
 0xf18   :  { %v4196_v40 = vpop.eup %4195 }
 0xf19   :  { %1987 = vrot.lane.b32.xlu1 %v4194_v34, %s4381_s30  ;;  %v4198_v37 = vpop.eup %4197 }
 0xf1a   :  { %v4200_v21 = vpop.eup %4199 }
 0xf1b   :  { %1989 = vrot.lane.b32.xlu0 %v4196_v40, %s4381_s30  ;;  %v4202_v41 = vpop.eup %4201 }
 0xf1c   :  { %v4204_v60 = vpop.eup %4203  ;;  %v1818_v19 = vadd.f32 1.0, %v4202_v41 }
 0xf1d   :  { %1840 = vrot.lane.b32.xlu1 %v4198_v37, %s4381_s30  ;;  %v4206_v50 = vpop.eup %4205  ;;  %v1819_v26 = vadd.f32 1.0, %v4204_v60 }
 0xf1e   :  { %v4208_v32 = vpop.eup %4207  ;;  %4213 = vrcp.f32 %v1818_v19  ;;  %v1969_v39 = vadd.f32 1.0, %v4206_v50 }
 0xf1f   :  { %1991 = vrot.lane.b32.xlu0 %v4200_v21, %s4381_s30  ;;  %v4210_v11 = vpop.eup %4209  ;;  %4215 = vrcp.f32 %v1819_v26  ;;  %v1970_v4 = vadd.f32 1.0, %v4208_v32  ;;  %v1890_v32 = vsel %vm1887_vm5, 1, %v4379_v1 }
 0xf20   :  { %v4212_v51 = vpop.eup %4211  ;;  %v1820_v56 = vadd.f32 1.0, %v4210_v11  ;;  %4217 = vrcp.f32 %v1969_v39  ;;  %v1892_v39 = vsel %vm1889_vm8, 1, %v4379_v1  ;;  %v5511_v11 = vsel %vm1190_vm10, %v5339_v17, %v5330_v52 }
 0xf21   :  { %v1971_v61 = vadd.f32 1.0, %v4212_v51  ;;  %4219 = vrcp.f32 %v1970_v4  ;;  %v5521_v51 = vsel %vm1191_vm11, %v5332_v43, %v5314_v27  ;;  %v5542_v43 = vsel %vm1547_vm4, %v5361_v59, %v5352_v9 }
 0xf22   :  { %4221 = vrcp.f32 %v1820_v56 }
 0xf23   :  { %4223 = vrcp.f32 %v1971_v61 }
 0xf28   :  { %v5477_v54 = vpop.eup %4213 }
 0xf29   :  { %v5480_v34 = vpop.eup %4215  ;;  %v1830_v6 = vmul.f32 %v5477_v54, %v5511_v11 }
 0xf2a   :  { %v5483_v37 = vpop.eup %4217  ;;  %v1831_v56 = vmul.f32 %v5480_v34, %v5521_v51 }
 0xf2b   :  { %v5488_v7 = vpop.eup %4219  ;;  %v1981_v17 = vmul.f32 %v5483_v37, %v5529_v8 }
 0xf2c   :  { %v5491_v38 = vpop.eup %4221  ;;  %v1982_v2 = vmul.f32 %v5488_v7, %v5542_v43 }
 0xf2d   :  { %v5497_v19 = vpop.eup %4223 }
 0xf87   :  { %v1837_v53 = vpop.permute.xlu1 %1836 }
 0xf88   :  { %v1845_v28 = vmul.f32 %v5477_v54, %v1837_v53 }
 0xf89   :  { %v1839_v40 = vpop.permute.xlu0 %1838 }
 0xf8a   :  { %1851 = vrot.lane.b32.xlu1 %v1845_v28, %s4381_s30  ;;  %v1846_v21 = vmul.f32 %v5480_v34, %v1839_v40  ;;  %v1832_v28 = vmul.f32 %v5491_v38, %v5551_v33 }
 0xf8b   :  { %v1988_v31 = vpop.permute.xlu1 %1987 }
 0xf8c   :  { %v1996_v57 = vmul.f32 %v5483_v37, %v1988_v31  ;;  %1853 = vrot.lane.b32.xlu0 %v1846_v21, %s4381_s30  ;;  %v5564_v21 = vsel %vm1548_vm1, %v5373_v47, %v5367_v13 }
 0xf8d   :  { %v1990_v0 = vpop.permute.xlu0 %1989  ;;  %v1983_v42 = vmul.f32 %v5497_v19, %v5564_v21 }
 0xf8e   :  { %2002 = vrot.lane.b32.xlu1 %v1996_v57, %s4381_s30  ;;  %v1997_v35 = vmul.f32 %v5488_v7, %v1990_v0 }
 0xf8f   :  { %v1841_v41 = vpop.permute.xlu1 %1840 }
 0xf90   :  { %v1847_v60 = vmul.f32 %v5491_v38, %v1841_v41  ;;  %2004 = vrot.lane.b32.xlu0 %v1997_v35, %s4381_s30 }
 0xf91   :  { %v1992_v50 = vpop.permute.xlu0 %1991 }
 0xf92   :  { %1855 = vrot.lane.b32.xlu1 %v1847_v60, %s4381_s30  ;;  %v1998_v26 = vmul.f32 %v5497_v19, %v1992_v50 }
 0xf94   :  { %2006 = vrot.lane.b32.xlu0 %v1998_v26, %s4381_s30 }
 0xf96   :  { %1894 = vperm.xlu1 %3947, %v1890_v32  }
 0xf98   :  { %1897 = vperm.xlu0 %3946, %v1891_v45  }
 0xf9a   :  { %1900 = vperm.xlu1 %3947, %v1892_v39  }
 0xffc   :  { %v1852_v4 = vpop.permute.xlu1 %1851 }
 0xffd   :  { %v5515_v10 = vadd.f32 %v1852_v4, %v1830_v6 }
 0xffe   :  { %v1854_v52 = vpop.permute.xlu0 %1853 }
 0xfff   :  { %4225 = vtanh.f32 %v5515_v10  ;;  %v5534_v61 = vadd.f32 %v1854_v52, %v1831_v56  ;;  %v5740_v49 = vsel %vm1546_vm2, %v5515_v10, %v5511_v11 }
0x1000   :  { %v2003_v5 = vpop.permute.xlu1 %2002 }
0x1001   :  { %v5536_v27 = vadd.f32 %v2003_v5, %v1981_v17  ;;  %4227 = vtanh.f32 %v5534_v61 }
0x1002   :  { %v2005_v53 = vpop.permute.xlu0 %2004 }
0x1003   :  { %4229 = vtanh.f32 %v5536_v27  ;;  %v5556_v40 = vadd.f32 %v2005_v53, %v1982_v2 }
0x1004   :  { %v1856_v9 = vpop.permute.xlu1 %1855 }
0x1005   :  { %v5558_v59 = vadd.f32 %v1856_v9, %v1832_v28  ;;  %4231 = vtanh.f32 %v5556_v40 }
0x1006   :  { %v2007_v24 = vpop.permute.xlu0 %2006 }
0x1007   :  { %4233 = vtanh.f32 %v5558_v59  ;;  %v5570_v25 = vadd.f32 %v2007_v24, %v1983_v42  ;;  %v5649_v24 = vld [vmem:[%s6211_s29 + $0x8] sm:$0xff]  }
0x1009   :  { %v4226_v31 = vpop.eup %4225  ;;  %4235 = vtanh.f32 %v5570_v25 }
0x100a   :  { %1869 = vrot.lane.b32.xlu0 %v4226_v31, %s4381_s30 }
0x100b   :  { %v4228_v57 = vpop.eup %4227 }
0x100c   :  { %1871 = vrot.lane.b32.xlu1 %v4228_v57, %s4381_s30 }
0x100d   :  { %v4230_v0 = vpop.eup %4229 }
0x100e   :  { %2020 = vrot.lane.b32.xlu0 %v4230_v0, %s4381_s30 }
0x100f   :  { %v4232_v13 = vpop.eup %4231 }
0x1010   :  { %2022 = vrot.lane.b32.xlu1 %v4232_v13, %s4381_s30 }
0x1011   :  { %v4234_v47 = vpop.eup %4233 }
0x1012   :  { %1873 = vrot.lane.b32.xlu0 %v4234_v47, %s4381_s30 }
0x1013   :  { %v4236_v35 = vpop.eup %4235 }
0x1014   :  { %2024 = vrot.lane.b32.xlu1 %v4236_v35, %s4381_s30 }
0x1015   :  { %v5579_v41 = vpop.permute.xlu1 %1894 }
0x1016   :  { %vm1902_vm9 = vcmp.eq.s32.totalorder %v5579_v41, 1 }
0x1017   :  { %v5581_v60 = vpop.permute.xlu0 %1897  ;;  %v5756_v44 = vsel %vm1902_vm9, %v5536_v27, %v5529_v8 }
0x1018   :  { %vm1903_vm10 = vcmp.eq.s32.totalorder %v5581_v60, 1 }
0x1019   :  { %v5583_v50 = vpop.permute.xlu1 %1900  ;;  %v5762_v10 = vsel %vm1903_vm10, %v5556_v40, %v5542_v43 }
0x101a   :  { %vm1904_vm11 = vcmp.eq.s32.totalorder %v5583_v50, 1 }
0x101b   :  { %v5777_v27 = vsel %vm1904_vm11, %v5570_v25, %v5564_v21 }
0x107c   :  { %v1870_v26 = vpop.permute.xlu0 %1869 }
0x107d   :  { %v1878_v32 = vmul.f32 %v5477_v54, %v1870_v26 }
0x107e   :  { %v1872_v45 = vpop.permute.xlu1 %1871 }
0x107f   :  { %v1879_v39 = vmul.f32 %v5480_v34, %v1872_v45  ;;  %v5590_v4 = vsel %vm1546_vm2, %v1878_v32, %v5407_v48 }
0x1080   :  { %v2021_v6 = vpop.permute.xlu0 %2020 }
0x1081   :  { %v5595_v56 = vsel %vm1547_vm4, %v1879_v39, %v5402_v58  ;;  %v2029_v52 = vmul.f32 %v5483_v37, %v2021_v6 }
0x1082   :  { %v2040_v17 = vpack.c.bf16 %v5595_v56, %v5590_v4  ;;  %v2023_v54 = vpop.permute.xlu1 %2022 }
0x1083   :  { %v2030_v5 = vmul.f32 %v5488_v7, %v2023_v54  ;;  %v5608_v58 = vsel %vm1902_vm9, %v2029_v52, %v5431_v20 }
0x1084   :  { %v1874_v34 = vpop.permute.xlu0 %1873  ;;  %2044 = vrot.lane.b32.xlu0 %v2040_v17, %s4382_s28  ;;  %v3523_v17 = vld [vmem:[%s6212_s20 + $0x90] sm:$0xff] }
0x1085   :  { %v1880_v48 = vmul.f32 %v5491_v38, %v1874_v34  ;;  %v5613_v37 = vsel %vm1903_vm10, %v2030_v5, %v5436_v62  ;;  %v3524_v34 = vld [vmem:[%s6212_s20 + $0x98] sm:$0xff] }
0x1086   :  { %v2038_v7 = vpack.c.bf16 %v5613_v37, %v5608_v58  ;;  %v2025_v53 = vpop.permute.xlu1 %2024 }
0x1087   :  { %v5620_v2 = vsel %vm1548_vm1, %v1880_v48, %v5393_v14  ;;  %v2031_v20 = vmul.f32 %v5497_v19, %v2025_v53 }
0x1088   :  { %v2041_v38 = vpack.c.bf16 %v5620_v2, %v5620_v2  ;;  %2104 = vrot.lane.b32.xlu1 %v2038_v7, %s4382_s28  ;;  %v3525_v7 = vld [vmem:[%s6212_s20 + $0xa0] sm:$0xff] }
0x1089   :  { %v5630_v62 = vsel %vm1904_vm11, %v2031_v20, %v5419_v3  ;;  %v5642_v3 = vld [vmem:[%s6211_s29] sm:$0xff]  }
0x108a   :  { %2046 = vrot.lane.b32.xlu0 %v2041_v38, %s4382_s28  ;;  %v2039_v14 = vpack.c.bf16 %v5630_v62, %v5630_v62 }
0x108c   :  { %2106 = vrot.lane.b32.xlu1 %v2039_v14, %s4382_s28 }
0x10f6   :  { %v2045_v28 = vpop.permute.xlu0 %2044 }
0x10f7   :  { %3829 = vmatprep.mubr.msk.bf16.mxu0 %vm115_vm7, %v2045_v28 }
0x10fa   :  { %v2105_v19 = vpop.permute.xlu1 %2104 }
0x10fb   :  { %3837 = vmatprep.mubr.msk.bf16.mxu1 %vm115_vm7, %v2105_v19 }
0x10fc   :  { %v2047_v9 = vpop.permute.xlu0 %2046 }
0x10fd   :  { %3830 = vmatmul.mubr.msk.bf16.vlgmr.msra.gmra.mrb[32].mxu0 %vm115_vm7, %v2047_v9 }
0x10fe   :  { %3842 = vmatpush3.bf16.msra.mxu0 %v5642_v3  ;;  %3845 = vmatprep.mubr.msk.bf16.mxu0 %vm115_vm7, %v2105_v19  ;;  %v2107_v42 = vpop.permute.xlu1 %2106 }
0x10ff   :  { %3843 = vmatprep.subr.bf16.mxu0 %v5649_v24  ;;  %3838 = vmatmul.mubr.msk.bf16.vlgmr.msra.gmra.mrb[32].mxu1 %vm115_vm7, %v2107_v42 }
0x1100   :  { %3850 = vmatpush3.bf16.msra.mxu1 %v5231_v63 }
0x1101   :  { %3851 = vmatprep.subr.bf16.mxu1 %v5238_v23 }
0x1102   :  { %3844 = vmatpush3.bf16.msra.mxu0 %v5649_v24 }
0x1103   :  { %3857 = vmatprep.subr.bf16.mxu0 %v5244_v30 }
0x1104   :  { %3852 = vmatpush3.bf16.msra.mxu1 %v5238_v23 }
0x1105   :  { %3846 = vmatmul.mubr.msk.bf16.vlgmr.msra.gmra.mrb[36].mxu0 %vm115_vm7, %v2107_v42  ;;  %3865 = vmatprep.subr.bf16.mxu1 %v5642_v3 }
0x1106   :  { %3858 = vmatpush3.bf16.msra.mxu0 %v5244_v30 }
0x1107   :  { %3859 = vmatprep.subr.bf16.mxu0 %v5254_v46 }
0x110a   :  { %3860 = vmatpush3.bf16.msra.mxu0 %v5254_v46 }
0x110b   :  { %3873 = vmatprep.subr.bf16.mxu0 %v5231_v63 }
0x11d0   :  { %v3831_v31 = vpop.f32.mrb[32].mxu0 }
0x11d1   :  { %v2088_v57 = vpop.f32.mrb[33].mxu0 }
0x11d2   :  { %v3832_v0 = vpop.f32.mrb[34].mxu0  ;;  %v3839_v13 = vpop.f32.mrb[32].mxu1 }
0x11d3   :  { %v2091_v47 = vpop.f32.mrb[35].mxu0  ;;  %v2157_v35 = vadd.f32 %v3839_v13, %v3831_v31  ;;  %v2148_v26 = vpop.f32.mrb[33].mxu1 }
0x11d4   :  { %v2149_v32 = vadd.f32 %v2148_v26, %v2088_v57  ;;  %v3840_v45 = vpop.f32.mrb[34].mxu1 }
0x11d5   :  { %v2151_v23 = vpop.f32.mrb[35].mxu1  ;;  %v2164_v52 = vadd.f32 %v5262_v12, %v2157_v35 }
0x11d6   :  { %v2162_v30 = vadd.f32 %v5262_v12, %v2149_v32  ;;  %v2152_v39 = vadd.f32 %v2151_v23, %v2091_v47 }
0x11d7   :  { %v3522_v57 = vmul.f32 -1.442695, %v2164_v52 }
0x11d8   :  { %v3847_v6 = vpop.f32.mrb[36].mxu0  ;;  %4237 = vtanh.f32 %v2162_v30  ;;  %v2163_v46 = vadd.f32 %v5262_v12, %v2152_v39  ;;  %v3520_v42 = vmul.f32 -1.442695, %v2162_v30 }
0x11d9   :  { %v2299_v63 = vpop.f32.mrb[37].mxu0  ;;  %v2315_v12 = vadd.f32 %v3847_v6, %v3525_v7 }
0x11da   :  { %v3848_v54 = vpop.f32.mrb[38].mxu0  ;;  %4239 = vtanh.f32 %v2163_v46  ;;  %v2313_v48 = vadd.f32 %v3523_v17, %v2299_v63  ;;  %v3521_v31 = vmul.f32 -1.442695, %v2163_v46 }
0x11db   :  { %v2302_v5 = vpop.f32.mrb[39].mxu0  ;;  %4241 = vtanh.f32 %v2164_v52  ;;  %v3530_v47 = vmul.f32 -1.442695, %v2315_v12 }
0x11dc   :  { %v2314_v53 = vadd.f32 %v3524_v34, %v2302_v5  ;;  %4243 = vtanh.f32 %v2313_v48  ;;  %v3528_v0 = vmul.f32 -1.442695, %v2313_v48 }
0x11de   :  { %4245 = vtanh.f32 %v2314_v53  ;;  %v3529_v13 = vmul.f32 -1.442695, %v2314_v53 }
0x11df   :  { %4247 = vtanh.f32 %v2315_v12 }
0x11e0   :  { %4249 = vpow2.f32 %v3520_v42 }
0x11e1   :  { %4251 = vpow2.f32 %v3521_v31 }
0x11e2   :  { %v4238_v38 = vpop.eup %4237  ;;  %4253 = vpow2.f32 %v3522_v57  ;;  %v5704_v57 = vld [vmem:[%s6213_s26] sm:$0xff] }
0x11e3   :  { %2192 = vrot.lane.b32.xlu0 %v4238_v38, %s4381_s30  ;;  %4255 = vpow2.f32 %v3528_v0  ;;  %vm2243_vm12 = vcmp.gt.f32.partialorder %v5704_v57, 6.0 }
0x11e4   :  { %v4240_v20 = vpop.eup %4239  ;;  %4257 = vpow2.f32 %v3529_v13 }
0x11e5   :  { %v4242_v14 = vpop.eup %4241  ;;  %2194 = vrot.lane.b32.xlu1 %v4240_v20, %s4381_s30  ;;  %4259 = vpow2.f32 %v3530_v47 }
0x11e6   :  { %v4244_v28 = vpop.eup %4243 }
0x11e7   :  { %2196 = vrot.lane.b32.xlu0 %v4242_v14, %s4381_s30 }
0x11e8   :  { %v4246_v19 = vpop.eup %4245 }
0x11e9   :  { %2343 = vrot.lane.b32.xlu1 %v4244_v28, %s4381_s30  ;;  %v4248_v9 = vpop.eup %4247 }
0x11ea   :  { %v4250_v35 = vpop.eup %4249 }
0x11eb   :  { %2345 = vrot.lane.b32.xlu0 %v4246_v19, %s4381_s30  ;;  %v4252_v26 = vpop.eup %4251  ;;  %v2174_v32 = vadd.f32 1.0, %v4250_v35  ;;  %v5714_v35 = vld [vmem:[%s6213_s26 + $0x8] sm:$0xff] }
0x11ec   :  { %v4254_v45 = vpop.eup %4253  ;;  %v2175_v23 = vadd.f32 1.0, %v4252_v26  ;;  %vm2244_vm13 = vcmp.gt.f32.partialorder %v5714_v35, 6.0  ;;  %v2246_v26 = vsel %vm2243_vm12, 1, %v4379_v1  ;;  %vm2600_vm5 = vcmp.gt.f32.partialorder %v5714_v35, 7.0 }
0x11ed   :  { %2347 = vrot.lane.b32.xlu1 %v4248_v9, %s4381_s30  ;;  %v2176_v39 = vadd.f32 1.0, %v4254_v45  ;;  %4261 = vrcp.f32 %v2174_v32  ;;  %v4256_v6 = vpop.eup %4255  ;;  %v2247_v32 = vsel %vm2244_vm13, 1, %v4379_v1 }
0x11ee   :  { %v4258_v30 = vpop.eup %4257  ;;  %4263 = vrcp.f32 %v2175_v23  ;;  %v2325_v52 = vadd.f32 1.0, %v4256_v6  ;;  %v5724_v23 = vsel %vm1547_vm4, %v5534_v61, %v5521_v51  ;;  %v5732_v6 = vsel %vm1548_vm1, %v5558_v59, %v5551_v33 }
0x11ef   :  { %4265 = vrcp.f32 %v2176_v39  ;;  %v4260_v46 = vpop.eup %4259  ;;  %v2326_v63 = vadd.f32 1.0, %v4258_v30  ;;  %vm2599_vm4 = vcmp.gt.f32.partialorder %v5704_v57, 7.0  ;;  %v2603_v57 = vsel %vm2600_vm5, 1, %v4379_v1 }
0x11f0   :  { %v2327_v17 = vadd.f32 1.0, %v4260_v46  ;;  %4267 = vrcp.f32 %v2325_v52 }
0x11f1   :  { %4269 = vrcp.f32 %v2326_v63 }
0x11f2   :  { %4271 = vrcp.f32 %v2327_v17 }
0x11f7   :  { %v5682_v54 = vpop.eup %4261 }
0x11f8   :  { %v5685_v48 = vpop.eup %4263  ;;  %v2186_v46 = vmul.f32 %v5682_v54, %v5740_v49 }
0x11f9   :  { %v5688_v53 = vpop.eup %4265  ;;  %v2187_v39 = vmul.f32 %v5685_v48, %v5724_v23 }
0x11fa   :  { %v5694_v14 = vpop.eup %4267  ;;  %v2188_v52 = vmul.f32 %v5688_v53, %v5732_v6 }
0x11fb   :  { %v5697_v9 = vpop.eup %4269  ;;  %v2337_v33 = vmul.f32 %v5694_v14, %v5756_v44 }
0x11fc   :  { %v5707_v0 = vpop.eup %4271  ;;  %v2338_v59 = vmul.f32 %v5697_v9, %v5762_v10 }
0x11fd   :  { %v2339_v40 = vmul.f32 %v5707_v0, %v5777_v27 }
0x1255   :  { %v2193_v5 = vpop.permute.xlu0 %2192 }
0x1256   :  { %v2201_v34 = vmul.f32 %v5682_v54, %v2193_v5 }
0x1257   :  { %v2195_v7 = vpop.permute.xlu1 %2194 }
0x1258   :  { %2207 = vrot.lane.b32.xlu0 %v2201_v34, %s4381_s30  ;;  %v2202_v12 = vmul.f32 %v5685_v48, %v2195_v7  ;;  %v5788_v7 = vld [vmem:[%s6213_s26 + $0x10] sm:$0xff] }
0x1259   :  { %v2197_v38 = vpop.permute.xlu0 %2196  ;;  %vm2245_vm14 = vcmp.gt.f32.partialorder %v5788_v7, 6.0  ;;  %vm2601_vm6 = vcmp.gt.f32.partialorder %v5788_v7, 7.0 }
0x125a   :  { %v2203_v20 = vmul.f32 %v5688_v53, %v2197_v38  ;;  %2209 = vrot.lane.b32.xlu1 %v2202_v12, %s4381_s30  ;;  %v2248_v25 = vsel %vm2245_vm14, 1, %v4379_v1 }
0x125b   :  { %v2344_v28 = vpop.permute.xlu1 %2343 }
0x125c   :  { %2211 = vrot.lane.b32.xlu0 %v2203_v20, %s4381_s30  ;;  %v2352_v19 = vmul.f32 %v5694_v14, %v2344_v28 }
0x125d   :  { %v2346_v42 = vpop.permute.xlu0 %2345 }
0x125e   :  { %v2353_v31 = vmul.f32 %v5697_v9, %v2346_v42  ;;  %2358 = vrot.lane.b32.xlu1 %v2352_v19, %s4381_s30 }
0x125f   :  { %v2348_v13 = vpop.permute.xlu1 %2347 }
0x1260   :  { %v2354_v47 = vmul.f32 %v5707_v0, %v2348_v13  ;;  %2360 = vrot.lane.b32.xlu0 %v2353_v31, %s4381_s30 }
0x1262   :  { %2362 = vrot.lane.b32.xlu1 %v2354_v47, %s4381_s30 }
0x1264   :  { %2250 = vperm.xlu0 %3946, %v2246_v26  }
0x1266   :  { %2253 = vperm.xlu1 %3947, %v2247_v32  }
0x12ca   :  { %v2208_v45 = vpop.permute.xlu0 %2207 }
0x12cb   :  { %v5749_v29 = vadd.f32 %v2208_v45, %v2186_v46 }
0x12cc   :  { %v2210_v30 = vpop.permute.xlu1 %2209 }
0x12cd   :  { %v5742_v51 = vadd.f32 %v2210_v30, %v2187_v39 }
0x12ce   :  { %v2212_v61 = vpop.permute.xlu0 %2211 }
0x12cf   :  { %v5746_v63 = vadd.f32 %v2212_v61, %v2188_v52  ;;  %4273 = vtanh.f32 %v5742_v51 }
0x12d0   :  { %v2359_v11 = vpop.permute.xlu1 %2358 }
0x12d1   :  { %4275 = vtanh.f32 %v5746_v63  ;;  %v5769_v5 = vadd.f32 %v2359_v11, %v2337_v33 }
0x12d2   :  { %v2361_v17 = vpop.permute.xlu0 %2360  ;;  %4277 = vtanh.f32 %v5749_v29 }
0x12d3   :  { %v5771_v8 = vadd.f32 %v2361_v17, %v2338_v59 }
0x12d4   :  { %v2363_v43 = vpop.permute.xlu1 %2362 }
0x12d5   :  { %4279 = vtanh.f32 %v5771_v8  ;;  %v5783_v34 = vadd.f32 %v2363_v43, %v2339_v40 }
0x12d6   :  { %4281 = vtanh.f32 %v5769_v5 }
0x12d7   :  { %4283 = vtanh.f32 %v5783_v34 }
0x12d9   :  { %v4274_v12 = vpop.eup %4273 }
0x12da   :  { %2227 = vrot.lane.b32.xlu1 %v4274_v12, %s4381_s30  ;;  %v4377_v12 = vld [vmem:[%s6190_s4 + $0x8] sm:$0xff]  }
0x12db   :  { %v4276_v21 = vpop.eup %4275 }
0x12dc   :  { %2229 = vrot.lane.b32.xlu0 %v4276_v21, %s4381_s30  ;;  %v4278_v38 = vpop.eup %4277 }
0x12de   :  { %2256 = vperm.xlu1 %3947, %v2248_v25  }
0x12df   :  { %v4280_v20 = vpop.eup %4279 }
0x12e0   :  { %2225 = vrot.lane.b32.xlu0 %v4278_v38, %s4381_s30  ;;  %v4282_v28 = vpop.eup %4281 }
0x12e1   :  { %v4284_v19 = vpop.eup %4283 }
0x12e2   :  { %2378 = vrot.lane.b32.xlu1 %v4280_v20, %s4381_s30 }
0x12e3   :  { %v5799_v42 = vpop.permute.xlu0 %2250 }
0x12e4   :  { %2376 = vrot.lane.b32.xlu0 %v4282_v28, %s4381_s30  ;;  %vm2258_vm1 = vcmp.eq.s32.totalorder %v5799_v42, 1 }
0x12e5   :  { %v5801_v31 = vpop.permute.xlu1 %2253  ;;  %v2391_v41 = vsel %vm2258_vm1, %v5769_v5, %v5756_v44 }
0x12e6   :  { %vm2259_vm2 = vcmp.eq.s32.totalorder %v5801_v31, 1 }
0x12e7   :  { %v2392_v60 = vsel %vm2259_vm2, %v5771_v8, %v5762_v10 }
0x12e8   :  { %2380 = vrot.lane.b32.xlu0 %v4284_v19, %s4381_s30 }
0x134c   :  { %v2228_v13 = vpop.permute.xlu1 %2227 }
0x134d   :  { %v2235_v32 = vmul.f32 %v5685_v48, %v2228_v13 }
0x134e   :  { %v2230_v47 = vpop.permute.xlu0 %2229 }
0x134f   :  { %v2236_v26 = vmul.f32 %v5688_v53, %v2230_v47  ;;  %v5817_v61 = vsel %vm1903_vm10, %v2235_v32, %v5595_v56 }
0x1351   :  { %v5808_v45 = vsel %vm1904_vm11, %v2236_v26, %v5620_v2 }
0x1352   :  { %v2397_v39 = vpack.c.bf16 %v5808_v45, %v5808_v45  ;;  %v2226_v30 = vpop.permute.xlu0 %2225 }
0x1353   :  { %v2234_v52 = vmul.f32 %v5682_v54, %v2226_v30 }
0x1354   :  { %2402 = vrot.lane.b32.xlu0 %v2397_v39, %s4382_s28 }
0x1355   :  { %v5822_v48 = vsel %vm1902_vm9, %v2234_v52, %v5590_v4 }
0x1356   :  { %v2396_v2 = vpack.c.bf16 %v5817_v61, %v5822_v48  ;;  %v2377_v53 = vpop.permute.xlu0 %2376 }
0x1357   :  { %v2385_v4 = vmul.f32 %v5694_v14, %v2377_v53 }
0x1358   :  { %2400 = vrot.lane.b32.xlu1 %v2396_v2, %s4382_s28 }
0x135a   :  { %v2381_v46 = vpop.permute.xlu0 %2380 }
0x135b   :  { %v2387_v54 = vmul.f32 %v5707_v0, %v2381_v46  ;;  %v5846_v0 = vsel %vm2258_vm1, %v2385_v4, %v5608_v58  ;;  %v4374_v58 = vld [vmem:[%s6190_s4] sm:$0xff]   ;;  %v3538_v4 = vld [vmem:[%s6212_s20 + $0xa8] sm:$0xff] }
0x135c   :  { %v5882_v46 = vld [vmem:[%s6191_s6] ss:$0 sm:$0xff] }
0x135d   :  { %v5828_v11 = vpop.permute.xlu1 %2256 }
0x135e   :  { %vm2260_vm15 = vcmp.eq.s32.totalorder %v5828_v11, 1 }
0x135f   :  { %v5834_v56 = vsel %vm2260_vm15, %v2387_v54, %v5630_v62  ;;  %v2393_v10 = vsel %vm2260_vm15, %v5783_v34, %v5777_v27 }
0x1360   :  { %v2395_v33 = vpack.c.bf16 %v5834_v56, %v5834_v56 }
0x1361   :  { %v2379_v59 = vpop.permute.xlu1 %2378 }
0x1362   :  { %v2386_v17 = vmul.f32 %v5697_v9, %v2379_v59  ;;  %2462 = vrot.lane.b32.xlu0 %v2395_v33, %s4382_s28 }
0x1364   :  { %v5851_v62 = vsel %vm2259_vm2, %v2386_v17, %v5613_v37  ;;  %v3539_v17 = vld [vmem:[%s6212_s20 + $0xb0] sm:$0xff] }
0x1365   :  { %v2394_v14 = vpack.c.bf16 %v5851_v62, %v5846_v0 }
0x1367   :  { %2460 = vrot.lane.b32.xlu1 %v2394_v14, %s4382_s28 }
0x13c6   :  { %v2403_v43 = vpop.permute.xlu0 %2402 }
0x13ca   :  { %v2401_v9 = vpop.permute.xlu1 %2400 }
0x13cb   :  { %3853 = vmatprep.mubr.msk.bf16.mxu1 %vm115_vm7, %v2401_v9 }
0x13cc   :  { %3854 = vmatmul.mubr.msk.bf16.vlgmr.msra.gmra.mrb[36].mxu1 %vm115_vm7, %v2403_v43  ;;  %v3540_v43 = vld [vmem:[%s6212_s20 + $0xb8] sm:$0xff] }
0x13cd   :  { %3866 = vmatpush3.bf16.msra.mxu1 %v5642_v3  ;;  %v4375_v3 = vld [vmem:[%s6189_s5] sm:$0xff]  }
0x13ce   :  { %3867 = vmatprep.subr.bf16.mxu1 %v5649_v24 }
0x13d1   :  { %3868 = vmatpush3.bf16.msra.mxu1 %v5649_v24  ;;  %v4376_v24 = vld [vmem:[%s6189_s5 + $0x8] sm:$0xff]  }
0x13d2   :  { %3881 = vmatprep.subr.bf16.mxu1 %v4374_v58 }
0x13d4   :  { %v2463_v40 = vpop.permute.xlu0 %2462 }
0x13d9   :  { %v2461_v37 = vpop.permute.xlu1 %2460 }
0x13da   :  { %3861 = vmatprep.mubr.msk.bf16.mxu0 %vm115_vm7, %v2461_v37  ;;  %3869 = vmatprep.mubr.msk.bf16.mxu1 %vm115_vm7, %v2461_v37 }
0x13db   :  { %3862 = vmatmul.mubr.msk.bf16.vlgmr.msra.gmra.mrb[40].mxu0 %vm115_vm7, %v2463_v40  ;;  %3870 = vmatmul.mubr.msk.bf16.vlgmr.msra.gmra.mrb[40].mxu1 %vm115_vm7, %v2463_v40 }
0x13dc   :  { %3874 = vmatpush3.bf16.msra.mxu0 %v4375_v3  ;;  %3882 = vmatpush3.bf16.msra.mxu1 %v4374_v58 }
0x13dd   :  { %3875 = vmatprep.subr.bf16.mxu0 %v4376_v24  ;;  %3883 = vmatprep.subr.bf16.mxu1 %v4377_v12 }
0x13e0   :  { %3876 = vmatpush3.bf16.msra.mxu0 %v4376_v24  ;;  %3884 = vmatpush3.bf16.msra.mxu1 %v4377_v12 }
0x13e1   :  { %3897 = vmatprep.subr.bf16.mxu1 %v4380_v15  ;;  %3889 = vmatprep.subr.bf16.mxu0 %v4380_v15 }
0x149f   :  { %v3855_v21 = vpop.f32.mrb[36].mxu1 }
0x14a0   :  { %v2444_v25 = vpop.f32.mrb[37].mxu1 }
0x14a1   :  { %v3856_v38 = vpop.f32.mrb[38].mxu1 }
0x14a2   :  { %v2447_v20 = vpop.f32.mrb[39].mxu1 }
0x14ae   :  { %v3863_v28 = vpop.f32.mrb[40].mxu0  ;;  %v3871_v19 = vpop.f32.mrb[40].mxu1 }
0x14af   :  { %v2513_v13 = vadd.f32 %v3863_v28, %v3855_v21  ;;  %v2504_v47 = vpop.f32.mrb[41].mxu0  ;;  %v2655_v26 = vpop.f32.mrb[41].mxu1  ;;  %v2671_v58 = vadd.f32 %v3871_v19, %v3540_v43 }
0x14b0   :  { %v2505_v32 = vadd.f32 %v2504_v47, %v2444_v25  ;;  %v3864_v39 = vpop.f32.mrb[42].mxu0  ;;  %v3872_v30 = vpop.f32.mrb[42].mxu1  ;;  %v2669_v59 = vadd.f32 %v3538_v4, %v2655_v26 }
0x14b1   :  { %v2507_v52 = vpop.f32.mrb[43].mxu0  ;;  %v2658_v2 = vpop.f32.mrb[43].mxu1  ;;  %v2520_v9 = vadd.f32 %v5882_v46, %v2513_v13  ;;  %v3545_v13 = vmul.f32 -1.442695, %v2671_v58 }
0x14b2   :  { %v2508_v53 = vadd.f32 %v2507_v52, %v2447_v20  ;;  %v2518_v54 = vadd.f32 %v5882_v46, %v2505_v32  ;;  %v2670_v14 = vadd.f32 %v3539_v17, %v2658_v2  ;;  %v3543_v20 = vmul.f32 -1.442695, %v2669_v59 }
0x14b3   :  { %v3537_v19 = vmul.f32 -1.442695, %v2520_v9 }
0x14b4   :  { %v2519_v33 = vadd.f32 %v5882_v46, %v2508_v53  ;;  %4285 = vtanh.f32 %v2518_v54  ;;  %v3535_v25 = vmul.f32 -1.442695, %v2518_v54  ;;  %v3544_v28 = vmul.f32 -1.442695, %v2670_v14 }
0x14b6   :  { %4287 = vtanh.f32 %v2519_v33  ;;  %v3536_v38 = vmul.f32 -1.442695, %v2519_v33 }
0x14b7   :  { %4289 = vtanh.f32 %v2669_v59 }
0x14b8   :  { %4291 = vtanh.f32 %v2670_v14 }
0x14b9   :  { %4293 = vtanh.f32 %v2520_v9 }
0x14ba   :  { %4295 = vtanh.f32 %v2671_v58 }
0x14bb   :  { %4297 = vpow2.f32 %v3535_v25 }
0x14bc   :  { %4299 = vpow2.f32 %v3536_v38 }
0x14bd   :  { %4301 = vpow2.f32 %v3543_v20 }
0x14be   :  { %v4286_v37 = vpop.eup %4285  ;;  %4303 = vpow2.f32 %v3544_v28 }
0x14bf   :  { %2548 = vrot.lane.b32.xlu1 %v4286_v37, %s4381_s30  ;;  %4305 = vpow2.f32 %v3537_v19 }
0x14c0   :  { %v4288_v40 = vpop.eup %4287  ;;  %4307 = vpow2.f32 %v3545_v13 }
0x14c1   :  { %v4290_v3 = vpop.eup %4289  ;;  %2550 = vrot.lane.b32.xlu0 %v4288_v40, %s4381_s30 }
0x14c2   :  { %v4292_v24 = vpop.eup %4291 }
0x14c3   :  { %2699 = vrot.lane.b32.xlu1 %v4290_v3, %s4381_s30  ;;  %v4294_v12 = vpop.eup %4293 }
0x14c4   :  { %v4296_v21 = vpop.eup %4295 }
0x14c5   :  { %2701 = vrot.lane.b32.xlu0 %v4292_v24, %s4381_s30  ;;  %v4298_v47 = vpop.eup %4297 }
0x14c6   :  { %v4300_v26 = vpop.eup %4299  ;;  %v2530_v32 = vadd.f32 1.0, %v4298_v47 }
0x14c7   :  { %2552 = vrot.lane.b32.xlu1 %v4294_v12, %s4381_s30  ;;  %v4302_v39 = vpop.eup %4301  ;;  %v2531_v30 = vadd.f32 1.0, %v4300_v26  ;;  %v2602_v26 = vsel %vm2599_vm4, 1, %v4379_v1 }
0x14c8   :  { %v4304_v52 = vpop.eup %4303  ;;  %4309 = vrcp.f32 %v2530_v32  ;;  %v2681_v2 = vadd.f32 1.0, %v4302_v39  ;;  %v2604_v32 = vsel %vm2601_vm6, 1, %v4379_v1  ;;  %v5936_v39 = vsel %vm1902_vm9, %v5749_v29, %v5740_v49 }
0x14c9   :  { %2703 = vrot.lane.b32.xlu0 %v4296_v21, %s4381_s30  ;;  %v4306_v53 = vpop.eup %4305  ;;  %4311 = vrcp.f32 %v2531_v30  ;;  %v2682_v54 = vadd.f32 1.0, %v4304_v52  ;;  %v5946_v52 = vsel %vm1903_vm10, %v5742_v51, %v5724_v23  ;;  %v5968_v51 = vsel %vm1904_vm11, %v5746_v63, %v5732_v6 }
0x14ca   :  { %v4308_v4 = vpop.eup %4307  ;;  %v2532_v33 = vadd.f32 1.0, %v4306_v53  ;;  %4313 = vrcp.f32 %v2681_v2 }
0x14cb   :  { %v2683_v59 = vadd.f32 1.0, %v4308_v4  ;;  %4315 = vrcp.f32 %v2682_v54 }
0x14cc   :  { %4317 = vrcp.f32 %v2532_v33 }
0x14cd   :  { %4319 = vrcp.f32 %v2683_v59 }
0x14d2   :  { %v5902_v17 = vpop.eup %4309 }
0x14d3   :  { %v5905_v43 = vpop.eup %4311  ;;  %v2542_v35 = vmul.f32 %v5902_v17, %v5936_v39 }
0x14d4   :  { %v5908_v37 = vpop.eup %4313  ;;  %v2543_v1 = vmul.f32 %v5905_v43, %v5946_v52 }
0x14d5   :  { %v5913_v12 = vpop.eup %4315  ;;  %v2693_v29 = vmul.f32 %v5908_v37, %v2391_v41 }
0x14d6   :  { %v5916_v25 = vpop.eup %4317  ;;  %v2694_v23 = vmul.f32 %v5913_v12, %v2392_v60 }
0x14d7   :  { %v5922_v19 = vpop.eup %4319  ;;  %v2544_v5 = vmul.f32 %v5916_v25, %v5968_v51 }
0x14d8   :  { %v2695_v8 = vmul.f32 %v5922_v19, %v2393_v10 }
0x1531   :  { %v2549_v14 = vpop.permute.xlu1 %2548 }
0x1532   :  { %v2557_v9 = vmul.f32 %v5902_v17, %v2549_v14 }
0x1533   :  { %v2551_v58 = vpop.permute.xlu0 %2550 }
0x1534   :  { %2563 = vrot.lane.b32.xlu1 %v2557_v9, %s4381_s30  ;;  %v2558_v40 = vmul.f32 %v5905_v43, %v2551_v58 }
0x1535   :  { %v2700_v3 = vpop.permute.xlu1 %2699 }
0x1536   :  { %v2708_v24 = vmul.f32 %v5908_v37, %v2700_v3  ;;  %2565 = vrot.lane.b32.xlu0 %v2558_v40, %s4381_s30 }
0x1537   :  { %v2702_v21 = vpop.permute.xlu0 %2701 }
0x1538   :  { %2714 = vrot.lane.b32.xlu1 %v2708_v24, %s4381_s30  ;;  %v2709_v38 = vmul.f32 %v5913_v12, %v2702_v21 }
0x1539   :  { %v2553_v20 = vpop.permute.xlu1 %2552 }
0x153a   :  { %v2559_v28 = vmul.f32 %v5916_v25, %v2553_v20  ;;  %2716 = vrot.lane.b32.xlu0 %v2709_v38, %s4381_s30 }
0x153b   :  { %v2704_v13 = vpop.permute.xlu0 %2703 }
0x153c   :  { %2567 = vrot.lane.b32.xlu1 %v2559_v28, %s4381_s30  ;;  %v2710_v47 = vmul.f32 %v5922_v19, %v2704_v13 }
0x153e   :  { %2718 = vrot.lane.b32.xlu0 %v2710_v47, %s4381_s30 }
0x1540   :  { %2606 = vperm.xlu1 %3947, %v2602_v26  }
0x1542   :  { %2609 = vperm.xlu0 %3946, %v2603_v57  }
0x1544   :  { %2612 = vperm.xlu1 %3947, %v2604_v32  }
0x15a6   :  { %v2564_v30 = vpop.permute.xlu1 %2563 }
0x15a7   :  { %v5940_v7 = vadd.f32 %v2564_v30, %v2542_v35 }
0x15a8   :  { %v2566_v49 = vpop.permute.xlu0 %2565 }
0x15a9   :  { %4321 = vtanh.f32 %v5940_v7  ;;  %v5956_v2 = vadd.f32 %v2566_v49, %v2543_v1 }
0x15aa   :  { %v2715_v53 = vpop.permute.xlu1 %2714 }
0x15ab   :  { %v2723_v54 = vadd.f32 %v2715_v53, %v2693_v29  ;;  %4323 = vtanh.f32 %v5956_v2 }
0x15ac   :  { %v2717_v44 = vpop.permute.xlu0 %2716 }
0x15ad   :  { %4325 = vtanh.f32 %v2723_v54  ;;  %v2724_v4 = vadd.f32 %v2717_v44, %v2694_v23 }
0x15ae   :  { %v2568_v33 = vpop.permute.xlu1 %2567 }
0x15af   :  { %v5972_v59 = vadd.f32 %v2568_v33, %v2544_v5  ;;  %4327 = vtanh.f32 %v2724_v4 }
0x15b0   :  { %v2719_v50 = vpop.permute.xlu0 %2718 }
0x15b1   :  { %4329 = vtanh.f32 %v5972_v59  ;;  %v2725_v6 = vadd.f32 %v2719_v50, %v2695_v8 }
0x15b3   :  { %v4322_v63 = vpop.eup %4321  ;;  %4331 = vtanh.f32 %v2725_v6 }
0x15b4   :  { %2581 = vrot.lane.b32.xlu0 %v4322_v63, %s4381_s30 }
0x15b5   :  { %v4324_v14 = vpop.eup %4323 }
0x15b6   :  { %2583 = vrot.lane.b32.xlu1 %v4324_v14, %s4381_s30 }
0x15b7   :  { %v4326_v9 = vpop.eup %4325 }
0x15b8   :  { %2732 = vrot.lane.b32.xlu0 %v4326_v9, %s4381_s30 }
0x15b9   :  { %v4328_v58 = vpop.eup %4327 }
0x15ba   :  { %2734 = vrot.lane.b32.xlu1 %v4328_v58, %s4381_s30 }
0x15bb   :  { %v4330_v40 = vpop.eup %4329 }
0x15bc   :  { %2585 = vrot.lane.b32.xlu0 %v4330_v40, %s4381_s30 }
0x15bd   :  { %v4332_v27 = vpop.eup %4331 }
0x15be   :  { %2736 = vrot.lane.b32.xlu1 %v4332_v27, %s4381_s30 }
0x15bf   :  { %v5986_v34 = vpop.permute.xlu1 %2606 }
0x15c0   :  { %vm2614_vm8 = vcmp.eq.s32.totalorder %v5986_v34, 1 }
0x15c1   :  { %v5988_v3 = vpop.permute.xlu0 %2609 }
0x15c2   :  { %vm2615_vm9 = vcmp.eq.s32.totalorder %v5988_v3, 1 }
0x15c3   :  { %v5990_v24 = vpop.permute.xlu1 %2612 }
0x15c4   :  { %vm2616_vm10 = vcmp.eq.s32.totalorder %v5990_v24, 1  ;;  %v3965_v24 = vld [vmem:[%s6195_s12] sm:$0xff]  }
0x1626   :  { %v2582_v21 = vpop.permute.xlu0 %2581 }
0x1627   :  { %v2590_v38 = vmul.f32 %v5902_v17, %v2582_v21 }
0x1628   :  { %v2584_v20 = vpop.permute.xlu1 %2583 }
0x1629   :  { %v2591_v28 = vmul.f32 %v5905_v43, %v2584_v20  ;;  %v5997_v47 = vsel %vm2258_vm1, %v2590_v38, %v5822_v48 }
0x162a   :  { %v2733_v13 = vpop.permute.xlu0 %2732 }
0x162b   :  { %v6002_v26 = vsel %vm2259_vm2, %v2591_v28, %v5817_v61  ;;  %v2741_v57 = vmul.f32 %v5908_v37, %v2733_v13 }
0x162c   :  { %v2749_v32 = vpack.c.bf16 %v6002_v26, %v5997_v47  ;;  %v2735_v17 = vpop.permute.xlu1 %2734 }
0x162d   :  { %v2742_v35 = vmul.f32 %v5913_v12, %v2735_v17  ;;  %v2744_v61 = vsel %vm2614_vm8, %v2741_v57, %v5846_v0 }
0x162e   :  { %v2586_v43 = vpop.permute.xlu0 %2585  ;;  %2753 = vrot.lane.b32.xlu0 %v2749_v32, %s4382_s28 }
0x162f   :  { %v2592_v48 = vmul.f32 %v5916_v25, %v2586_v43  ;;  %v2745_v37 = vsel %vm2615_vm9, %v2742_v35, %v5851_v62 }
0x1630   :  { %v2747_v30 = vpack.c.bf16 %v2745_v37, %v2744_v61  ;;  %v2737_v1 = vpop.permute.xlu1 %2736 }
0x1631   :  { %v6021_v12 = vsel %vm2260_vm15, %v2592_v48, %v5808_v45  ;;  %v2743_v25 = vmul.f32 %v5922_v19, %v2737_v1 }
0x1632   :  { %v2750_v41 = vpack.c.bf16 %v6021_v12, %v6021_v12  ;;  %2813 = vrot.lane.b32.xlu1 %v2747_v30, %s4382_s28 }
0x1633   :  { %v2746_v0 = vsel %vm2616_vm10, %v2743_v25, %v5834_v56 }
0x1634   :  { %2755 = vrot.lane.b32.xlu0 %v2750_v41, %s4382_s28  ;;  %v2748_v62 = vpack.c.bf16 %v2746_v0, %v2746_v0  ;;  %v3555_v41 = vsel %vm84_vm3, 1.0, %v4380_v15  ;;  %vm3119_vm3 = vcmask 523264  }
0x1635   :  { %v2990_v25 = vsel %vm2971_vm0, %v3555_v41, -inf  ;;  %vm4383_vm0 = vmmov 0  }
0x1636   :  { %2815 = vrot.lane.b32.xlu1 %v2748_v62, %s4382_s28  ;;  %v2991_v0 = vrot.slane %v2990_v25, 4 }
0x1638   :  { %v2992_v62 = vmax.f32 %v2990_v25, %v2991_v0  ;;  %v3966_v25 = vld [vmem:[%s6195_s12 + $0x8] sm:$0xff]  }
0x16a0   :  { %v2754_v45 = vpop.permute.xlu0 %2753 }
0x16a1   :  { %3877 = vmatprep.mubr.msk.bf16.mxu0 %vm115_vm7, %v2754_v45  ;;  %v2993_v45 = vrot.slane %v2992_v62, 2 }
0x16a4   :  { %v2814_v49 = vpop.permute.xlu1 %2813 }
0x16a5   :  { %3885 = vmatprep.mubr.msk.bf16.mxu1 %vm115_vm7, %v2814_v49  ;;  %v2994_v49 = vmax.f32 %v2992_v62, %v2993_v45  ;;  %v3967_v62 = vld [vmem:[%s6196_s11] sm:$0xff]   ;;  %v3968_v45 = vld [vmem:[%s6196_s11 + $0x8] sm:$0xff]  }
0x16a6   :  { %v2756_v19 = vpop.permute.xlu0 %2755 }
0x16a7   :  { %3878 = vmatmul.mubr.msk.bf16.vlgmr.msra.gmra.mrb[44].mxu0 %vm115_vm7, %v2756_v19  ;;  %v2995_v19 = vrot.slane %v2994_v49, 1 }
0x16a8   :  { %v2816_v29 = vpop.permute.xlu1 %2815  ;;  %3893 = vmatprep.mubr.msk.bf16.mxu0 %vm4383_vm0, %v4380_v15 }
0x16a9   :  { %3886 = vmatmul.mubr.msk.bf16.vlgmr.msra.gmra.mrb[44].mxu1 %vm115_vm7, %v2816_v29  ;;  %v2996_v29 = vmax.f32 %v2994_v49, %v2995_v19  ;;  %v3556_v49 = vld [vmem:[%s6198_s8] ss:$0 sm:$0xff] }
0x16aa   :  { %3905 = vmatprep.mubr.msk.bf16.mxu1 %vm4383_vm0, %v4380_v15 }
0x177a   :  { %v3879_v53 = vpop.f32.mrb[44].mxu0 }
0x177b   :  { %v2797_v54 = vpop.f32.mrb[45].mxu0 }
0x177c   :  { %v3880_v56 = vpop.f32.mrb[46].mxu0  ;;  %v3887_v60 = vpop.f32.mrb[44].mxu1 }
0x177d   :  { %v2800_v23 = vpop.f32.mrb[47].mxu0  ;;  %v2866_v44 = vadd.f32 %v3887_v60, %v3879_v53  ;;  %v2857_v5 = vpop.f32.mrb[45].mxu1  ;;  %v2596_v53 = vsel %vm2258_vm1, %v5940_v7, %v5936_v39  ;;  %v2598_v60 = vsel %vm2260_vm15, %v5972_v59, %v5968_v51  ;;  %v3959_v51 = vld [vmem:[%s6192_s9] sm:$0xff]   ;;  %v3960_v59 = vld [vmem:[%s6192_s9 + $0x8] sm:$0xff]  }
0x177e   :  { %v2858_v4 = vadd.f32 %v2857_v5, %v2797_v54  ;;  %v3888_v33 = vpop.f32.mrb[46].mxu1  ;;  %v2997_v54 = vadd.f32 %v2996_v29, %v4538_v36  ;;  %3898 = vmatpush3.bf16.msra.mxu1 %v3959_v51  ;;  %v3963_v5 = vld [vmem:[%s6193_s7] sm:$0xff]  }
0x177f   :  { %v2860_v10 = vpop.f32.mrb[47].mxu1  ;;  %v2873_v6 = vadd.f32 %v5882_v46, %v2866_v44  ;;  %3899 = vmatprep.subr.bf16.mxu1 %v4380_v15  ;;  %3890 = vmatpush3.bf16.msra.mxu0 %v3963_v5  ;;  %v3964_v33 = vld [vmem:[%s6193_s7 + $0x8] sm:$0xff]  }
0x1780   :  { %v2871_v8 = vadd.f32 %v5882_v46, %v2858_v4  ;;  %v2861_v50 = vadd.f32 %v2860_v10, %v2800_v23  ;;  %v2998_v7 = vmax.f32 %v2997_v54, 1.0  ;;  %v3961_v4 = vld [vmem:[%s6192_s9 + $0x10] sm:$0xff]   ;;  %3891 = vmatprep.subr.bf16.mxu0 %v4380_v15  ;;  %v3962_v10 = vld [vmem:[%s6192_s9 + $0x18] sm:$0xff]  }
0x1781   :  { %v3552_v21 = vmul.f32 -1.442695, %v2873_v6 }
0x1782   :  { %4333 = vtanh.f32 %v2871_v8  ;;  %v2872_v63 = vadd.f32 %v5882_v46, %v2861_v50  ;;  %v3550_v40 = vmul.f32 -1.442695, %v2871_v8  ;;  %3900 = vmatpush3.bf16.msra.mxu1 %v3960_v59  ;;  %v3078_v8 = vld [vmem:[%s6194_s2] sm:$0xff] }
0x1783   :  { %3901 = vmatprep.subr.bf16.mxu1 %v4380_v15  ;;  %3892 = vmatpush3.bf16.msra.mxu0 %v3964_v33  ;;  %v3087_v50 = vpack.c.bf16 %v3078_v8, %v3078_v8 }
0x1784   :  { %4335 = vtanh.f32 %v2872_v63  ;;  %v3551_v27 = vmul.f32 -1.442695, %v2872_v63  ;;  %3909 = vmatprep.subr.bf16.mxu0 %v4380_v15 }
0x1785   :  { %4337 = vtanh.f32 %v2873_v6 }
0x1786   :  { %4339 = vpow2.f32 %v3550_v40  ;;  %3902 = vmatpush3.bf16.msra.mxu1 %v3961_v4  ;;  %v3972_v4 = vld [vmem:[%s6200_s16 + $0x8] sm:$0xff]  }
0x1787   :  { %4341 = vpow2.f32 %v3551_v27  ;;  %3903 = vmatprep.subr.bf16.mxu1 %v4380_v15 }
0x1788   :  { %4343 = vpow2.f32 %v3552_v21 }
0x178a   :  { %3904 = vmatpush3.bf16.msra.mxu1 %v3962_v10 }
0x178b   :  { %3925 = vmatprep.subr.bf16.mxu1 %v4380_v15 }
0x178c   :  { %v4334_v14 = vpop.eup %4333 }
0x178d   :  { %2901 = vrot.lane.b32.xlu0 %v4334_v14, %s4381_s30  ;;  %3906 = vmatmul.mubr.msk.bf16.vlgmr.msra.gmra.mrb[48].mxu1 %vm3119_vm3, %v3087_v50 }
0x178e   :  { %v4336_v9 = vpop.eup %4335  ;;  %3929 = vmatprep.mubr.msk.bf16.mxu1 %vm4383_vm0, %v4380_v15 }
0x178f   :  { %v4338_v58 = vpop.eup %4337  ;;  %2903 = vrot.lane.b32.xlu1 %v4336_v9, %s4381_s30 }
0x1790   :  { %v4340_v38 = vpop.eup %4339 }
0x1791   :  { %2905 = vrot.lane.b32.xlu0 %v4338_v58, %s4381_s30  ;;  %v4342_v20 = vpop.eup %4341  ;;  %v2883_v46 = vadd.f32 1.0, %v4340_v38 }
0x1792   :  { %v4344_v28 = vpop.eup %4343  ;;  %v2884_v13 = vadd.f32 1.0, %v4342_v20 }
0x1793   :  { %v2885_v57 = vadd.f32 1.0, %v4344_v28  ;;  %4345 = vrcp.f32 %v2883_v46 }
0x1794   :  { %4347 = vrcp.f32 %v2884_v13 }
0x1795   :  { %4349 = vrcp.f32 %v2885_v57 }
0x179d   :  { %v6043_v32 = vpop.eup %4345 }
0x179e   :  { %v6046_v43 = vpop.eup %4347  ;;  %v2895_v55 = vmul.f32 %v6043_v32, %v2596_v53 }
0x179f   :  { %v6049_v61 = vpop.eup %4349 }
0x17a0   :  { %v2897_v39 = vmul.f32 %v6049_v61, %v2598_v60 }
0x17ff   :  { %v2902_v17 = vpop.permute.xlu0 %2901 }
0x1800   :  { %v2910_v35 = vmul.f32 %v6043_v32, %v2902_v17 }
0x1801   :  { %v2904_v48 = vpop.permute.xlu1 %2903 }
0x1802   :  { %2916 = vrot.lane.b32.xlu1 %v2910_v35, %s4381_s30  ;;  %v2911_v37 = vmul.f32 %v6046_v43, %v2904_v48 }
0x1803   :  { %v2906_v30 = vpop.permute.xlu0 %2905 }
0x1804   :  { %v2912_v1 = vmul.f32 %v6049_v61, %v2906_v30  ;;  %2918 = vrot.lane.b32.xlu0 %v2911_v37, %s4381_s30 }
0x1806   :  { %2920 = vrot.lane.b32.xlu1 %v2912_v1, %s4381_s30 }
0x1808   :  { %3949 = vperm.xlu0 %3946, %v3948_v22   ;;  %v2597_v22 = vsel %vm2259_vm2, %v5956_v2, %v5946_v52 }
0x1809   :  { %v2896_v56 = vmul.f32 %v6046_v43, %v2597_v22 }
0x180a   :  { %2964 = vperm.xlu1 %3947, %v3555_v41  }
0x1874   :  { %v2917_v16 = vpop.permute.xlu1 %2916 }
0x1875   :  { %v2925_v18 = vadd.f32 %v2917_v16, %v2895_v55 }
0x1876   :  { %v2919_v42 = vpop.permute.xlu0 %2918 }
0x1877   :  { %4351 = vtanh.f32 %v2925_v18  ;;  %v2926_v36 = vadd.f32 %v2919_v42, %v2896_v56 }
0x1878   :  { %v2921_v23 = vpop.permute.xlu1 %2920 }
0x1879   :  { %v2927_v44 = vadd.f32 %v2921_v23, %v2897_v39  ;;  %4353 = vtanh.f32 %v2926_v36  ;;  %v3969_v39 = vld [vmem:[%s6199_s14] sm:$0xff]  }
0x187a   :  { %3926 = vmatpush3.bf16.msra.mxu1 %v3969_v39  ;;  %v3971_v36 = vld [vmem:[%s6200_s16] sm:$0xff]  }
0x187b   :  { %4355 = vtanh.f32 %v2927_v44  ;;  %3927 = vmatprep.subr.bf16.mxu1 %v4380_v15  ;;  %v3572_v44 = vld [vmem:[%s6201_s13] ss:$0 sm:$0xff] }
0x187c   :  { %4357 = vrcp.f32 %v2998_v7  ;;  %v3970_v7 = vld [vmem:[%s6199_s14 + $0x8] sm:$0xff]  }
0x187e   :  { %3928 = vmatpush3.bf16.msra.mxu1 %v3970_v7 }
0x1881   :  { %v4352_v31 = vpop.eup %4351 }
0x1882   :  { %2934 = vrot.lane.b32.xlu0 %v4352_v31, %s4381_s30 }
0x1883   :  { %v4354_v52 = vpop.eup %4353 }
0x1884   :  { %2936 = vrot.lane.b32.xlu1 %v4354_v52, %s4381_s30 }
0x1885   :  { %v4356_v2 = vpop.eup %4355 }
0x1886   :  { %v4358_v11 = vpop.eup %4357  ;;  %2938 = vrot.lane.b32.xlu0 %v4356_v2, %s4381_s30 }
0x1887   :  { %v3950_v6 = vpop.permute.xlu0 %3949 }
0x1888   :  { %3003 = vperm.xlu1 %3947, %v4358_v11   ;;  %v3952_v20 = vunpack.i.h.bf16 %v3950_v6  ;;  %v3951_v28 = vunpack.i.l.bf16 %v3950_v6 }
0x1889   :  { %v2965_v63 = vpop.permute.xlu1 %2964 }
0x18f4   :  { %v2935_v14 = vpop.permute.xlu0 %2934 }
0x18f5   :  { %v2943_v27 = vmul.f32 %v6043_v32, %v2935_v14 }
0x18f6   :  { %v2937_v9 = vpop.permute.xlu1 %2936 }
0x18f7   :  { %v2944_v58 = vmul.f32 %v6046_v43, %v2937_v9  ;;  %v2946_v46 = vsel %vm2614_vm8, %v2943_v27, %v5997_v47  ;;  %v3560_v47 = vld [vmem:[%s6197_s10] ss:$0 sm:$0xff] }
0x18f8   :  { %v2939_v40 = vpop.permute.xlu0 %2938  ;;  %v2967_v17 = vmul.f32 %v3951_v28, %v2946_v46  ;;  %v3577_v9 = vld [vmem:[%s6203_s17] ss:$0 sm:$0xff] }
0x18f9   :  { %v2947_v21 = vsel %vm2615_vm9, %v2944_v58, %v6002_v26  ;;  %v2945_v38 = vmul.f32 %v6049_v61, %v2939_v40  ;;  %v3157_v61 = vpop.f32.mrb[48].mxu1 }
0x18fa   :  { %v2968_v13 = vmul.f32 %v3952_v20, %v2947_v21  ;;  %v3907_v37 = vpop.f32.mrb[49].mxu1  ;;  %v3158_v1 = vadd.f32 %v3560_v47, %v3157_v61 }
0x18fb   :  { %v2948_v57 = vsel %vm2616_vm10, %v2945_v38, %v6021_v12  ;;  %v3160_v30 = vpop.f32.mrb[50].mxu1 }
0x18fc   :  { %v2969_v35 = vmul.f32 %v2965_v63, %v2948_v57  ;;  %v2980_v32 = vadd.f32 %v2968_v13, %v2967_v17  ;;  %v3908_v34 = vpop.f32.mrb[51].mxu1  ;;  %v3163_v41 = vmax.f32 %v3158_v1, 0.0 }
0x18fe   :  { %v2989_v43 = vadd.f32 %v2980_v32, %v2969_v35  ;;  %v3173_v0 = vpack.c.bf16 %v3163_v41, %v3163_v41 }
0x1907   :  { %v3004_v48 = vpop.permute.xlu1 %3003 }
0x1908   :  { %v3006_v3 = vmul.f32 %v3004_v48, %v2989_v43 }
0x190a   :  { %v3011_v26 = vpack.c.bf16 %v3006_v3, %v3006_v3 }
0x190c   :  { %3020 = vrot.lane.b32.xlu0 %v3011_v26, %s4382_s28 }
0x197e   :  { %v3021_v12 = vpop.permute.xlu0 %3020 }
0x197f   :  { %3894 = vmatmul.mubr.msk.bf16.vlgmr.msra.gmra.mrb[48].mxu0 %vm115_vm7, %v3021_v12 }
0x1980   :  { %3910 = vmatpush3.bf16.msra.mxu0 %v3965_v24  ;;  %3913 = vmatprep.mubr.msk.bf16.mxu0 %vm4383_vm0, %v4380_v15 }
0x1981   :  { %3911 = vmatprep.subr.bf16.mxu0 %v4380_v15 }
0x1984   :  { %3912 = vmatpush3.bf16.msra.mxu0 %v3966_v25 }
0x1985   :  { %3917 = vmatprep.subr.bf16.mxu0 %v4380_v15 }
0x1987   :  { %3914 = vmatmul.mubr.msk.bf16.vlgmr.msra.gmra.mrb[52].mxu0 %vm115_vm7, %v3173_v0 }
0x1988   :  { %3918 = vmatpush3.bf16.msra.mxu0 %v3967_v62  ;;  %3921 = vmatprep.mubr.msk.bf16.mxu0 %vm4383_vm0, %v4380_v15 }
0x1989   :  { %3919 = vmatprep.subr.bf16.mxu0 %v4380_v15 }
0x198c   :  { %3920 = vmatpush3.bf16.msra.mxu0 %v3968_v45 }
0x198d   :  { %3933 = vmatprep.subr.bf16.mxu0 %v4380_v15 }
0x1a52   :  { %v3071_v19 = vpop.f32.mrb[48].mxu0 }
0x1a53   :  { %v3072_v29 = vadd.f32 %v3556_v49, %v3071_v19  ;;  %v3895_v53 = vpop.f32.mrb[49].mxu0 }
0x1a54   :  { %v3074_v55 = vpop.f32.mrb[50].mxu0 }
0x1a55   :  { %v3077_v54 = vmax.f32 %v3072_v29, 0.0  ;;  %v3896_v16 = vpop.f32.mrb[51].mxu0 }
0x1a57   :  { %v3168_v18 = vpack.c.bf16 %v3077_v54, %v3077_v54 }
0x1a59   :  { %3922 = vmatmul.mubr.msk.bf16.vlgmr.msra.gmra.mrb[56].mxu0 %vm115_vm7, %v3168_v18 }
0x1a5a   :  { %v3223_v22 = vpop.f32.mrb[52].mxu0  ;;  %3937 = vmatprep.mubr.msk.bf16.mxu0 %vm4383_vm0, %v4380_v15  ;;  %3934 = vmatpush3.bf16.msra.mxu0 %v3971_v36 }
0x1a5b   :  { %v3915_v56 = vpop.f32.mrb[53].mxu0  ;;  %3935 = vmatprep.subr.bf16.mxu0 %v4380_v15  ;;  %v3573_v15 = vld [vmem:[%s6202_s15] ss:$0 sm:$0xff] }
0x1a5c   :  { %v3226_v60 = vpop.f32.mrb[54].mxu0 }
0x1a5d   :  { %v3916_v42 = vpop.f32.mrb[55].mxu0 }
0x1a5e   :  { %3936 = vmatpush3.bf16.msra.mxu0 %v3972_v4 }
0x1b2c   :  { %v3278_v23 = vpop.f32.mrb[56].mxu0 }
0x1b2d   :  { %v3279_v31 = vadd.f32 %v3278_v23, %v3223_v22  ;;  %v3923_v52 = vpop.f32.mrb[57].mxu0 }
0x1b2e   :  { %v3281_v2 = vpop.f32.mrb[58].mxu0 }
0x1b2f   :  { %v3291_v11 = vadd.f32 %v3572_v44, %v3279_v31  ;;  %v3924_v51 = vpop.f32.mrb[59].mxu0 }
0x1b31   :  { %v3292_v59 = vmax.f32 %v3291_v11, 0.0 }
0x1b33   :  { %v3297_v5 = vpack.c.bf16 %v3292_v59, %v3292_v59 }
0x1b35   :  { %3930 = vmatmul.mubr.msk.bf16.vlgmr.msra.gmra.mrb[52].mxu1 %vm115_vm7, %v3297_v5 }
0x1c08   :  { %v3354_v33 = vpop.f32.mrb[52].mxu1 }
0x1c09   :  { %v3355_v10 = vadd.f32 %v3573_v15, %v3354_v33  ;;  %v3931_v8 = vpop.f32.mrb[53].mxu1 }
0x1c0a   :  { %v3357_v50 = vpop.f32.mrb[54].mxu1 }
0x1c0b   :  { %v3360_v6 = vmax.f32 %v3355_v10, 0.0  ;;  %v3932_v63 = vpop.f32.mrb[55].mxu1 }
0x1c0d   :  { %v3365_v14 = vpack.c.bf16 %v3360_v6, %v3360_v6 }
0x1c0f   :  { %3938 = vmatmul.mubr.msk.bf16.vlgmr.msra.gmra.mrb[60].mxu0 %vm115_vm7, %v3365_v14 }
0x1ce2   :  { %v3422_v58 = vpop.f32.mrb[60].mxu0 }
0x1ce3   :  { %v3423_v40 = vadd.f32 %v3577_v9, %v3422_v58  ;;  %v3939_v27 = vpop.f32.mrb[61].mxu0 }
0x1ce4   :  { %v3425_v21 = vpop.f32.mrb[62].mxu0 }
0x1ce5   :  { %3428 = vst [vmem:[%s6204_s18] sm:$0xff] %v3423_v40  ;;  %v3940_v38 = vpop.f32.mrb[63].mxu0 }

</bundles_post_ra>
